<compile_context>
chip_gen: v7x
topology: tpu7x:2x2x1
jax: 0.10.0
libtpu: 0.0.40
codegen_flags: <defaults>
</compile_context>

<pallas_src>
import math

import jax
import jax.numpy as jnp
from jax import lax
from jax.experimental import pallas as pl
from jax.experimental.pallas import tpu as pltpu

# ---------------- small synthetic hyper-parameters ----------------
VOCAB = 64
B = 2
T = 8            # max_len
H_ENC = 32       # config.hidden_size
FF = 64          # encoder FFN width
HIDDEN = 32      # hidden_dim (slot LSTM)
NUM_SLOT = 8
NUM_INTENT = 8
NEG_INF = -1e9
INV_SQRT_H = 1.0 / math.sqrt(H_ENC)


# ---------------- shared math helpers (used in-kernel and by the reference) ----------------
def _layer_norm(y, g, b):
    mu = jnp.mean(y, axis=-1, keepdims=True)
    var = jnp.mean((y - mu) ** 2, axis=-1, keepdims=True)
    return (y - mu) * lax.rsqrt(var + 1e-5) * g + b


def _softmax_last(x):
    m = jnp.max(x, axis=-1, keepdims=True)
    e = jnp.exp(x - m)
    return e / jnp.sum(e, axis=-1, keepdims=True)


# ---------------- in-kernel building blocks ----------------
def _length_mask_btl(lens_i32, n_labels):
    """mask[b, t, l] = 1.0 iff t < len[b]  (built without lane-relayout reshapes)."""
    pos = lax.broadcasted_iota(jnp.int32, (B, T, n_labels), 1)
    lens_bl = jnp.broadcast_to(lens_i32, (B, n_labels))                 # lane broadcast
    lens_btl = jnp.broadcast_to(lens_bl[:, None, :], (B, T, n_labels))  # sublane broadcast
    return (pos < lens_btl).astype(jnp.float32)


def _lstm_block(x_flat, len_mask_bt, wih, whh, bias, hidden_dim, hs_scr):
    """Unidirectional LSTM over T steps; x_flat is batch-major flat [B*T, Din].

    - input projection hoisted out of the recurrence (one matmul for all steps),
    - h / c carried in registers; only the per-step h history is written to a
      tiny VMEM scratch so the output head can run as a single matmul,
    - T=8 recurrence fully unrolled (static python loop -> static slices),
    - pack_padded emulation: state frozen past len[b]; caller masks the outputs.
    Returns the h history as [B*T, hidden_dim] (batch-major).
    """
    gates_in = jnp.dot(x_flat, wih, preferred_element_type=jnp.float32) + bias  # [B*T, 4H]
    gates_bt = gates_in.reshape(B, T, 4 * hidden_dim)
    h = jnp.zeros((B, hidden_dim), jnp.float32)
    c = jnp.zeros((B, hidden_dim), jnp.float32)
    for t in range(T):                                   # static unroll, t is a python int
        g = gates_bt[:, t, :] + jnp.dot(h, whh, preferred_element_type=jnp.float32)
        i_g = jax.nn.sigmoid(g[:, 0:hidden_dim])
        f_g = jax.nn.sigmoid(g[:, hidden_dim:2 * hidden_dim])
        g_g = jnp.tanh(g[:, 2 * hidden_dim:3 * hidden_dim])
        o_g = jax.nn.sigmoid(g[:, 3 * hidden_dim:4 * hidden_dim])
        c_new = f_g * c + i_g * g_g
        h_new = o_g * jnp.tanh(c_new)
        m_t = len_mask_bt[:, t:t + 1]                    # [B, 1]
        c = m_t * c_new + (1.0 - m_t) * c                # freeze state past len[b]
        h = m_t * h_new + (1.0 - m_t) * h
        hs_scr[:, t, :] = h                              # static-index VMEM scratch store
    return hs_scr[...].reshape(B * T, hidden_dim)


# ---------------- the fused forward kernel ----------------
def lowdim_kernel(
        ids_ref, amask_ref, len_ref,
        tok_ref, pos_ref,
        wq_ref, bq_ref, wk_ref, bk_ref, wv_ref, bv_ref,
        wo_ref, bo_ref, ln1g_ref, ln1b_ref,
        w1_ref, b1_ref, w2_ref, b2_ref, ln2g_ref, ln2b_ref,
        s_wih_ref, s_whh_ref, s_b_ref, s_wout_ref, s_bout_ref,
        i_wih_ref, i_whh_ref, i_b_ref, i_wout_ref, i_bout_ref,
        intent_ref, slot_ref,
        s_hs_scr, i_hs_scr):
    # ---- token embedding via one-hot matmul (robust in-kernel gather) + positions
    ids = ids_ref[...]                                                    # [B*T, 1] int32
    onehot = (ids == lax.broadcasted_iota(jnp.int32, (B * T, VOCAB), 1)).astype(jnp.float32)
    x = jnp.dot(onehot, tok_ref[...], preferred_element_type=jnp.float32)  # [B*T, H]
    x = x + jnp.concatenate([pos_ref[...]] * B, axis=0)                    # pos[t] per b-major row

    # ---- single-head self-attention + FFN (stand-in for xlmr); projections run flat 2-D
    q = jnp.dot(x, wq_ref[...], preferred_element_type=jnp.float32) + bq_ref[...]
    k = jnp.dot(x, wk_ref[...], preferred_element_type=jnp.float32) + bk_ref[...]
    v = jnp.dot(x, wv_ref[...], preferred_element_type=jnp.float32) + bv_ref[...]
    qb = q.reshape(B, T, H_ENC)
    kb = k.reshape(B, T, H_ENC)
    vb = v.reshape(B, T, H_ENC)
    scores = jnp.einsum('bqh,bkh->bqk', qb, kb,
                        preferred_element_type=jnp.float32) * INV_SQRT_H
    amask = amask_ref[...]                                                # [B, T], 1.0 = attend
    scores = scores + (1.0 - amask)[:, None, :] * NEG_INF
    attn = _softmax_last(scores)
    ctx = jnp.einsum('bqk,bkh->bqh', attn, vb, preferred_element_type=jnp.float32)
    attn_out = jnp.dot(ctx.reshape(B * T, H_ENC), wo_ref[...],
                       preferred_element_type=jnp.float32) + bo_ref[...]

    h1 = _layer_norm(x + attn_out, ln1g_ref[...], ln1b_ref[...])
    ff = jnp.dot(h1, w1_ref[...], preferred_element_type=jnp.float32) + b1_ref[...]
    ff = jax.nn.gelu(ff, approximate=True)   # TODO(synk): XLM-R uses exact (erf) GELU
    ff = jnp.dot(ff, w2_ref[...], preferred_element_type=jnp.float32) + b2_ref[...]
    hidden = _layer_norm(h1 + ff, ln2g_ref[...], ln2b_ref[...])           # [B*T, H]

    # ---- length mask built in-kernel from len_list
    lens = len_ref[...]                                                   # [B, 1] int32
    len_mask = (lax.broadcasted_iota(jnp.int32, (B, T), 1)
                < jnp.broadcast_to(lens, (B, T))).astype(jnp.float32)     # [B, T]

    # ---- slot LSTM decoder: recurrence -> single head matmul -> single masked store
    s_h_all = _lstm_block(hidden, len_mask, s_wih_ref[...], s_whh_ref[...],
                          s_b_ref[...], HIDDEN, s_hs_scr)                 # [B*T, HIDDEN]
    slot_flat = (jnp.dot(s_h_all, s_wout_ref[...], preferred_element_type=jnp.float32)
                 + s_bout_ref[...])                                       # [B*T, NUM_SLOT]
    slot_ref[...] = slot_flat.reshape(B, T, NUM_SLOT) * _length_mask_btl(lens, NUM_SLOT)

    # ---- softmax over slots -> intent LSTM decoder (padded rows never reach the output)
    slot_prob = _softmax_last(slot_flat)                                  # [B*T, NUM_SLOT]
    i_h_all = _lstm_block(slot_prob, len_mask, i_wih_ref[...], i_whh_ref[...],
                          i_b_ref[...], NUM_SLOT, i_hs_scr)               # [B*T, NUM_SLOT]
    intent_flat = (jnp.dot(i_h_all, i_wout_ref[...], preferred_element_type=jnp.float32)
                   + i_bout_ref[...])                                     # [B*T, NUM_INTENT]
    intent_ref[...] = intent_flat.reshape(B, T, NUM_INTENT) * _length_mask_btl(lens, NUM_INTENT)


# ---------------- wrapper: one fused pallas_call, everything resident in VMEM ----------------
def _vmem_spec():
    return pl.BlockSpec(memory_space=pltpu.MemorySpace.VMEM)


@jax.jit
def lowdim_forward(params, input_ids, att_mask, len_list):
    enc = params['enc']
    sd = params['slot_dec']
    ide = params['intent_dec']
    args = (
        input_ids.reshape(B * T, 1).astype(jnp.int32),
        att_mask.reshape(B, T).astype(jnp.float32),
        len_list.reshape(B, 1).astype(jnp.int32),
        params['tok_emb'], params['pos_emb'],
        enc['wq'], enc['bq'], enc['wk'], enc['bk'], enc['wv'], enc['bv'],
        enc['wo'], enc['bo'], enc['ln1g'], enc['ln1b'],
        enc['w1'], enc['b1'], enc['w2'], enc['b2'], enc['ln2g'], enc['ln2b'],
        sd['wih'], sd['whh'], sd['b'], sd['wout'], sd['bout'],
        ide['wih'], ide['whh'], ide['b'], ide['wout'], ide['bout'],
    )
    intent_pred, slot_pred = pl.pallas_call(
        lowdim_kernel,
        out_shape=(jax.ShapeDtypeStruct((B, T, NUM_INTENT), jnp.float32),
                   jax.ShapeDtypeStruct((B, T, NUM_SLOT), jnp.float32)),
        in_specs=[_vmem_spec() for _ in args],
        out_specs=(_vmem_spec(), _vmem_spec()),
        scratch_shapes=[pltpu.VMEM((B, T, HIDDEN), jnp.float32),     # slot-LSTM h history
                        pltpu.VMEM((B, T, NUM_SLOT), jnp.float32)],  # intent-LSTM h history
    )(*args)
    return intent_pred, slot_pred


# ---------------- deterministic parameter init ----------------
def init_params(key):
    def dense(k, shape, scale=0.05):
        return scale * jax.random.normal(k, shape, dtype=jnp.float32)

    ks = jax.random.split(key, 16)
    return {
        'tok_emb': dense(ks[0], (VOCAB, H_ENC)),
        'pos_emb': dense(ks[1], (T, H_ENC)),
        'enc': {
            'wq': dense(ks[2], (H_ENC, H_ENC)), 'bq': jnp.zeros((1, H_ENC), jnp.float32),
            'wk': dense(ks[3], (H_ENC, H_ENC)), 'bk': jnp.zeros((1, H_ENC), jnp.float32),
            'wv': dense(ks[4], (H_ENC, H_ENC)), 'bv': jnp.zeros((1, H_ENC), jnp.float32),
            'wo': dense(ks[5], (H_ENC, H_ENC)), 'bo': jnp.zeros((1, H_ENC), jnp.float32),
            'ln1g': jnp.ones((1, H_ENC), jnp.float32), 'ln1b': jnp.zeros((1, H_ENC), jnp.float32),
            'w1': dense(ks[6], (H_ENC, FF)), 'b1': jnp.zeros((1, FF), jnp.float32),
            'w2': dense(ks[7], (FF, H_ENC)), 'b2': jnp.zeros((1, H_ENC), jnp.float32),
            'ln2g': jnp.ones((1, H_ENC), jnp.float32), 'ln2b': jnp.zeros((1, H_ENC), jnp.float32),
        },
        # slot_dec = LSTMDecoder(config.hidden_size, hidden_dim, num_slot)
        'slot_dec': {
            'wih': dense(ks[8], (H_ENC, 4 * HIDDEN)),
            'whh': dense(ks[9], (HIDDEN, 4 * HIDDEN)),
            'b': jnp.zeros((1, 4 * HIDDEN), jnp.float32),
            'wout': dense(ks[10], (HIDDEN, NUM_SLOT)),
            'bout': jnp.zeros((1, NUM_SLOT), jnp.float32),
        },
        # intent_dec = LSTMDecoder(num_slot, num_slot, num_intent, use_crf=False)
        'intent_dec': {
            'wih': dense(ks[11], (NUM_SLOT, 4 * NUM_SLOT)),
            'whh': dense(ks[12], (NUM_SLOT, 4 * NUM_SLOT)),
            'b': jnp.zeros((1, 4 * NUM_SLOT), jnp.float32),
            'wout': dense(ks[13], (NUM_SLOT, NUM_INTENT)),
            'bout': jnp.zeros((1, NUM_INTENT), jnp.float32),
        },
    }


# ---------------- pure-JAX reference of the same math (for a numerical sanity check) ----------------
def lowdim_reference(params, input_ids, att_mask, len_list):
    enc = params['enc']
    x = params['tok_emb'][input_ids] + params['pos_emb'][None, :, :]      # [B,T,H]
    xf = x.reshape(B * T, H_ENC)
    q = (xf @ enc['wq'] + enc['bq']).reshape(B, T, H_ENC)
    k = (xf @ enc['wk'] + enc['bk']).reshape(B, T, H_ENC)
    v = (xf @ enc['wv'] + enc['bv']).reshape(B, T, H_ENC)
    scores = jnp.einsum('bqh,bkh->bqk', q, k) * INV_SQRT_H
    scores = scores + (1.0 - att_mask.astype(jnp.float32))[:, None, :] * NEG_INF
    ctx = jnp.einsum('bqk,bkh->bqh', _softmax_last(scores), v).reshape(B * T, H_ENC)
    attn_out = ctx @ enc['wo'] + enc['bo']
    h1 = _layer_norm(xf + attn_out, enc['ln1g'], enc['ln1b'])
    ff = jax.nn.gelu(h1 @ enc['w1'] + enc['b1'], approximate=True) @ enc['w2'] + enc['b2']
    hidden = _layer_norm(h1 + ff, enc['ln2g'], enc['ln2b']).reshape(B, T, H_ENC)

    len_mask = (jnp.arange(T)[None, :] < len_list[:, None]).astype(jnp.float32)   # [B,T]

    def lstm(x_btd, p, hdim):
        h = jnp.zeros((B, hdim), jnp.float32)
        c = jnp.zeros((B, hdim), jnp.float32)
        hs = []
        for t in range(T):
            g = x_btd[:, t, :] @ p['wih'] + h @ p['whh'] + p['b']
            i_g = jax.nn.sigmoid(g[:, 0:hdim])
            f_g = jax.nn.sigmoid(g[:, hdim:2 * hdim])
            g_g = jnp.tanh(g[:, 2 * hdim:3 * hdim])
            o_g = jax.nn.sigmoid(g[:, 3 * hdim:4 * hdim])
            c_new = f_g * c + i_g * g_g
            h_new = o_g * jnp.tanh(c_new)
            m = len_mask[:, t:t + 1]
            c = m * c_new + (1.0 - m) * c
            h = m * h_new + (1.0 - m) * h
            hs.append(h)
        out = jnp.stack(hs, axis=1) @ p['wout'] + p['bout']               # [B,T,L]
        return out * len_mask[:, :, None]                                 # zeros past len[b]

    slot_pred = lstm(hidden, params['slot_dec'], HIDDEN)
    slot_prob = _softmax_last(slot_pred)
    intent_pred = lstm(slot_prob, params['intent_dec'], NUM_SLOT)
    return intent_pred, slot_pred


if __name__ == "__main__":
    key = jax.random.PRNGKey(0)
    pkey, ikey = jax.random.split(key)
    params = init_params(pkey)

    input_ids = jax.random.randint(ikey, (B, T), 0, VOCAB)
    len_list = jnp.array([T, 5], dtype=jnp.int32)
    att_mask = (jnp.arange(T)[None, :] < len_list[:, None]).astype(jnp.int32)

    intent_pred, slot_pred = lowdim_forward(params, input_ids, att_mask, len_list)
    jax.block_until_ready((intent_pred, slot_pred))

    assert intent_pred.shape == (B, T, NUM_INTENT), intent_pred.shape
    assert slot_pred.shape == (B, T, NUM_SLOT), slot_pred.shape
    assert bool(jnp.all(jnp.isfinite(intent_pred)))
    assert bool(jnp.all(jnp.isfinite(slot_pred)))

    # numerical sanity check against the pure-JAX reference of the same math
    ref_intent, ref_slot = lowdim_reference(params, input_ids, att_mask, len_list)
    assert jnp.allclose(slot_pred, ref_slot, atol=1e-2, rtol=1e-2), \
        float(jnp.max(jnp.abs(slot_pred - ref_slot)))
    assert jnp.allclose(intent_pred, ref_intent, atol=1e-2, rtol=1e-2), \
        float(jnp.max(jnp.abs(intent_pred - ref_intent)))

    print("KERNEL_OK")
</pallas_src>

<mosaic_0001>
module attributes {stable_mosaic.version = 11 : i64} {
  func.func @lowdim_kernel(%arg0: memref<16x1xi32, #tpu.memory_space<vmem>>, %arg1: memref<2x8xf32, #tpu.memory_space<vmem>>, %arg2: memref<2x1xi32, #tpu.memory_space<vmem>>, %arg3: memref<64x32xf32, #tpu.memory_space<vmem>>, %arg4: memref<8x32xf32, #tpu.memory_space<vmem>>, %arg5: memref<32x32xf32, #tpu.memory_space<vmem>>, %arg6: memref<1x32xf32, #tpu.memory_space<vmem>>, %arg7: memref<32x32xf32, #tpu.memory_space<vmem>>, %arg8: memref<1x32xf32, #tpu.memory_space<vmem>>, %arg9: memref<32x32xf32, #tpu.memory_space<vmem>>, %arg10: memref<1x32xf32, #tpu.memory_space<vmem>>, %arg11: memref<32x32xf32, #tpu.memory_space<vmem>>, %arg12: memref<1x32xf32, #tpu.memory_space<vmem>>, %arg13: memref<1x32xf32, #tpu.memory_space<vmem>>, %arg14: memref<1x32xf32, #tpu.memory_space<vmem>>, %arg15: memref<32x64xf32, #tpu.memory_space<vmem>>, %arg16: memref<1x64xf32, #tpu.memory_space<vmem>>, %arg17: memref<64x32xf32, #tpu.memory_space<vmem>>, %arg18: memref<1x32xf32, #tpu.memory_space<vmem>>, %arg19: memref<1x32xf32, #tpu.memory_space<vmem>>, %arg20: memref<1x32xf32, #tpu.memory_space<vmem>>, %arg21: memref<32x128xf32, #tpu.memory_space<vmem>>, %arg22: memref<32x128xf32, #tpu.memory_space<vmem>>, %arg23: memref<1x128xf32, #tpu.memory_space<vmem>>, %arg24: memref<32x8xf32, #tpu.memory_space<vmem>>, %arg25: memref<1x8xf32, #tpu.memory_space<vmem>>, %arg26: memref<8x32xf32, #tpu.memory_space<vmem>>, %arg27: memref<8x32xf32, #tpu.memory_space<vmem>>, %arg28: memref<1x32xf32, #tpu.memory_space<vmem>>, %arg29: memref<8x8xf32, #tpu.memory_space<vmem>>, %arg30: memref<1x8xf32, #tpu.memory_space<vmem>>, %arg31: memref<2x8x8xf32, #tpu.memory_space<vmem>>, %arg32: memref<2x8x8xf32, #tpu.memory_space<vmem>>, %arg33: memref<2x8x32xf32, #tpu.memory_space<vmem>>, %arg34: memref<2x8x8xf32, #tpu.memory_space<vmem>>) attributes {dimension_semantics = [], scalar_prefetch = 0 : i64, scratch_operands = 2 : i64, tpu.core_type = #tpu.core_type<tc>} {
    %c0 = arith.constant 0 : index
    %c0_0 = arith.constant 0 : index
    %0 = vector.load %arg0[%c0, %c0_0] : memref<16x1xi32, #tpu.memory_space<vmem>>, vector<16x1xi32>
    %1 = tpu.iota {dimensions = array<i32: 1>} : vector<16x64xi32>
    %2 = vector.broadcast %0 : vector<16x1xi32> to vector<16x64xi32>
    %3 = arith.cmpi eq, %2, %1 : vector<16x64xi32>
    %4 = arith.extui %3 : vector<16x64xi1> to vector<16x64xi32>
    %5 = arith.sitofp %4 : vector<16x64xi32> to vector<16x64xf32>
    %c0_1 = arith.constant 0 : index
    %c0_2 = arith.constant 0 : index
    %6 = vector.load %arg3[%c0_1, %c0_2] : memref<64x32xf32, #tpu.memory_space<vmem>>, vector<64x32xf32>
    %cst = arith.constant dense<0.000000e+00> : vector<16x32xf32>
    %7 = tpu.matmul %5, %6, %cst {dimension_numbers = #tpu.dot_dimension_numbers<[1], [0], [0], [1], [0, 0, 1, 1], [], []>} : vector<16x64xf32>, vector<64x32xf32>, vector<16x32xf32> -> vector<16x32xf32>
    %c0_3 = arith.constant 0 : index
    %c0_4 = arith.constant 0 : index
    %8 = vector.load %arg4[%c0_3, %c0_4] : memref<8x32xf32, #tpu.memory_space<vmem>>, vector<8x32xf32>
    %9 = tpu.concatenate %8, %8 in 0 : vector<8x32xf32>, vector<8x32xf32> -> vector<16x32xf32>
    %10 = arith.addf %7, %9 : vector<16x32xf32>
    %c0_5 = arith.constant 0 : index
    %c0_6 = arith.constant 0 : index
    %11 = vector.load %arg5[%c0_5, %c0_6] : memref<32x32xf32, #tpu.memory_space<vmem>>, vector<32x32xf32>
    %cst_7 = arith.constant dense<0.000000e+00> : vector<16x32xf32>
    %12 = tpu.matmul %10, %11, %cst_7 {dimension_numbers = #tpu.dot_dimension_numbers<[1], [0], [0], [1], [0, 0, 1, 1], [], []>} : vector<16x32xf32>, vector<32x32xf32>, vector<16x32xf32> -> vector<16x32xf32>
    %c0_8 = arith.constant 0 : index
    %c0_9 = arith.constant 0 : index
    %13 = vector.load %arg6[%c0_8, %c0_9] : memref<1x32xf32, #tpu.memory_space<vmem>>, vector<1x32xf32>
    %14 = vector.broadcast %13 : vector<1x32xf32> to vector<16x32xf32>
    %15 = arith.addf %12, %14 : vector<16x32xf32>
    %c0_10 = arith.constant 0 : index
    %c0_11 = arith.constant 0 : index
    %16 = vector.load %arg7[%c0_10, %c0_11] : memref<32x32xf32, #tpu.memory_space<vmem>>, vector<32x32xf32>
    %cst_12 = arith.constant dense<0.000000e+00> : vector<16x32xf32>
    %17 = tpu.matmul %10, %16, %cst_12 {dimension_numbers = #tpu.dot_dimension_numbers<[1], [0], [0], [1], [0, 0, 1, 1], [], []>} : vector<16x32xf32>, vector<32x32xf32>, vector<16x32xf32> -> vector<16x32xf32>
    %c0_13 = arith.constant 0 : index
    %c0_14 = arith.constant 0 : index
    %18 = vector.load %arg8[%c0_13, %c0_14] : memref<1x32xf32, #tpu.memory_space<vmem>>, vector<1x32xf32>
    %19 = vector.broadcast %18 : vector<1x32xf32> to vector<16x32xf32>
    %20 = arith.addf %17, %19 : vector<16x32xf32>
    %c0_15 = arith.constant 0 : index
    %c0_16 = arith.constant 0 : index
    %21 = vector.load %arg9[%c0_15, %c0_16] : memref<32x32xf32, #tpu.memory_space<vmem>>, vector<32x32xf32>
    %cst_17 = arith.constant dense<0.000000e+00> : vector<16x32xf32>
    %22 = tpu.matmul %10, %21, %cst_17 {dimension_numbers = #tpu.dot_dimension_numbers<[1], [0], [0], [1], [0, 0, 1, 1], [], []>} : vector<16x32xf32>, vector<32x32xf32>, vector<16x32xf32> -> vector<16x32xf32>
    %c0_18 = arith.constant 0 : index
    %c0_19 = arith.constant 0 : index
    %23 = vector.load %arg10[%c0_18, %c0_19] : memref<1x32xf32, #tpu.memory_space<vmem>>, vector<1x32xf32>
    %24 = vector.broadcast %23 : vector<1x32xf32> to vector<16x32xf32>
    %25 = arith.addf %22, %24 : vector<16x32xf32>
    %26 = vector.shape_cast %15 : vector<16x32xf32> to vector<2x8x32xf32>
    %27 = vector.shape_cast %20 : vector<16x32xf32> to vector<2x8x32xf32>
    %28 = vector.shape_cast %25 : vector<16x32xf32> to vector<2x8x32xf32>
    "tpu.trace_start"() <{level = 10 : i32, message = "bqh,bkh->bqk"}> : () -> ()
    %cst_20 = arith.constant dense<0.000000e+00> : vector<2x8x8xf32>
    %29 = tpu.matmul %26, %27, %cst_20 {dimension_numbers = #tpu.dot_dimension_numbers<[2], [2], [1], [1], [0, 0, 0, 1, 1, 1], [0], [0]>} : vector<2x8x32xf32>, vector<2x8x32xf32>, vector<2x8x8xf32> -> vector<2x8x8xf32>
    "tpu.trace_stop"() : () -> ()
    %cst_21 = arith.constant 0.176776692 : f32
    %30 = vector.broadcast %cst_21 : f32 to vector<2x8x8xf32>
    %31 = arith.mulf %29, %30 : vector<2x8x8xf32>
    %c0_22 = arith.constant 0 : index
    %c0_23 = arith.constant 0 : index
    %32 = vector.load %arg1[%c0_22, %c0_23] : memref<2x8xf32, #tpu.memory_space<vmem>>, vector<2x8xf32>
    %cst_24 = arith.constant 1.000000e+00 : f32
    %33 = vector.broadcast %cst_24 : f32 to vector<2x8xf32>
    %34 = arith.subf %33, %32 : vector<2x8xf32>
    %35 = vector.shape_cast %34 : vector<2x8xf32> to vector<2x1x8xf32>
    %cst_25 = arith.constant -1.000000e+09 : f32
    %36 = vector.broadcast %cst_25 : f32 to vector<2x1x8xf32>
    %37 = arith.mulf %35, %36 : vector<2x1x8xf32>
    %38 = vector.broadcast %37 : vector<2x1x8xf32> to vector<2x8x8xf32>
    %39 = arith.addf %31, %38 : vector<2x8x8xf32>
    %cst_26 = arith.constant dense<0xFF800000> : vector<2x8xf32>
    %40 = vector.multi_reduction <maximumf>, %39, %cst_26 [2] : vector<2x8x8xf32> to vector<2x8xf32>
    %41 = vector.shape_cast %40 : vector<2x8xf32> to vector<2x8x1xf32>
    %42 = vector.broadcast %41 : vector<2x8x1xf32> to vector<2x8x8xf32>
    %43 = arith.subf %39, %42 : vector<2x8x8xf32>
    %44 = math.exp %43 : vector<2x8x8xf32>
    %cst_27 = arith.constant dense<0.000000e+00> : vector<2x8xf32>
    %45 = vector.multi_reduction <add>, %44, %cst_27 [2] : vector<2x8x8xf32> to vector<2x8xf32>
    %46 = vector.shape_cast %45 : vector<2x8xf32> to vector<2x8x1xf32>
    %47 = vector.broadcast %46 : vector<2x8x1xf32> to vector<2x8x8xf32>
    %48 = arith.divf %44, %47 : vector<2x8x8xf32>
    "tpu.trace_start"() <{level = 10 : i32, message = "bqk,bkh->bqh"}> : () -> ()
    %cst_28 = arith.constant dense<0.000000e+00> : vector<2x8x32xf32>
    %49 = tpu.matmul %48, %28, %cst_28 {dimension_numbers = #tpu.dot_dimension_numbers<[2], [1], [1], [2], [0, 0, 0, 1, 1, 2], [0], [0]>} : vector<2x8x8xf32>, vector<2x8x32xf32>, vector<2x8x32xf32> -> vector<2x8x32xf32>
    "tpu.trace_stop"() : () -> ()
    %50 = vector.shape_cast %49 : vector<2x8x32xf32> to vector<16x32xf32>
    %c0_29 = arith.constant 0 : index
    %c0_30 = arith.constant 0 : index
    %51 = vector.load %arg11[%c0_29, %c0_30] : memref<32x32xf32, #tpu.memory_space<vmem>>, vector<32x32xf32>
    %cst_31 = arith.constant dense<0.000000e+00> : vector<16x32xf32>
    %52 = tpu.matmul %50, %51, %cst_31 {dimension_numbers = #tpu.dot_dimension_numbers<[1], [0], [0], [1], [0, 0, 1, 1], [], []>} : vector<16x32xf32>, vector<32x32xf32>, vector<16x32xf32> -> vector<16x32xf32>
    %c0_32 = arith.constant 0 : index
    %c0_33 = arith.constant 0 : index
    %53 = vector.load %arg12[%c0_32, %c0_33] : memref<1x32xf32, #tpu.memory_space<vmem>>, vector<1x32xf32>
    %54 = vector.broadcast %53 : vector<1x32xf32> to vector<16x32xf32>
    %55 = arith.addf %52, %54 : vector<16x32xf32>
    %56 = arith.addf %10, %55 : vector<16x32xf32>
    %c0_34 = arith.constant 0 : index
    %c0_35 = arith.constant 0 : index
    %57 = vector.load %arg13[%c0_34, %c0_35] : memref<1x32xf32, #tpu.memory_space<vmem>>, vector<1x32xf32>
    %c0_36 = arith.constant 0 : index
    %c0_37 = arith.constant 0 : index
    %58 = vector.load %arg14[%c0_36, %c0_37] : memref<1x32xf32, #tpu.memory_space<vmem>>, vector<1x32xf32>
    %cst_38 = arith.constant dense<0.000000e+00> : vector<16xf32>
    %59 = vector.multi_reduction <add>, %56, %cst_38 [1] : vector<16x32xf32> to vector<16xf32>
    %60 = vector.shape_cast %59 : vector<16xf32> to vector<16x1xf32>
    %cst_39 = arith.constant 3.200000e+01 : f32
    %61 = vector.broadcast %cst_39 : f32 to vector<16x1xf32>
    %62 = arith.divf %60, %61 : vector<16x1xf32>
    %63 = vector.broadcast %62 : vector<16x1xf32> to vector<16x32xf32>
    %64 = arith.subf %56, %63 : vector<16x32xf32>
    %65 = arith.mulf %64, %64 : vector<16x32xf32>
    %cst_40 = arith.constant dense<0.000000e+00> : vector<16xf32>
    %66 = vector.multi_reduction <add>, %65, %cst_40 [1] : vector<16x32xf32> to vector<16xf32>
    %67 = vector.shape_cast %66 : vector<16xf32> to vector<16x1xf32>
    %cst_41 = arith.constant 3.200000e+01 : f32
    %68 = vector.broadcast %cst_41 : f32 to vector<16x1xf32>
    %69 = arith.divf %67, %68 : vector<16x1xf32>
    %70 = vector.broadcast %62 : vector<16x1xf32> to vector<16x32xf32>
    %71 = arith.subf %56, %70 : vector<16x32xf32>
    %cst_42 = arith.constant 9.99999974E-6 : f32
    %72 = vector.broadcast %cst_42 : f32 to vector<16x1xf32>
    %73 = arith.addf %69, %72 : vector<16x1xf32>
    %74 = math.rsqrt %73 : vector<16x1xf32>
    %75 = vector.broadcast %74 : vector<16x1xf32> to vector<16x32xf32>
    %76 = arith.mulf %71, %75 : vector<16x32xf32>
    %77 = vector.broadcast %57 : vector<1x32xf32> to vector<16x32xf32>
    %78 = arith.mulf %76, %77 : vector<16x32xf32>
    %79 = vector.broadcast %58 : vector<1x32xf32> to vector<16x32xf32>
    %80 = arith.addf %78, %79 : vector<16x32xf32>
    %c0_43 = arith.constant 0 : index
    %c0_44 = arith.constant 0 : index
    %81 = vector.load %arg15[%c0_43, %c0_44] : memref<32x64xf32, #tpu.memory_space<vmem>>, vector<32x64xf32>
    %cst_45 = arith.constant dense<0.000000e+00> : vector<16x64xf32>
    %82 = tpu.matmul %80, %81, %cst_45 {dimension_numbers = #tpu.dot_dimension_numbers<[1], [0], [0], [1], [0, 0, 1, 1], [], []>} : vector<16x32xf32>, vector<32x64xf32>, vector<16x64xf32> -> vector<16x64xf32>
    %c0_46 = arith.constant 0 : index
    %c0_47 = arith.constant 0 : index
    %83 = vector.load %arg16[%c0_46, %c0_47] : memref<1x64xf32, #tpu.memory_space<vmem>>, vector<1x64xf32>
    %84 = vector.broadcast %83 : vector<1x64xf32> to vector<16x64xf32>
    %85 = arith.addf %82, %84 : vector<16x64xf32>
    %86 = arith.mulf %85, %85 : vector<16x64xf32>
    %87 = arith.mulf %85, %86 : vector<16x64xf32>
    %cst_48 = arith.constant 4.471500e-02 : f32
    %88 = vector.broadcast %cst_48 : f32 to vector<16x64xf32>
    %89 = arith.mulf %88, %87 : vector<16x64xf32>
    %90 = arith.addf %85, %89 : vector<16x64xf32>
    %cst_49 = arith.constant 0.797884583 : f32
    %91 = vector.broadcast %cst_49 : f32 to vector<16x64xf32>
    %92 = arith.mulf %91, %90 : vector<16x64xf32>
    %93 = math.tanh %92 : vector<16x64xf32>
    %cst_50 = arith.constant 1.000000e+00 : f32
    %94 = vector.broadcast %cst_50 : f32 to vector<16x64xf32>
    %95 = arith.addf %94, %93 : vector<16x64xf32>
    %cst_51 = arith.constant 5.000000e-01 : f32
    %96 = vector.broadcast %cst_51 : f32 to vector<16x64xf32>
    %97 = arith.mulf %96, %95 : vector<16x64xf32>
    %98 = arith.mulf %85, %97 : vector<16x64xf32>
    %c0_52 = arith.constant 0 : index
    %c0_53 = arith.constant 0 : index
    %99 = vector.load %arg17[%c0_52, %c0_53] : memref<64x32xf32, #tpu.memory_space<vmem>>, vector<64x32xf32>
    %cst_54 = arith.constant dense<0.000000e+00> : vector<16x32xf32>
    %100 = tpu.matmul %98, %99, %cst_54 {dimension_numbers = #tpu.dot_dimension_numbers<[1], [0], [0], [1], [0, 0, 1, 1], [], []>} : vector<16x64xf32>, vector<64x32xf32>, vector<16x32xf32> -> vector<16x32xf32>
    %c0_55 = arith.constant 0 : index
    %c0_56 = arith.constant 0 : index
    %101 = vector.load %arg18[%c0_55, %c0_56] : memref<1x32xf32, #tpu.memory_space<vmem>>, vector<1x32xf32>
    %102 = vector.broadcast %101 : vector<1x32xf32> to vector<16x32xf32>
    %103 = arith.addf %100, %102 : vector<16x32xf32>
    %104 = arith.addf %80, %103 : vector<16x32xf32>
    %c0_57 = arith.constant 0 : index
    %c0_58 = arith.constant 0 : index
    %105 = vector.load %arg19[%c0_57, %c0_58] : memref<1x32xf32, #tpu.memory_space<vmem>>, vector<1x32xf32>
    %c0_59 = arith.constant 0 : index
    %c0_60 = arith.constant 0 : index
    %106 = vector.load %arg20[%c0_59, %c0_60] : memref<1x32xf32, #tpu.memory_space<vmem>>, vector<1x32xf32>
    %cst_61 = arith.constant dense<0.000000e+00> : vector<16xf32>
    %107 = vector.multi_reduction <add>, %104, %cst_61 [1] : vector<16x32xf32> to vector<16xf32>
    %108 = vector.shape_cast %107 : vector<16xf32> to vector<16x1xf32>
    %cst_62 = arith.constant 3.200000e+01 : f32
    %109 = vector.broadcast %cst_62 : f32 to vector<16x1xf32>
    %110 = arith.divf %108, %109 : vector<16x1xf32>
    %111 = vector.broadcast %110 : vector<16x1xf32> to vector<16x32xf32>
    %112 = arith.subf %104, %111 : vector<16x32xf32>
    %113 = arith.mulf %112, %112 : vector<16x32xf32>
    %cst_63 = arith.constant dense<0.000000e+00> : vector<16xf32>
    %114 = vector.multi_reduction <add>, %113, %cst_63 [1] : vector<16x32xf32> to vector<16xf32>
    %115 = vector.shape_cast %114 : vector<16xf32> to vector<16x1xf32>
    %cst_64 = arith.constant 3.200000e+01 : f32
    %116 = vector.broadcast %cst_64 : f32 to vector<16x1xf32>
    %117 = arith.divf %115, %116 : vector<16x1xf32>
    %118 = vector.broadcast %110 : vector<16x1xf32> to vector<16x32xf32>
    %119 = arith.subf %104, %118 : vector<16x32xf32>
    %cst_65 = arith.constant 9.99999974E-6 : f32
    %120 = vector.broadcast %cst_65 : f32 to vector<16x1xf32>
    %121 = arith.addf %117, %120 : vector<16x1xf32>
    %122 = math.rsqrt %121 : vector<16x1xf32>
    %123 = vector.broadcast %122 : vector<16x1xf32> to vector<16x32xf32>
    %124 = arith.mulf %119, %123 : vector<16x32xf32>
    %125 = vector.broadcast %105 : vector<1x32xf32> to vector<16x32xf32>
    %126 = arith.mulf %124, %125 : vector<16x32xf32>
    %127 = vector.broadcast %106 : vector<1x32xf32> to vector<16x32xf32>
    %128 = arith.addf %126, %127 : vector<16x32xf32>
    %c0_66 = arith.constant 0 : index
    %c0_67 = arith.constant 0 : index
    %129 = vector.load %arg2[%c0_66, %c0_67] : memref<2x1xi32, #tpu.memory_space<vmem>>, vector<2x1xi32>
    %130 = tpu.iota {dimensions = array<i32: 1>} : vector<2x8xi32>
    %131 = vector.shape_cast %129 : vector<2x1xi32> to vector<2x1xi32>
    %132 = vector.broadcast %131 : vector<2x1xi32> to vector<2x8xi32>
    %133 = arith.cmpi slt, %130, %132 : vector<2x8xi32>
    %134 = arith.extui %133 : vector<2x8xi1> to vector<2x8xi32>
    %135 = arith.sitofp %134 : vector<2x8xi32> to vector<2x8xf32>
    %c0_68 = arith.constant 0 : index
    %c0_69 = arith.constant 0 : index
    %136 = vector.load %arg21[%c0_68, %c0_69] : memref<32x128xf32, #tpu.memory_space<vmem>>, vector<32x128xf32>
    %c0_70 = arith.constant 0 : index
    %c0_71 = arith.constant 0 : index
    %137 = vector.load %arg22[%c0_70, %c0_71] : memref<32x128xf32, #tpu.memory_space<vmem>>, vector<32x128xf32>
    %c0_72 = arith.constant 0 : index
    %c0_73 = arith.constant 0 : index
    %138 = vector.load %arg23[%c0_72, %c0_73] : memref<1x128xf32, #tpu.memory_space<vmem>>, vector<1x128xf32>
    %cst_74 = arith.constant dense<0.000000e+00> : vector<16x128xf32>
    %139 = tpu.matmul %128, %136, %cst_74 {dimension_numbers = #tpu.dot_dimension_numbers<[1], [0], [0], [1], [0, 0, 1, 1], [], []>} : vector<16x32xf32>, vector<32x128xf32>, vector<16x128xf32> -> vector<16x128xf32>
    %140 = vector.broadcast %138 : vector<1x128xf32> to vector<16x128xf32>
    %141 = arith.addf %139, %140 : vector<16x128xf32>
    %142 = vector.shape_cast %141 : vector<16x128xf32> to vector<2x8x128xf32>
    %cst_75 = arith.constant 0.000000e+00 : f32
    %143 = vector.broadcast %cst_75 : f32 to vector<2x32xf32>
    %cst_76 = arith.constant 0.000000e+00 : f32
    %144 = vector.broadcast %cst_76 : f32 to vector<2x32xf32>
    %145 = vector.extract_strided_slice %142 {offsets = [0, 0, 0], sizes = [2, 1, 128], strides = [1, 1, 1]} : vector<2x8x128xf32> to vector<2x1x128xf32>
    %146 = vector.shape_cast %145 : vector<2x1x128xf32> to vector<2x128xf32>
    %cst_77 = arith.constant dense<0.000000e+00> : vector<2x128xf32>
    %147 = tpu.matmul %143, %137, %cst_77 {dimension_numbers = #tpu.dot_dimension_numbers<[1], [0], [0], [1], [0, 0, 1, 1], [], []>} : vector<2x32xf32>, vector<32x128xf32>, vector<2x128xf32> -> vector<2x128xf32>
    %148 = arith.addf %146, %147 : vector<2x128xf32>
    %149 = vector.extract_strided_slice %148 {offsets = [0, 0], sizes = [2, 32], strides = [1, 1]} : vector<2x128xf32> to vector<2x32xf32>
    %150 = arith.negf %149 : vector<2x32xf32>
    %151 = math.exp %150 : vector<2x32xf32>
    %cst_78 = arith.constant 1.000000e+00 : f32
    %152 = vector.broadcast %cst_78 : f32 to vector<2x32xf32>
    %153 = arith.addf %152, %151 : vector<2x32xf32>
    %154 = arith.divf %152, %153 : vector<2x32xf32>
    %155 = vector.extract_strided_slice %148 {offsets = [0, 32], sizes = [2, 32], strides = [1, 1]} : vector<2x128xf32> to vector<2x32xf32>
    %156 = arith.negf %155 : vector<2x32xf32>
    %157 = math.exp %156 : vector<2x32xf32>
    %cst_79 = arith.constant 1.000000e+00 : f32
    %158 = vector.broadcast %cst_79 : f32 to vector<2x32xf32>
    %159 = arith.addf %158, %157 : vector<2x32xf32>
    %160 = arith.divf %158, %159 : vector<2x32xf32>
    %161 = vector.extract_strided_slice %148 {offsets = [0, 64], sizes = [2, 32], strides = [1, 1]} : vector<2x128xf32> to vector<2x32xf32>
    %162 = math.tanh %161 : vector<2x32xf32>
    %163 = vector.extract_strided_slice %148 {offsets = [0, 96], sizes = [2, 32], strides = [1, 1]} : vector<2x128xf32> to vector<2x32xf32>
    %164 = arith.negf %163 : vector<2x32xf32>
    %165 = math.exp %164 : vector<2x32xf32>
    %cst_80 = arith.constant 1.000000e+00 : f32
    %166 = vector.broadcast %cst_80 : f32 to vector<2x32xf32>
    %167 = arith.addf %166, %165 : vector<2x32xf32>
    %168 = arith.divf %166, %167 : vector<2x32xf32>
    %169 = arith.mulf %160, %144 : vector<2x32xf32>
    %170 = arith.mulf %154, %162 : vector<2x32xf32>
    %171 = arith.addf %169, %170 : vector<2x32xf32>
    %172 = math.tanh %171 : vector<2x32xf32>
    %173 = arith.mulf %168, %172 : vector<2x32xf32>
    %174 = vector.extract_strided_slice %135 {offsets = [0, 0], sizes = [2, 1], strides = [1, 1]} : vector<2x8xf32> to vector<2x1xf32>
    %175 = vector.broadcast %174 : vector<2x1xf32> to vector<2x32xf32>
    %176 = arith.mulf %175, %171 : vector<2x32xf32>
    %cst_81 = arith.constant 1.000000e+00 : f32
    %177 = vector.broadcast %cst_81 : f32 to vector<2x1xf32>
    %178 = arith.subf %177, %174 : vector<2x1xf32>
    %179 = vector.broadcast %178 : vector<2x1xf32> to vector<2x32xf32>
    %180 = arith.mulf %179, %144 : vector<2x32xf32>
    %181 = arith.addf %176, %180 : vector<2x32xf32>
    %182 = vector.broadcast %174 : vector<2x1xf32> to vector<2x32xf32>
    %183 = arith.mulf %182, %173 : vector<2x32xf32>
    %cst_82 = arith.constant 1.000000e+00 : f32
    %184 = vector.broadcast %cst_82 : f32 to vector<2x1xf32>
    %185 = arith.subf %184, %174 : vector<2x1xf32>
    %186 = vector.broadcast %185 : vector<2x1xf32> to vector<2x32xf32>
    %187 = arith.mulf %186, %143 : vector<2x32xf32>
    %188 = arith.addf %183, %187 : vector<2x32xf32>
    %c0_83 = arith.constant 0 : index
    %c0_84 = arith.constant 0 : index
    %c0_85 = arith.constant 0 : index
    %189 = vector.load %arg33[%c0_83, %c0_84, %c0_85] : memref<2x8x32xf32, #tpu.memory_space<vmem>>, vector<2x1x32xf32>
    %190 = vector.shape_cast %189 : vector<2x1x32xf32> to vector<2x32xf32>
    %191 = vector.shape_cast %188 : vector<2x32xf32> to vector<2x1x32xf32>
    tpu.vector_store %arg33[%c0_83, %c0_84, %c0_85], %191 {strides = array<i32>} : memref<2x8x32xf32, #tpu.memory_space<vmem>>, vector<2x1x32xf32>,
    %192 = vector.extract_strided_slice %142 {offsets = [0, 1, 0], sizes = [2, 1, 128], strides = [1, 1, 1]} : vector<2x8x128xf32> to vector<2x1x128xf32>
    %193 = vector.shape_cast %192 : vector<2x1x128xf32> to vector<2x128xf32>
    %cst_86 = arith.constant dense<0.000000e+00> : vector<2x128xf32>
    %194 = tpu.matmul %188, %137, %cst_86 {dimension_numbers = #tpu.dot_dimension_numbers<[1], [0], [0], [1], [0, 0, 1, 1], [], []>} : vector<2x32xf32>, vector<32x128xf32>, vector<2x128xf32> -> vector<2x128xf32>
    %195 = arith.addf %193, %194 : vector<2x128xf32>
    %196 = vector.extract_strided_slice %195 {offsets = [0, 0], sizes = [2, 32], strides = [1, 1]} : vector<2x128xf32> to vector<2x32xf32>
    %197 = arith.negf %196 : vector<2x32xf32>
    %198 = math.exp %197 : vector<2x32xf32>
    %cst_87 = arith.constant 1.000000e+00 : f32
    %199 = vector.broadcast %cst_87 : f32 to vector<2x32xf32>
    %200 = arith.addf %199, %198 : vector<2x32xf32>
    %201 = arith.divf %199, %200 : vector<2x32xf32>
    %202 = vector.extract_strided_slice %195 {offsets = [0, 32], sizes = [2, 32], strides = [1, 1]} : vector<2x128xf32> to vector<2x32xf32>
    %203 = arith.negf %202 : vector<2x32xf32>
    %204 = math.exp %203 : vector<2x32xf32>
    %cst_88 = arith.constant 1.000000e+00 : f32
    %205 = vector.broadcast %cst_88 : f32 to vector<2x32xf32>
    %206 = arith.addf %205, %204 : vector<2x32xf32>
    %207 = arith.divf %205, %206 : vector<2x32xf32>
    %208 = vector.extract_strided_slice %195 {offsets = [0, 64], sizes = [2, 32], strides = [1, 1]} : vector<2x128xf32> to vector<2x32xf32>
    %209 = math.tanh %208 : vector<2x32xf32>
    %210 = vector.extract_strided_slice %195 {offsets = [0, 96], sizes = [2, 32], strides = [1, 1]} : vector<2x128xf32> to vector<2x32xf32>
    %211 = arith.negf %210 : vector<2x32xf32>
    %212 = math.exp %211 : vector<2x32xf32>
    %cst_89 = arith.constant 1.000000e+00 : f32
    %213 = vector.broadcast %cst_89 : f32 to vector<2x32xf32>
    %214 = arith.addf %213, %212 : vector<2x32xf32>
    %215 = arith.divf %213, %214 : vector<2x32xf32>
    %216 = arith.mulf %207, %181 : vector<2x32xf32>
    %217 = arith.mulf %201, %209 : vector<2x32xf32>
    %218 = arith.addf %216, %217 : vector<2x32xf32>
    %219 = math.tanh %218 : vector<2x32xf32>
    %220 = arith.mulf %215, %219 : vector<2x32xf32>
    %221 = vector.extract_strided_slice %135 {offsets = [0, 1], sizes = [2, 1], strides = [1, 1]} : vector<2x8xf32> to vector<2x1xf32>
    %222 = vector.broadcast %221 : vector<2x1xf32> to vector<2x32xf32>
    %223 = arith.mulf %222, %218 : vector<2x32xf32>
    %cst_90 = arith.constant 1.000000e+00 : f32
    %224 = vector.broadcast %cst_90 : f32 to vector<2x1xf32>
    %225 = arith.subf %224, %221 : vector<2x1xf32>
    %226 = vector.broadcast %225 : vector<2x1xf32> to vector<2x32xf32>
    %227 = arith.mulf %226, %181 : vector<2x32xf32>
    %228 = arith.addf %223, %227 : vector<2x32xf32>
    %229 = vector.broadcast %221 : vector<2x1xf32> to vector<2x32xf32>
    %230 = arith.mulf %229, %220 : vector<2x32xf32>
    %cst_91 = arith.constant 1.000000e+00 : f32
    %231 = vector.broadcast %cst_91 : f32 to vector<2x1xf32>
    %232 = arith.subf %231, %221 : vector<2x1xf32>
    %233 = vector.broadcast %232 : vector<2x1xf32> to vector<2x32xf32>
    %234 = arith.mulf %233, %188 : vector<2x32xf32>
    %235 = arith.addf %230, %234 : vector<2x32xf32>
    %c0_92 = arith.constant 0 : index
    %c1 = arith.constant 1 : index
    %c0_93 = arith.constant 0 : index
    %236 = vector.load %arg33[%c0_92, %c1, %c0_93] : memref<2x8x32xf32, #tpu.memory_space<vmem>>, vector<2x1x32xf32>
    %237 = vector.shape_cast %236 : vector<2x1x32xf32> to vector<2x32xf32>
    %238 = vector.shape_cast %235 : vector<2x32xf32> to vector<2x1x32xf32>
    tpu.vector_store %arg33[%c0_92, %c1, %c0_93], %238 {strides = array<i32>} : memref<2x8x32xf32, #tpu.memory_space<vmem>>, vector<2x1x32xf32>,
    %239 = vector.extract_strided_slice %142 {offsets = [0, 2, 0], sizes = [2, 1, 128], strides = [1, 1, 1]} : vector<2x8x128xf32> to vector<2x1x128xf32>
    %240 = vector.shape_cast %239 : vector<2x1x128xf32> to vector<2x128xf32>
    %cst_94 = arith.constant dense<0.000000e+00> : vector<2x128xf32>
    %241 = tpu.matmul %235, %137, %cst_94 {dimension_numbers = #tpu.dot_dimension_numbers<[1], [0], [0], [1], [0, 0, 1, 1], [], []>} : vector<2x32xf32>, vector<32x128xf32>, vector<2x128xf32> -> vector<2x128xf32>
    %242 = arith.addf %240, %241 : vector<2x128xf32>
    %243 = vector.extract_strided_slice %242 {offsets = [0, 0], sizes = [2, 32], strides = [1, 1]} : vector<2x128xf32> to vector<2x32xf32>
    %244 = arith.negf %243 : vector<2x32xf32>
    %245 = math.exp %244 : vector<2x32xf32>
    %cst_95 = arith.constant 1.000000e+00 : f32
    %246 = vector.broadcast %cst_95 : f32 to vector<2x32xf32>
    %247 = arith.addf %246, %245 : vector<2x32xf32>
    %248 = arith.divf %246, %247 : vector<2x32xf32>
    %249 = vector.extract_strided_slice %242 {offsets = [0, 32], sizes = [2, 32], strides = [1, 1]} : vector<2x128xf32> to vector<2x32xf32>
    %250 = arith.negf %249 : vector<2x32xf32>
    %251 = math.exp %250 : vector<2x32xf32>
    %cst_96 = arith.constant 1.000000e+00 : f32
    %252 = vector.broadcast %cst_96 : f32 to vector<2x32xf32>
    %253 = arith.addf %252, %251 : vector<2x32xf32>
    %254 = arith.divf %252, %253 : vector<2x32xf32>
    %255 = vector.extract_strided_slice %242 {offsets = [0, 64], sizes = [2, 32], strides = [1, 1]} : vector<2x128xf32> to vector<2x32xf32>
    %256 = math.tanh %255 : vector<2x32xf32>
    %257 = vector.extract_strided_slice %242 {offsets = [0, 96], sizes = [2, 32], strides = [1, 1]} : vector<2x128xf32> to vector<2x32xf32>
    %258 = arith.negf %257 : vector<2x32xf32>
    %259 = math.exp %258 : vector<2x32xf32>
    %cst_97 = arith.constant 1.000000e+00 : f32
    %260 = vector.broadcast %cst_97 : f32 to vector<2x32xf32>
    %261 = arith.addf %260, %259 : vector<2x32xf32>
    %262 = arith.divf %260, %261 : vector<2x32xf32>
    %263 = arith.mulf %254, %228 : vector<2x32xf32>
    %264 = arith.mulf %248, %256 : vector<2x32xf32>
    %265 = arith.addf %263, %264 : vector<2x32xf32>
    %266 = math.tanh %265 : vector<2x32xf32>
    %267 = arith.mulf %262, %266 : vector<2x32xf32>
    %268 = vector.extract_strided_slice %135 {offsets = [0, 2], sizes = [2, 1], strides = [1, 1]} : vector<2x8xf32> to vector<2x1xf32>
    %269 = vector.broadcast %268 : vector<2x1xf32> to vector<2x32xf32>
    %270 = arith.mulf %269, %265 : vector<2x32xf32>
    %cst_98 = arith.constant 1.000000e+00 : f32
    %271 = vector.broadcast %cst_98 : f32 to vector<2x1xf32>
    %272 = arith.subf %271, %268 : vector<2x1xf32>
    %273 = vector.broadcast %272 : vector<2x1xf32> to vector<2x32xf32>
    %274 = arith.mulf %273, %228 : vector<2x32xf32>
    %275 = arith.addf %270, %274 : vector<2x32xf32>
    %276 = vector.broadcast %268 : vector<2x1xf32> to vector<2x32xf32>
    %277 = arith.mulf %276, %267 : vector<2x32xf32>
    %cst_99 = arith.constant 1.000000e+00 : f32
    %278 = vector.broadcast %cst_99 : f32 to vector<2x1xf32>
    %279 = arith.subf %278, %268 : vector<2x1xf32>
    %280 = vector.broadcast %279 : vector<2x1xf32> to vector<2x32xf32>
    %281 = arith.mulf %280, %235 : vector<2x32xf32>
    %282 = arith.addf %277, %281 : vector<2x32xf32>
    %c0_100 = arith.constant 0 : index
    %c2 = arith.constant 2 : index
    %c0_101 = arith.constant 0 : index
    %283 = vector.load %arg33[%c0_100, %c2, %c0_101] : memref<2x8x32xf32, #tpu.memory_space<vmem>>, vector<2x1x32xf32>
    %284 = vector.shape_cast %283 : vector<2x1x32xf32> to vector<2x32xf32>
    %285 = vector.shape_cast %282 : vector<2x32xf32> to vector<2x1x32xf32>
    tpu.vector_store %arg33[%c0_100, %c2, %c0_101], %285 {strides = array<i32>} : memref<2x8x32xf32, #tpu.memory_space<vmem>>, vector<2x1x32xf32>,
    %286 = vector.extract_strided_slice %142 {offsets = [0, 3, 0], sizes = [2, 1, 128], strides = [1, 1, 1]} : vector<2x8x128xf32> to vector<2x1x128xf32>
    %287 = vector.shape_cast %286 : vector<2x1x128xf32> to vector<2x128xf32>
    %cst_102 = arith.constant dense<0.000000e+00> : vector<2x128xf32>
    %288 = tpu.matmul %282, %137, %cst_102 {dimension_numbers = #tpu.dot_dimension_numbers<[1], [0], [0], [1], [0, 0, 1, 1], [], []>} : vector<2x32xf32>, vector<32x128xf32>, vector<2x128xf32> -> vector<2x128xf32>
    %289 = arith.addf %287, %288 : vector<2x128xf32>
    %290 = vector.extract_strided_slice %289 {offsets = [0, 0], sizes = [2, 32], strides = [1, 1]} : vector<2x128xf32> to vector<2x32xf32>
    %291 = arith.negf %290 : vector<2x32xf32>
    %292 = math.exp %291 : vector<2x32xf32>
    %cst_103 = arith.constant 1.000000e+00 : f32
    %293 = vector.broadcast %cst_103 : f32 to vector<2x32xf32>
    %294 = arith.addf %293, %292 : vector<2x32xf32>
    %295 = arith.divf %293, %294 : vector<2x32xf32>
    %296 = vector.extract_strided_slice %289 {offsets = [0, 32], sizes = [2, 32], strides = [1, 1]} : vector<2x128xf32> to vector<2x32xf32>
    %297 = arith.negf %296 : vector<2x32xf32>
    %298 = math.exp %297 : vector<2x32xf32>
    %cst_104 = arith.constant 1.000000e+00 : f32
    %299 = vector.broadcast %cst_104 : f32 to vector<2x32xf32>
    %300 = arith.addf %299, %298 : vector<2x32xf32>
    %301 = arith.divf %299, %300 : vector<2x32xf32>
    %302 = vector.extract_strided_slice %289 {offsets = [0, 64], sizes = [2, 32], strides = [1, 1]} : vector<2x128xf32> to vector<2x32xf32>
    %303 = math.tanh %302 : vector<2x32xf32>
    %304 = vector.extract_strided_slice %289 {offsets = [0, 96], sizes = [2, 32], strides = [1, 1]} : vector<2x128xf32> to vector<2x32xf32>
    %305 = arith.negf %304 : vector<2x32xf32>
    %306 = math.exp %305 : vector<2x32xf32>
    %cst_105 = arith.constant 1.000000e+00 : f32
    %307 = vector.broadcast %cst_105 : f32 to vector<2x32xf32>
    %308 = arith.addf %307, %306 : vector<2x32xf32>
    %309 = arith.divf %307, %308 : vector<2x32xf32>
    %310 = arith.mulf %301, %275 : vector<2x32xf32>
    %311 = arith.mulf %295, %303 : vector<2x32xf32>
    %312 = arith.addf %310, %311 : vector<2x32xf32>
    %313 = math.tanh %312 : vector<2x32xf32>
    %314 = arith.mulf %309, %313 : vector<2x32xf32>
    %315 = vector.extract_strided_slice %135 {offsets = [0, 3], sizes = [2, 1], strides = [1, 1]} : vector<2x8xf32> to vector<2x1xf32>
    %316 = vector.broadcast %315 : vector<2x1xf32> to vector<2x32xf32>
    %317 = arith.mulf %316, %312 : vector<2x32xf32>
    %cst_106 = arith.constant 1.000000e+00 : f32
    %318 = vector.broadcast %cst_106 : f32 to vector<2x1xf32>
    %319 = arith.subf %318, %315 : vector<2x1xf32>
    %320 = vector.broadcast %319 : vector<2x1xf32> to vector<2x32xf32>
    %321 = arith.mulf %320, %275 : vector<2x32xf32>
    %322 = arith.addf %317, %321 : vector<2x32xf32>
    %323 = vector.broadcast %315 : vector<2x1xf32> to vector<2x32xf32>
    %324 = arith.mulf %323, %314 : vector<2x32xf32>
    %cst_107 = arith.constant 1.000000e+00 : f32
    %325 = vector.broadcast %cst_107 : f32 to vector<2x1xf32>
    %326 = arith.subf %325, %315 : vector<2x1xf32>
    %327 = vector.broadcast %326 : vector<2x1xf32> to vector<2x32xf32>
    %328 = arith.mulf %327, %282 : vector<2x32xf32>
    %329 = arith.addf %324, %328 : vector<2x32xf32>
    %c0_108 = arith.constant 0 : index
    %c3 = arith.constant 3 : index
    %c0_109 = arith.constant 0 : index
    %330 = vector.load %arg33[%c0_108, %c3, %c0_109] : memref<2x8x32xf32, #tpu.memory_space<vmem>>, vector<2x1x32xf32>
    %331 = vector.shape_cast %330 : vector<2x1x32xf32> to vector<2x32xf32>
    %332 = vector.shape_cast %329 : vector<2x32xf32> to vector<2x1x32xf32>
    tpu.vector_store %arg33[%c0_108, %c3, %c0_109], %332 {strides = array<i32>} : memref<2x8x32xf32, #tpu.memory_space<vmem>>, vector<2x1x32xf32>,
    %333 = vector.extract_strided_slice %142 {offsets = [0, 4, 0], sizes = [2, 1, 128], strides = [1, 1, 1]} : vector<2x8x128xf32> to vector<2x1x128xf32>
    %334 = vector.shape_cast %333 : vector<2x1x128xf32> to vector<2x128xf32>
    %cst_110 = arith.constant dense<0.000000e+00> : vector<2x128xf32>
    %335 = tpu.matmul %329, %137, %cst_110 {dimension_numbers = #tpu.dot_dimension_numbers<[1], [0], [0], [1], [0, 0, 1, 1], [], []>} : vector<2x32xf32>, vector<32x128xf32>, vector<2x128xf32> -> vector<2x128xf32>
    %336 = arith.addf %334, %335 : vector<2x128xf32>
    %337 = vector.extract_strided_slice %336 {offsets = [0, 0], sizes = [2, 32], strides = [1, 1]} : vector<2x128xf32> to vector<2x32xf32>
    %338 = arith.negf %337 : vector<2x32xf32>
    %339 = math.exp %338 : vector<2x32xf32>
    %cst_111 = arith.constant 1.000000e+00 : f32
    %340 = vector.broadcast %cst_111 : f32 to vector<2x32xf32>
    %341 = arith.addf %340, %339 : vector<2x32xf32>
    %342 = arith.divf %340, %341 : vector<2x32xf32>
    %343 = vector.extract_strided_slice %336 {offsets = [0, 32], sizes = [2, 32], strides = [1, 1]} : vector<2x128xf32> to vector<2x32xf32>
    %344 = arith.negf %343 : vector<2x32xf32>
    %345 = math.exp %344 : vector<2x32xf32>
    %cst_112 = arith.constant 1.000000e+00 : f32
    %346 = vector.broadcast %cst_112 : f32 to vector<2x32xf32>
    %347 = arith.addf %346, %345 : vector<2x32xf32>
    %348 = arith.divf %346, %347 : vector<2x32xf32>
    %349 = vector.extract_strided_slice %336 {offsets = [0, 64], sizes = [2, 32], strides = [1, 1]} : vector<2x128xf32> to vector<2x32xf32>
    %350 = math.tanh %349 : vector<2x32xf32>
    %351 = vector.extract_strided_slice %336 {offsets = [0, 96], sizes = [2, 32], strides = [1, 1]} : vector<2x128xf32> to vector<2x32xf32>
    %352 = arith.negf %351 : vector<2x32xf32>
    %353 = math.exp %352 : vector<2x32xf32>
    %cst_113 = arith.constant 1.000000e+00 : f32
    %354 = vector.broadcast %cst_113 : f32 to vector<2x32xf32>
    %355 = arith.addf %354, %353 : vector<2x32xf32>
    %356 = arith.divf %354, %355 : vector<2x32xf32>
    %357 = arith.mulf %348, %322 : vector<2x32xf32>
    %358 = arith.mulf %342, %350 : vector<2x32xf32>
    %359 = arith.addf %357, %358 : vector<2x32xf32>
    %360 = math.tanh %359 : vector<2x32xf32>
    %361 = arith.mulf %356, %360 : vector<2x32xf32>
    %362 = vector.extract_strided_slice %135 {offsets = [0, 4], sizes = [2, 1], strides = [1, 1]} : vector<2x8xf32> to vector<2x1xf32>
    %363 = vector.broadcast %362 : vector<2x1xf32> to vector<2x32xf32>
    %364 = arith.mulf %363, %359 : vector<2x32xf32>
    %cst_114 = arith.constant 1.000000e+00 : f32
    %365 = vector.broadcast %cst_114 : f32 to vector<2x1xf32>
    %366 = arith.subf %365, %362 : vector<2x1xf32>
    %367 = vector.broadcast %366 : vector<2x1xf32> to vector<2x32xf32>
    %368 = arith.mulf %367, %322 : vector<2x32xf32>
    %369 = arith.addf %364, %368 : vector<2x32xf32>
    %370 = vector.broadcast %362 : vector<2x1xf32> to vector<2x32xf32>
    %371 = arith.mulf %370, %361 : vector<2x32xf32>
    %cst_115 = arith.constant 1.000000e+00 : f32
    %372 = vector.broadcast %cst_115 : f32 to vector<2x1xf32>
    %373 = arith.subf %372, %362 : vector<2x1xf32>
    %374 = vector.broadcast %373 : vector<2x1xf32> to vector<2x32xf32>
    %375 = arith.mulf %374, %329 : vector<2x32xf32>
    %376 = arith.addf %371, %375 : vector<2x32xf32>
    %c0_116 = arith.constant 0 : index
    %c4 = arith.constant 4 : index
    %c0_117 = arith.constant 0 : index
    %377 = vector.load %arg33[%c0_116, %c4, %c0_117] : memref<2x8x32xf32, #tpu.memory_space<vmem>>, vector<2x1x32xf32>
    %378 = vector.shape_cast %377 : vector<2x1x32xf32> to vector<2x32xf32>
    %379 = vector.shape_cast %376 : vector<2x32xf32> to vector<2x1x32xf32>
    tpu.vector_store %arg33[%c0_116, %c4, %c0_117], %379 {strides = array<i32>} : memref<2x8x32xf32, #tpu.memory_space<vmem>>, vector<2x1x32xf32>,
    %380 = vector.extract_strided_slice %142 {offsets = [0, 5, 0], sizes = [2, 1, 128], strides = [1, 1, 1]} : vector<2x8x128xf32> to vector<2x1x128xf32>
    %381 = vector.shape_cast %380 : vector<2x1x128xf32> to vector<2x128xf32>
    %cst_118 = arith.constant dense<0.000000e+00> : vector<2x128xf32>
    %382 = tpu.matmul %376, %137, %cst_118 {dimension_numbers = #tpu.dot_dimension_numbers<[1], [0], [0], [1], [0, 0, 1, 1], [], []>} : vector<2x32xf32>, vector<32x128xf32>, vector<2x128xf32> -> vector<2x128xf32>
    %383 = arith.addf %381, %382 : vector<2x128xf32>
    %384 = vector.extract_strided_slice %383 {offsets = [0, 0], sizes = [2, 32], strides = [1, 1]} : vector<2x128xf32> to vector<2x32xf32>
    %385 = arith.negf %384 : vector<2x32xf32>
    %386 = math.exp %385 : vector<2x32xf32>
    %cst_119 = arith.constant 1.000000e+00 : f32
    %387 = vector.broadcast %cst_119 : f32 to vector<2x32xf32>
    %388 = arith.addf %387, %386 : vector<2x32xf32>
    %389 = arith.divf %387, %388 : vector<2x32xf32>
    %390 = vector.extract_strided_slice %383 {offsets = [0, 32], sizes = [2, 32], strides = [1, 1]} : vector<2x128xf32> to vector<2x32xf32>
    %391 = arith.negf %390 : vector<2x32xf32>
    %392 = math.exp %391 : vector<2x32xf32>
    %cst_120 = arith.constant 1.000000e+00 : f32
    %393 = vector.broadcast %cst_120 : f32 to vector<2x32xf32>
    %394 = arith.addf %393, %392 : vector<2x32xf32>
    %395 = arith.divf %393, %394 : vector<2x32xf32>
    %396 = vector.extract_strided_slice %383 {offsets = [0, 64], sizes = [2, 32], strides = [1, 1]} : vector<2x128xf32> to vector<2x32xf32>
    %397 = math.tanh %396 : vector<2x32xf32>
    %398 = vector.extract_strided_slice %383 {offsets = [0, 96], sizes = [2, 32], strides = [1, 1]} : vector<2x128xf32> to vector<2x32xf32>
    %399 = arith.negf %398 : vector<2x32xf32>
    %400 = math.exp %399 : vector<2x32xf32>
    %cst_121 = arith.constant 1.000000e+00 : f32
    %401 = vector.broadcast %cst_121 : f32 to vector<2x32xf32>
    %402 = arith.addf %401, %400 : vector<2x32xf32>
    %403 = arith.divf %401, %402 : vector<2x32xf32>
    %404 = arith.mulf %395, %369 : vector<2x32xf32>
    %405 = arith.mulf %389, %397 : vector<2x32xf32>
    %406 = arith.addf %404, %405 : vector<2x32xf32>
    %407 = math.tanh %406 : vector<2x32xf32>
    %408 = arith.mulf %403, %407 : vector<2x32xf32>
    %409 = vector.extract_strided_slice %135 {offsets = [0, 5], sizes = [2, 1], strides = [1, 1]} : vector<2x8xf32> to vector<2x1xf32>
    %410 = vector.broadcast %409 : vector<2x1xf32> to vector<2x32xf32>
    %411 = arith.mulf %410, %406 : vector<2x32xf32>
    %cst_122 = arith.constant 1.000000e+00 : f32
    %412 = vector.broadcast %cst_122 : f32 to vector<2x1xf32>
    %413 = arith.subf %412, %409 : vector<2x1xf32>
    %414 = vector.broadcast %413 : vector<2x1xf32> to vector<2x32xf32>
    %415 = arith.mulf %414, %369 : vector<2x32xf32>
    %416 = arith.addf %411, %415 : vector<2x32xf32>
    %417 = vector.broadcast %409 : vector<2x1xf32> to vector<2x32xf32>
    %418 = arith.mulf %417, %408 : vector<2x32xf32>
    %cst_123 = arith.constant 1.000000e+00 : f32
    %419 = vector.broadcast %cst_123 : f32 to vector<2x1xf32>
    %420 = arith.subf %419, %409 : vector<2x1xf32>
    %421 = vector.broadcast %420 : vector<2x1xf32> to vector<2x32xf32>
    %422 = arith.mulf %421, %376 : vector<2x32xf32>
    %423 = arith.addf %418, %422 : vector<2x32xf32>
    %c0_124 = arith.constant 0 : index
    %c5 = arith.constant 5 : index
    %c0_125 = arith.constant 0 : index
    %424 = vector.load %arg33[%c0_124, %c5, %c0_125] : memref<2x8x32xf32, #tpu.memory_space<vmem>>, vector<2x1x32xf32>
    %425 = vector.shape_cast %424 : vector<2x1x32xf32> to vector<2x32xf32>
    %426 = vector.shape_cast %423 : vector<2x32xf32> to vector<2x1x32xf32>
    tpu.vector_store %arg33[%c0_124, %c5, %c0_125], %426 {strides = array<i32>} : memref<2x8x32xf32, #tpu.memory_space<vmem>>, vector<2x1x32xf32>,
    %427 = vector.extract_strided_slice %142 {offsets = [0, 6, 0], sizes = [2, 1, 128], strides = [1, 1, 1]} : vector<2x8x128xf32> to vector<2x1x128xf32>
    %428 = vector.shape_cast %427 : vector<2x1x128xf32> to vector<2x128xf32>
    %cst_126 = arith.constant dense<0.000000e+00> : vector<2x128xf32>
    %429 = tpu.matmul %423, %137, %cst_126 {dimension_numbers = #tpu.dot_dimension_numbers<[1], [0], [0], [1], [0, 0, 1, 1], [], []>} : vector<2x32xf32>, vector<32x128xf32>, vector<2x128xf32> -> vector<2x128xf32>
    %430 = arith.addf %428, %429 : vector<2x128xf32>
    %431 = vector.extract_strided_slice %430 {offsets = [0, 0], sizes = [2, 32], strides = [1, 1]} : vector<2x128xf32> to vector<2x32xf32>
    %432 = arith.negf %431 : vector<2x32xf32>
    %433 = math.exp %432 : vector<2x32xf32>
    %cst_127 = arith.constant 1.000000e+00 : f32
    %434 = vector.broadcast %cst_127 : f32 to vector<2x32xf32>
    %435 = arith.addf %434, %433 : vector<2x32xf32>
    %436 = arith.divf %434, %435 : vector<2x32xf32>
    %437 = vector.extract_strided_slice %430 {offsets = [0, 32], sizes = [2, 32], strides = [1, 1]} : vector<2x128xf32> to vector<2x32xf32>
    %438 = arith.negf %437 : vector<2x32xf32>
    %439 = math.exp %438 : vector<2x32xf32>
    %cst_128 = arith.constant 1.000000e+00 : f32
    %440 = vector.broadcast %cst_128 : f32 to vector<2x32xf32>
    %441 = arith.addf %440, %439 : vector<2x32xf32>
    %442 = arith.divf %440, %441 : vector<2x32xf32>
    %443 = vector.extract_strided_slice %430 {offsets = [0, 64], sizes = [2, 32], strides = [1, 1]} : vector<2x128xf32> to vector<2x32xf32>
    %444 = math.tanh %443 : vector<2x32xf32>
    %445 = vector.extract_strided_slice %430 {offsets = [0, 96], sizes = [2, 32], strides = [1, 1]} : vector<2x128xf32> to vector<2x32xf32>
    %446 = arith.negf %445 : vector<2x32xf32>
    %447 = math.exp %446 : vector<2x32xf32>
    %cst_129 = arith.constant 1.000000e+00 : f32
    %448 = vector.broadcast %cst_129 : f32 to vector<2x32xf32>
    %449 = arith.addf %448, %447 : vector<2x32xf32>
    %450 = arith.divf %448, %449 : vector<2x32xf32>
    %451 = arith.mulf %442, %416 : vector<2x32xf32>
    %452 = arith.mulf %436, %444 : vector<2x32xf32>
    %453 = arith.addf %451, %452 : vector<2x32xf32>
    %454 = math.tanh %453 : vector<2x32xf32>
    %455 = arith.mulf %450, %454 : vector<2x32xf32>
    %456 = vector.extract_strided_slice %135 {offsets = [0, 6], sizes = [2, 1], strides = [1, 1]} : vector<2x8xf32> to vector<2x1xf32>
    %457 = vector.broadcast %456 : vector<2x1xf32> to vector<2x32xf32>
    %458 = arith.mulf %457, %453 : vector<2x32xf32>
    %cst_130 = arith.constant 1.000000e+00 : f32
    %459 = vector.broadcast %cst_130 : f32 to vector<2x1xf32>
    %460 = arith.subf %459, %456 : vector<2x1xf32>
    %461 = vector.broadcast %460 : vector<2x1xf32> to vector<2x32xf32>
    %462 = arith.mulf %461, %416 : vector<2x32xf32>
    %463 = arith.addf %458, %462 : vector<2x32xf32>
    %464 = vector.broadcast %456 : vector<2x1xf32> to vector<2x32xf32>
    %465 = arith.mulf %464, %455 : vector<2x32xf32>
    %cst_131 = arith.constant 1.000000e+00 : f32
    %466 = vector.broadcast %cst_131 : f32 to vector<2x1xf32>
    %467 = arith.subf %466, %456 : vector<2x1xf32>
    %468 = vector.broadcast %467 : vector<2x1xf32> to vector<2x32xf32>
    %469 = arith.mulf %468, %423 : vector<2x32xf32>
    %470 = arith.addf %465, %469 : vector<2x32xf32>
    %c0_132 = arith.constant 0 : index
    %c6 = arith.constant 6 : index
    %c0_133 = arith.constant 0 : index
    %471 = vector.load %arg33[%c0_132, %c6, %c0_133] : memref<2x8x32xf32, #tpu.memory_space<vmem>>, vector<2x1x32xf32>
    %472 = vector.shape_cast %471 : vector<2x1x32xf32> to vector<2x32xf32>
    %473 = vector.shape_cast %470 : vector<2x32xf32> to vector<2x1x32xf32>
    tpu.vector_store %arg33[%c0_132, %c6, %c0_133], %473 {strides = array<i32>} : memref<2x8x32xf32, #tpu.memory_space<vmem>>, vector<2x1x32xf32>,
    %474 = vector.extract_strided_slice %142 {offsets = [0, 7, 0], sizes = [2, 1, 128], strides = [1, 1, 1]} : vector<2x8x128xf32> to vector<2x1x128xf32>
    %475 = vector.shape_cast %474 : vector<2x1x128xf32> to vector<2x128xf32>
    %cst_134 = arith.constant dense<0.000000e+00> : vector<2x128xf32>
    %476 = tpu.matmul %470, %137, %cst_134 {dimension_numbers = #tpu.dot_dimension_numbers<[1], [0], [0], [1], [0, 0, 1, 1], [], []>} : vector<2x32xf32>, vector<32x128xf32>, vector<2x128xf32> -> vector<2x128xf32>
    %477 = arith.addf %475, %476 : vector<2x128xf32>
    %478 = vector.extract_strided_slice %477 {offsets = [0, 0], sizes = [2, 32], strides = [1, 1]} : vector<2x128xf32> to vector<2x32xf32>
    %479 = arith.negf %478 : vector<2x32xf32>
    %480 = math.exp %479 : vector<2x32xf32>
    %cst_135 = arith.constant 1.000000e+00 : f32
    %481 = vector.broadcast %cst_135 : f32 to vector<2x32xf32>
    %482 = arith.addf %481, %480 : vector<2x32xf32>
    %483 = arith.divf %481, %482 : vector<2x32xf32>
    %484 = vector.extract_strided_slice %477 {offsets = [0, 32], sizes = [2, 32], strides = [1, 1]} : vector<2x128xf32> to vector<2x32xf32>
    %485 = arith.negf %484 : vector<2x32xf32>
    %486 = math.exp %485 : vector<2x32xf32>
    %cst_136 = arith.constant 1.000000e+00 : f32
    %487 = vector.broadcast %cst_136 : f32 to vector<2x32xf32>
    %488 = arith.addf %487, %486 : vector<2x32xf32>
    %489 = arith.divf %487, %488 : vector<2x32xf32>
    %490 = vector.extract_strided_slice %477 {offsets = [0, 64], sizes = [2, 32], strides = [1, 1]} : vector<2x128xf32> to vector<2x32xf32>
    %491 = math.tanh %490 : vector<2x32xf32>
    %492 = vector.extract_strided_slice %477 {offsets = [0, 96], sizes = [2, 32], strides = [1, 1]} : vector<2x128xf32> to vector<2x32xf32>
    %493 = arith.negf %492 : vector<2x32xf32>
    %494 = math.exp %493 : vector<2x32xf32>
    %cst_137 = arith.constant 1.000000e+00 : f32
    %495 = vector.broadcast %cst_137 : f32 to vector<2x32xf32>
    %496 = arith.addf %495, %494 : vector<2x32xf32>
    %497 = arith.divf %495, %496 : vector<2x32xf32>
    %498 = arith.mulf %489, %463 : vector<2x32xf32>
    %499 = arith.mulf %483, %491 : vector<2x32xf32>
    %500 = arith.addf %498, %499 : vector<2x32xf32>
    %501 = math.tanh %500 : vector<2x32xf32>
    %502 = arith.mulf %497, %501 : vector<2x32xf32>
    %503 = vector.extract_strided_slice %135 {offsets = [0, 7], sizes = [2, 1], strides = [1, 1]} : vector<2x8xf32> to vector<2x1xf32>
    %504 = vector.broadcast %503 : vector<2x1xf32> to vector<2x32xf32>
    %505 = arith.mulf %504, %502 : vector<2x32xf32>
    %cst_138 = arith.constant 1.000000e+00 : f32
    %506 = vector.broadcast %cst_138 : f32 to vector<2x1xf32>
    %507 = arith.subf %506, %503 : vector<2x1xf32>
    %508 = vector.broadcast %507 : vector<2x1xf32> to vector<2x32xf32>
    %509 = arith.mulf %508, %470 : vector<2x32xf32>
    %510 = arith.addf %505, %509 : vector<2x32xf32>
    %c0_139 = arith.constant 0 : index
    %c7 = arith.constant 7 : index
    %c0_140 = arith.constant 0 : index
    %511 = vector.load %arg33[%c0_139, %c7, %c0_140] : memref<2x8x32xf32, #tpu.memory_space<vmem>>, vector<2x1x32xf32>
    %512 = vector.shape_cast %511 : vector<2x1x32xf32> to vector<2x32xf32>
    %513 = vector.shape_cast %510 : vector<2x32xf32> to vector<2x1x32xf32>
    tpu.vector_store %arg33[%c0_139, %c7, %c0_140], %513 {strides = array<i32>} : memref<2x8x32xf32, #tpu.memory_space<vmem>>, vector<2x1x32xf32>,
    %c0_141 = arith.constant 0 : index
    %c0_142 = arith.constant 0 : index
    %c0_143 = arith.constant 0 : index
    %514 = vector.load %arg33[%c0_141, %c0_142, %c0_143] : memref<2x8x32xf32, #tpu.memory_space<vmem>>, vector<2x8x32xf32>
    %515 = vector.shape_cast %514 : vector<2x8x32xf32> to vector<16x32xf32>
    %c0_144 = arith.constant 0 : index
    %c0_145 = arith.constant 0 : index
    %516 = vector.load %arg24[%c0_144, %c0_145] : memref<32x8xf32, #tpu.memory_space<vmem>>, vector<32x8xf32>
    %cst_146 = arith.constant dense<0.000000e+00> : vector<16x8xf32>
    %517 = tpu.matmul %515, %516, %cst_146 {dimension_numbers = #tpu.dot_dimension_numbers<[1], [0], [0], [1], [0, 0, 1, 1], [], []>} : vector<16x32xf32>, vector<32x8xf32>, vector<16x8xf32> -> vector<16x8xf32>
    %c0_147 = arith.constant 0 : index
    %c0_148 = arith.constant 0 : index
    %518 = vector.load %arg25[%c0_147, %c0_148] : memref<1x8xf32, #tpu.memory_space<vmem>>, vector<1x8xf32>
    %519 = vector.broadcast %518 : vector<1x8xf32> to vector<16x8xf32>
    %520 = arith.addf %517, %519 : vector<16x8xf32>
    %521 = vector.shape_cast %520 : vector<16x8xf32> to vector<2x8x8xf32>
    %522 = tpu.iota {dimensions = array<i32: 1>} : vector<2x8x8xi32>
    %523 = vector.shape_cast %129 : vector<2x1xi32> to vector<2x1xi32>
    %524 = vector.broadcast %523 : vector<2x1xi32> to vector<2x8xi32>
    %525 = vector.shape_cast %524 : vector<2x8xi32> to vector<2x1x8xi32>
    %526 = vector.shape_cast %525 : vector<2x1x8xi32> to vector<2x1x8xi32>
    %527 = vector.broadcast %526 : vector<2x1x8xi32> to vector<2x8x8xi32>
    %528 = arith.cmpi slt, %522, %527 : vector<2x8x8xi32>
    %529 = arith.extui %528 : vector<2x8x8xi1> to vector<2x8x8xi32>
    %530 = arith.sitofp %529 : vector<2x8x8xi32> to vector<2x8x8xf32>
    %531 = arith.mulf %521, %530 : vector<2x8x8xf32>
    %c0_149 = arith.constant 0 : index
    %c0_150 = arith.constant 0 : index
    %c0_151 = arith.constant 0 : index
    %532 = vector.load %arg32[%c0_149, %c0_150, %c0_151] : memref<2x8x8xf32, #tpu.memory_space<vmem>>, vector<2x8x8xf32>
    tpu.vector_store %arg32[%c0_149, %c0_150, %c0_151], %531 {strides = array<i32>} : memref<2x8x8xf32, #tpu.memory_space<vmem>>, vector<2x8x8xf32>,
    %cst_152 = arith.constant dense<0xFF800000> : vector<16xf32>
    %533 = vector.multi_reduction <maximumf>, %520, %cst_152 [1] : vector<16x8xf32> to vector<16xf32>
    %534 = vector.shape_cast %533 : vector<16xf32> to vector<16x1xf32>
    %535 = vector.broadcast %534 : vector<16x1xf32> to vector<16x8xf32>
    %536 = arith.subf %520, %535 : vector<16x8xf32>
    %537 = math.exp %536 : vector<16x8xf32>
    %cst_153 = arith.constant dense<0.000000e+00> : vector<16xf32>
    %538 = vector.multi_reduction <add>, %537, %cst_153 [1] : vector<16x8xf32> to vector<16xf32>
    %539 = vector.shape_cast %538 : vector<16xf32> to vector<16x1xf32>
    %540 = vector.broadcast %539 : vector<16x1xf32> to vector<16x8xf32>
    %541 = arith.divf %537, %540 : vector<16x8xf32>
    %c0_154 = arith.constant 0 : index
    %c0_155 = arith.constant 0 : index
    %542 = vector.load %arg26[%c0_154, %c0_155] : memref<8x32xf32, #tpu.memory_space<vmem>>, vector<8x32xf32>
    %c0_156 = arith.constant 0 : index
    %c0_157 = arith.constant 0 : index
    %543 = vector.load %arg27[%c0_156, %c0_157] : memref<8x32xf32, #tpu.memory_space<vmem>>, vector<8x32xf32>
    %c0_158 = arith.constant 0 : index
    %c0_159 = arith.constant 0 : index
    %544 = vector.load %arg28[%c0_158, %c0_159] : memref<1x32xf32, #tpu.memory_space<vmem>>, vector<1x32xf32>
    %cst_160 = arith.constant dense<0.000000e+00> : vector<16x32xf32>
    %545 = tpu.matmul %541, %542, %cst_160 {dimension_numbers = #tpu.dot_dimension_numbers<[1], [0], [0], [1], [0, 0, 1, 1], [], []>} : vector<16x8xf32>, vector<8x32xf32>, vector<16x32xf32> -> vector<16x32xf32>
    %546 = vector.broadcast %544 : vector<1x32xf32> to vector<16x32xf32>
    %547 = arith.addf %545, %546 : vector<16x32xf32>
    %548 = vector.shape_cast %547 : vector<16x32xf32> to vector<2x8x32xf32>
    %cst_161 = arith.constant 0.000000e+00 : f32
    %549 = vector.broadcast %cst_161 : f32 to vector<2x8xf32>
    %cst_162 = arith.constant 0.000000e+00 : f32
    %550 = vector.broadcast %cst_162 : f32 to vector<2x8xf32>
    %551 = vector.extract_strided_slice %548 {offsets = [0, 0, 0], sizes = [2, 1, 32], strides = [1, 1, 1]} : vector<2x8x32xf32> to vector<2x1x32xf32>
    %552 = vector.shape_cast %551 : vector<2x1x32xf32> to vector<2x32xf32>
    %cst_163 = arith.constant dense<0.000000e+00> : vector<2x32xf32>
    %553 = tpu.matmul %549, %543, %cst_163 {dimension_numbers = #tpu.dot_dimension_numbers<[1], [0], [0], [1], [0, 0, 1, 1], [], []>} : vector<2x8xf32>, vector<8x32xf32>, vector<2x32xf32> -> vector<2x32xf32>
    %554 = arith.addf %552, %553 : vector<2x32xf32>
    %555 = vector.extract_strided_slice %554 {offsets = [0, 0], sizes = [2, 8], strides = [1, 1]} : vector<2x32xf32> to vector<2x8xf32>
    %556 = arith.negf %555 : vector<2x8xf32>
    %557 = math.exp %556 : vector<2x8xf32>
    %cst_164 = arith.constant 1.000000e+00 : f32
    %558 = vector.broadcast %cst_164 : f32 to vector<2x8xf32>
    %559 = arith.addf %558, %557 : vector<2x8xf32>
    %560 = arith.divf %558, %559 : vector<2x8xf32>
    %561 = vector.extract_strided_slice %554 {offsets = [0, 8], sizes = [2, 8], strides = [1, 1]} : vector<2x32xf32> to vector<2x8xf32>
    %562 = arith.negf %561 : vector<2x8xf32>
    %563 = math.exp %562 : vector<2x8xf32>
    %cst_165 = arith.constant 1.000000e+00 : f32
    %564 = vector.broadcast %cst_165 : f32 to vector<2x8xf32>
    %565 = arith.addf %564, %563 : vector<2x8xf32>
    %566 = arith.divf %564, %565 : vector<2x8xf32>
    %567 = vector.extract_strided_slice %554 {offsets = [0, 16], sizes = [2, 8], strides = [1, 1]} : vector<2x32xf32> to vector<2x8xf32>
    %568 = math.tanh %567 : vector<2x8xf32>
    %569 = vector.extract_strided_slice %554 {offsets = [0, 24], sizes = [2, 8], strides = [1, 1]} : vector<2x32xf32> to vector<2x8xf32>
    %570 = arith.negf %569 : vector<2x8xf32>
    %571 = math.exp %570 : vector<2x8xf32>
    %cst_166 = arith.constant 1.000000e+00 : f32
    %572 = vector.broadcast %cst_166 : f32 to vector<2x8xf32>
    %573 = arith.addf %572, %571 : vector<2x8xf32>
    %574 = arith.divf %572, %573 : vector<2x8xf32>
    %575 = arith.mulf %566, %550 : vector<2x8xf32>
    %576 = arith.mulf %560, %568 : vector<2x8xf32>
    %577 = arith.addf %575, %576 : vector<2x8xf32>
    %578 = math.tanh %577 : vector<2x8xf32>
    %579 = arith.mulf %574, %578 : vector<2x8xf32>
    %580 = vector.extract_strided_slice %135 {offsets = [0, 0], sizes = [2, 1], strides = [1, 1]} : vector<2x8xf32> to vector<2x1xf32>
    %581 = vector.broadcast %580 : vector<2x1xf32> to vector<2x8xf32>
    %582 = arith.mulf %581, %577 : vector<2x8xf32>
    %cst_167 = arith.constant 1.000000e+00 : f32
    %583 = vector.broadcast %cst_167 : f32 to vector<2x1xf32>
    %584 = arith.subf %583, %580 : vector<2x1xf32>
    %585 = vector.broadcast %584 : vector<2x1xf32> to vector<2x8xf32>
    %586 = arith.mulf %585, %550 : vector<2x8xf32>
    %587 = arith.addf %582, %586 : vector<2x8xf32>
    %588 = vector.broadcast %580 : vector<2x1xf32> to vector<2x8xf32>
    %589 = arith.mulf %588, %579 : vector<2x8xf32>
    %cst_168 = arith.constant 1.000000e+00 : f32
    %590 = vector.broadcast %cst_168 : f32 to vector<2x1xf32>
    %591 = arith.subf %590, %580 : vector<2x1xf32>
    %592 = vector.broadcast %591 : vector<2x1xf32> to vector<2x8xf32>
    %593 = arith.mulf %592, %549 : vector<2x8xf32>
    %594 = arith.addf %589, %593 : vector<2x8xf32>
    %c0_169 = arith.constant 0 : index
    %c0_170 = arith.constant 0 : index
    %c0_171 = arith.constant 0 : index
    %595 = vector.load %arg34[%c0_169, %c0_170, %c0_171] : memref<2x8x8xf32, #tpu.memory_space<vmem>>, vector<2x1x8xf32>
    %596 = vector.shape_cast %595 : vector<2x1x8xf32> to vector<2x8xf32>
    %597 = vector.shape_cast %594 : vector<2x8xf32> to vector<2x1x8xf32>
    tpu.vector_store %arg34[%c0_169, %c0_170, %c0_171], %597 {strides = array<i32>} : memref<2x8x8xf32, #tpu.memory_space<vmem>>, vector<2x1x8xf32>,
    %598 = vector.extract_strided_slice %548 {offsets = [0, 1, 0], sizes = [2, 1, 32], strides = [1, 1, 1]} : vector<2x8x32xf32> to vector<2x1x32xf32>
    %599 = vector.shape_cast %598 : vector<2x1x32xf32> to vector<2x32xf32>
    %cst_172 = arith.constant dense<0.000000e+00> : vector<2x32xf32>
    %600 = tpu.matmul %594, %543, %cst_172 {dimension_numbers = #tpu.dot_dimension_numbers<[1], [0], [0], [1], [0, 0, 1, 1], [], []>} : vector<2x8xf32>, vector<8x32xf32>, vector<2x32xf32> -> vector<2x32xf32>
    %601 = arith.addf %599, %600 : vector<2x32xf32>
    %602 = vector.extract_strided_slice %601 {offsets = [0, 0], sizes = [2, 8], strides = [1, 1]} : vector<2x32xf32> to vector<2x8xf32>
    %603 = arith.negf %602 : vector<2x8xf32>
    %604 = math.exp %603 : vector<2x8xf32>
    %cst_173 = arith.constant 1.000000e+00 : f32
    %605 = vector.broadcast %cst_173 : f32 to vector<2x8xf32>
    %606 = arith.addf %605, %604 : vector<2x8xf32>
    %607 = arith.divf %605, %606 : vector<2x8xf32>
    %608 = vector.extract_strided_slice %601 {offsets = [0, 8], sizes = [2, 8], strides = [1, 1]} : vector<2x32xf32> to vector<2x8xf32>
    %609 = arith.negf %608 : vector<2x8xf32>
    %610 = math.exp %609 : vector<2x8xf32>
    %cst_174 = arith.constant 1.000000e+00 : f32
    %611 = vector.broadcast %cst_174 : f32 to vector<2x8xf32>
    %612 = arith.addf %611, %610 : vector<2x8xf32>
    %613 = arith.divf %611, %612 : vector<2x8xf32>
    %614 = vector.extract_strided_slice %601 {offsets = [0, 16], sizes = [2, 8], strides = [1, 1]} : vector<2x32xf32> to vector<2x8xf32>
    %615 = math.tanh %614 : vector<2x8xf32>
    %616 = vector.extract_strided_slice %601 {offsets = [0, 24], sizes = [2, 8], strides = [1, 1]} : vector<2x32xf32> to vector<2x8xf32>
    %617 = arith.negf %616 : vector<2x8xf32>
    %618 = math.exp %617 : vector<2x8xf32>
    %cst_175 = arith.constant 1.000000e+00 : f32
    %619 = vector.broadcast %cst_175 : f32 to vector<2x8xf32>
    %620 = arith.addf %619, %618 : vector<2x8xf32>
    %621 = arith.divf %619, %620 : vector<2x8xf32>
    %622 = arith.mulf %613, %587 : vector<2x8xf32>
    %623 = arith.mulf %607, %615 : vector<2x8xf32>
    %624 = arith.addf %622, %623 : vector<2x8xf32>
    %625 = math.tanh %624 : vector<2x8xf32>
    %626 = arith.mulf %621, %625 : vector<2x8xf32>
    %627 = vector.extract_strided_slice %135 {offsets = [0, 1], sizes = [2, 1], strides = [1, 1]} : vector<2x8xf32> to vector<2x1xf32>
    %628 = vector.broadcast %627 : vector<2x1xf32> to vector<2x8xf32>
    %629 = arith.mulf %628, %624 : vector<2x8xf32>
    %cst_176 = arith.constant 1.000000e+00 : f32
    %630 = vector.broadcast %cst_176 : f32 to vector<2x1xf32>
    %631 = arith.subf %630, %627 : vector<2x1xf32>
    %632 = vector.broadcast %631 : vector<2x1xf32> to vector<2x8xf32>
    %633 = arith.mulf %632, %587 : vector<2x8xf32>
    %634 = arith.addf %629, %633 : vector<2x8xf32>
    %635 = vector.broadcast %627 : vector<2x1xf32> to vector<2x8xf32>
    %636 = arith.mulf %635, %626 : vector<2x8xf32>
    %cst_177 = arith.constant 1.000000e+00 : f32
    %637 = vector.broadcast %cst_177 : f32 to vector<2x1xf32>
    %638 = arith.subf %637, %627 : vector<2x1xf32>
    %639 = vector.broadcast %638 : vector<2x1xf32> to vector<2x8xf32>
    %640 = arith.mulf %639, %594 : vector<2x8xf32>
    %641 = arith.addf %636, %640 : vector<2x8xf32>
    %c0_178 = arith.constant 0 : index
    %c1_179 = arith.constant 1 : index
    %c0_180 = arith.constant 0 : index
    %642 = vector.load %arg34[%c0_178, %c1_179, %c0_180] : memref<2x8x8xf32, #tpu.memory_space<vmem>>, vector<2x1x8xf32>
    %643 = vector.shape_cast %642 : vector<2x1x8xf32> to vector<2x8xf32>
    %644 = vector.shape_cast %641 : vector<2x8xf32> to vector<2x1x8xf32>
    tpu.vector_store %arg34[%c0_178, %c1_179, %c0_180], %644 {strides = array<i32>} : memref<2x8x8xf32, #tpu.memory_space<vmem>>, vector<2x1x8xf32>,
    %645 = vector.extract_strided_slice %548 {offsets = [0, 2, 0], sizes = [2, 1, 32], strides = [1, 1, 1]} : vector<2x8x32xf32> to vector<2x1x32xf32>
    %646 = vector.shape_cast %645 : vector<2x1x32xf32> to vector<2x32xf32>
    %cst_181 = arith.constant dense<0.000000e+00> : vector<2x32xf32>
    %647 = tpu.matmul %641, %543, %cst_181 {dimension_numbers = #tpu.dot_dimension_numbers<[1], [0], [0], [1], [0, 0, 1, 1], [], []>} : vector<2x8xf32>, vector<8x32xf32>, vector<2x32xf32> -> vector<2x32xf32>
    %648 = arith.addf %646, %647 : vector<2x32xf32>
    %649 = vector.extract_strided_slice %648 {offsets = [0, 0], sizes = [2, 8], strides = [1, 1]} : vector<2x32xf32> to vector<2x8xf32>
    %650 = arith.negf %649 : vector<2x8xf32>
    %651 = math.exp %650 : vector<2x8xf32>
    %cst_182 = arith.constant 1.000000e+00 : f32
    %652 = vector.broadcast %cst_182 : f32 to vector<2x8xf32>
    %653 = arith.addf %652, %651 : vector<2x8xf32>
    %654 = arith.divf %652, %653 : vector<2x8xf32>
    %655 = vector.extract_strided_slice %648 {offsets = [0, 8], sizes = [2, 8], strides = [1, 1]} : vector<2x32xf32> to vector<2x8xf32>
    %656 = arith.negf %655 : vector<2x8xf32>
    %657 = math.exp %656 : vector<2x8xf32>
    %cst_183 = arith.constant 1.000000e+00 : f32
    %658 = vector.broadcast %cst_183 : f32 to vector<2x8xf32>
    %659 = arith.addf %658, %657 : vector<2x8xf32>
    %660 = arith.divf %658, %659 : vector<2x8xf32>
    %661 = vector.extract_strided_slice %648 {offsets = [0, 16], sizes = [2, 8], strides = [1, 1]} : vector<2x32xf32> to vector<2x8xf32>
    %662 = math.tanh %661 : vector<2x8xf32>
    %663 = vector.extract_strided_slice %648 {offsets = [0, 24], sizes = [2, 8], strides = [1, 1]} : vector<2x32xf32> to vector<2x8xf32>
    %664 = arith.negf %663 : vector<2x8xf32>
    %665 = math.exp %664 : vector<2x8xf32>
    %cst_184 = arith.constant 1.000000e+00 : f32
    %666 = vector.broadcast %cst_184 : f32 to vector<2x8xf32>
    %667 = arith.addf %666, %665 : vector<2x8xf32>
    %668 = arith.divf %666, %667 : vector<2x8xf32>
    %669 = arith.mulf %660, %634 : vector<2x8xf32>
    %670 = arith.mulf %654, %662 : vector<2x8xf32>
    %671 = arith.addf %669, %670 : vector<2x8xf32>
    %672 = math.tanh %671 : vector<2x8xf32>
    %673 = arith.mulf %668, %672 : vector<2x8xf32>
    %674 = vector.extract_strided_slice %135 {offsets = [0, 2], sizes = [2, 1], strides = [1, 1]} : vector<2x8xf32> to vector<2x1xf32>
    %675 = vector.broadcast %674 : vector<2x1xf32> to vector<2x8xf32>
    %676 = arith.mulf %675, %671 : vector<2x8xf32>
    %cst_185 = arith.constant 1.000000e+00 : f32
    %677 = vector.broadcast %cst_185 : f32 to vector<2x1xf32>
    %678 = arith.subf %677, %674 : vector<2x1xf32>
    %679 = vector.broadcast %678 : vector<2x1xf32> to vector<2x8xf32>
    %680 = arith.mulf %679, %634 : vector<2x8xf32>
    %681 = arith.addf %676, %680 : vector<2x8xf32>
    %682 = vector.broadcast %674 : vector<2x1xf32> to vector<2x8xf32>
    %683 = arith.mulf %682, %673 : vector<2x8xf32>
    %cst_186 = arith.constant 1.000000e+00 : f32
    %684 = vector.broadcast %cst_186 : f32 to vector<2x1xf32>
    %685 = arith.subf %684, %674 : vector<2x1xf32>
    %686 = vector.broadcast %685 : vector<2x1xf32> to vector<2x8xf32>
    %687 = arith.mulf %686, %641 : vector<2x8xf32>
    %688 = arith.addf %683, %687 : vector<2x8xf32>
    %c0_187 = arith.constant 0 : index
    %c2_188 = arith.constant 2 : index
    %c0_189 = arith.constant 0 : index
    %689 = vector.load %arg34[%c0_187, %c2_188, %c0_189] : memref<2x8x8xf32, #tpu.memory_space<vmem>>, vector<2x1x8xf32>
    %690 = vector.shape_cast %689 : vector<2x1x8xf32> to vector<2x8xf32>
    %691 = vector.shape_cast %688 : vector<2x8xf32> to vector<2x1x8xf32>
    tpu.vector_store %arg34[%c0_187, %c2_188, %c0_189], %691 {strides = array<i32>} : memref<2x8x8xf32, #tpu.memory_space<vmem>>, vector<2x1x8xf32>,
    %692 = vector.extract_strided_slice %548 {offsets = [0, 3, 0], sizes = [2, 1, 32], strides = [1, 1, 1]} : vector<2x8x32xf32> to vector<2x1x32xf32>
    %693 = vector.shape_cast %692 : vector<2x1x32xf32> to vector<2x32xf32>
    %cst_190 = arith.constant dense<0.000000e+00> : vector<2x32xf32>
    %694 = tpu.matmul %688, %543, %cst_190 {dimension_numbers = #tpu.dot_dimension_numbers<[1], [0], [0], [1], [0, 0, 1, 1], [], []>} : vector<2x8xf32>, vector<8x32xf32>, vector<2x32xf32> -> vector<2x32xf32>
    %695 = arith.addf %693, %694 : vector<2x32xf32>
    %696 = vector.extract_strided_slice %695 {offsets = [0, 0], sizes = [2, 8], strides = [1, 1]} : vector<2x32xf32> to vector<2x8xf32>
    %697 = arith.negf %696 : vector<2x8xf32>
    %698 = math.exp %697 : vector<2x8xf32>
    %cst_191 = arith.constant 1.000000e+00 : f32
    %699 = vector.broadcast %cst_191 : f32 to vector<2x8xf32>
    %700 = arith.addf %699, %698 : vector<2x8xf32>
    %701 = arith.divf %699, %700 : vector<2x8xf32>
    %702 = vector.extract_strided_slice %695 {offsets = [0, 8], sizes = [2, 8], strides = [1, 1]} : vector<2x32xf32> to vector<2x8xf32>
    %703 = arith.negf %702 : vector<2x8xf32>
    %704 = math.exp %703 : vector<2x8xf32>
    %cst_192 = arith.constant 1.000000e+00 : f32
    %705 = vector.broadcast %cst_192 : f32 to vector<2x8xf32>
    %706 = arith.addf %705, %704 : vector<2x8xf32>
    %707 = arith.divf %705, %706 : vector<2x8xf32>
    %708 = vector.extract_strided_slice %695 {offsets = [0, 16], sizes = [2, 8], strides = [1, 1]} : vector<2x32xf32> to vector<2x8xf32>
    %709 = math.tanh %708 : vector<2x8xf32>
    %710 = vector.extract_strided_slice %695 {offsets = [0, 24], sizes = [2, 8], strides = [1, 1]} : vector<2x32xf32> to vector<2x8xf32>
    %711 = arith.negf %710 : vector<2x8xf32>
    %712 = math.exp %711 : vector<2x8xf32>
    %cst_193 = arith.constant 1.000000e+00 : f32
    %713 = vector.broadcast %cst_193 : f32 to vector<2x8xf32>
    %714 = arith.addf %713, %712 : vector<2x8xf32>
    %715 = arith.divf %713, %714 : vector<2x8xf32>
    %716 = arith.mulf %707, %681 : vector<2x8xf32>
    %717 = arith.mulf %701, %709 : vector<2x8xf32>
    %718 = arith.addf %716, %717 : vector<2x8xf32>
    %719 = math.tanh %718 : vector<2x8xf32>
    %720 = arith.mulf %715, %719 : vector<2x8xf32>
    %721 = vector.extract_strided_slice %135 {offsets = [0, 3], sizes = [2, 1], strides = [1, 1]} : vector<2x8xf32> to vector<2x1xf32>
    %722 = vector.broadcast %721 : vector<2x1xf32> to vector<2x8xf32>
    %723 = arith.mulf %722, %718 : vector<2x8xf32>
    %cst_194 = arith.constant 1.000000e+00 : f32
    %724 = vector.broadcast %cst_194 : f32 to vector<2x1xf32>
    %725 = arith.subf %724, %721 : vector<2x1xf32>
    %726 = vector.broadcast %725 : vector<2x1xf32> to vector<2x8xf32>
    %727 = arith.mulf %726, %681 : vector<2x8xf32>
    %728 = arith.addf %723, %727 : vector<2x8xf32>
    %729 = vector.broadcast %721 : vector<2x1xf32> to vector<2x8xf32>
    %730 = arith.mulf %729, %720 : vector<2x8xf32>
    %cst_195 = arith.constant 1.000000e+00 : f32
    %731 = vector.broadcast %cst_195 : f32 to vector<2x1xf32>
    %732 = arith.subf %731, %721 : vector<2x1xf32>
    %733 = vector.broadcast %732 : vector<2x1xf32> to vector<2x8xf32>
    %734 = arith.mulf %733, %688 : vector<2x8xf32>
    %735 = arith.addf %730, %734 : vector<2x8xf32>
    %c0_196 = arith.constant 0 : index
    %c3_197 = arith.constant 3 : index
    %c0_198 = arith.constant 0 : index
    %736 = vector.load %arg34[%c0_196, %c3_197, %c0_198] : memref<2x8x8xf32, #tpu.memory_space<vmem>>, vector<2x1x8xf32>
    %737 = vector.shape_cast %736 : vector<2x1x8xf32> to vector<2x8xf32>
    %738 = vector.shape_cast %735 : vector<2x8xf32> to vector<2x1x8xf32>
    tpu.vector_store %arg34[%c0_196, %c3_197, %c0_198], %738 {strides = array<i32>} : memref<2x8x8xf32, #tpu.memory_space<vmem>>, vector<2x1x8xf32>,
    %739 = vector.extract_strided_slice %548 {offsets = [0, 4, 0], sizes = [2, 1, 32], strides = [1, 1, 1]} : vector<2x8x32xf32> to vector<2x1x32xf32>
    %740 = vector.shape_cast %739 : vector<2x1x32xf32> to vector<2x32xf32>
    %cst_199 = arith.constant dense<0.000000e+00> : vector<2x32xf32>
    %741 = tpu.matmul %735, %543, %cst_199 {dimension_numbers = #tpu.dot_dimension_numbers<[1], [0], [0], [1], [0, 0, 1, 1], [], []>} : vector<2x8xf32>, vector<8x32xf32>, vector<2x32xf32> -> vector<2x32xf32>
    %742 = arith.addf %740, %741 : vector<2x32xf32>
    %743 = vector.extract_strided_slice %742 {offsets = [0, 0], sizes = [2, 8], strides = [1, 1]} : vector<2x32xf32> to vector<2x8xf32>
    %744 = arith.negf %743 : vector<2x8xf32>
    %745 = math.exp %744 : vector<2x8xf32>
    %cst_200 = arith.constant 1.000000e+00 : f32
    %746 = vector.broadcast %cst_200 : f32 to vector<2x8xf32>
    %747 = arith.addf %746, %745 : vector<2x8xf32>
    %748 = arith.divf %746, %747 : vector<2x8xf32>
    %749 = vector.extract_strided_slice %742 {offsets = [0, 8], sizes = [2, 8], strides = [1, 1]} : vector<2x32xf32> to vector<2x8xf32>
    %750 = arith.negf %749 : vector<2x8xf32>
    %751 = math.exp %750 : vector<2x8xf32>
    %cst_201 = arith.constant 1.000000e+00 : f32
    %752 = vector.broadcast %cst_201 : f32 to vector<2x8xf32>
    %753 = arith.addf %752, %751 : vector<2x8xf32>
    %754 = arith.divf %752, %753 : vector<2x8xf32>
    %755 = vector.extract_strided_slice %742 {offsets = [0, 16], sizes = [2, 8], strides = [1, 1]} : vector<2x32xf32> to vector<2x8xf32>
    %756 = math.tanh %755 : vector<2x8xf32>
    %757 = vector.extract_strided_slice %742 {offsets = [0, 24], sizes = [2, 8], strides = [1, 1]} : vector<2x32xf32> to vector<2x8xf32>
    %758 = arith.negf %757 : vector<2x8xf32>
    %759 = math.exp %758 : vector<2x8xf32>
    %cst_202 = arith.constant 1.000000e+00 : f32
    %760 = vector.broadcast %cst_202 : f32 to vector<2x8xf32>
    %761 = arith.addf %760, %759 : vector<2x8xf32>
    %762 = arith.divf %760, %761 : vector<2x8xf32>
    %763 = arith.mulf %754, %728 : vector<2x8xf32>
    %764 = arith.mulf %748, %756 : vector<2x8xf32>
    %765 = arith.addf %763, %764 : vector<2x8xf32>
    %766 = math.tanh %765 : vector<2x8xf32>
    %767 = arith.mulf %762, %766 : vector<2x8xf32>
    %768 = vector.extract_strided_slice %135 {offsets = [0, 4], sizes = [2, 1], strides = [1, 1]} : vector<2x8xf32> to vector<2x1xf32>
    %769 = vector.broadcast %768 : vector<2x1xf32> to vector<2x8xf32>
    %770 = arith.mulf %769, %765 : vector<2x8xf32>
    %cst_203 = arith.constant 1.000000e+00 : f32
    %771 = vector.broadcast %cst_203 : f32 to vector<2x1xf32>
    %772 = arith.subf %771, %768 : vector<2x1xf32>
    %773 = vector.broadcast %772 : vector<2x1xf32> to vector<2x8xf32>
    %774 = arith.mulf %773, %728 : vector<2x8xf32>
    %775 = arith.addf %770, %774 : vector<2x8xf32>
    %776 = vector.broadcast %768 : vector<2x1xf32> to vector<2x8xf32>
    %777 = arith.mulf %776, %767 : vector<2x8xf32>
    %cst_204 = arith.constant 1.000000e+00 : f32
    %778 = vector.broadcast %cst_204 : f32 to vector<2x1xf32>
    %779 = arith.subf %778, %768 : vector<2x1xf32>
    %780 = vector.broadcast %779 : vector<2x1xf32> to vector<2x8xf32>
    %781 = arith.mulf %780, %735 : vector<2x8xf32>
    %782 = arith.addf %777, %781 : vector<2x8xf32>
    %c0_205 = arith.constant 0 : index
    %c4_206 = arith.constant 4 : index
    %c0_207 = arith.constant 0 : index
    %783 = vector.load %arg34[%c0_205, %c4_206, %c0_207] : memref<2x8x8xf32, #tpu.memory_space<vmem>>, vector<2x1x8xf32>
    %784 = vector.shape_cast %783 : vector<2x1x8xf32> to vector<2x8xf32>
    %785 = vector.shape_cast %782 : vector<2x8xf32> to vector<2x1x8xf32>
    tpu.vector_store %arg34[%c0_205, %c4_206, %c0_207], %785 {strides = array<i32>} : memref<2x8x8xf32, #tpu.memory_space<vmem>>, vector<2x1x8xf32>,
    %786 = vector.extract_strided_slice %548 {offsets = [0, 5, 0], sizes = [2, 1, 32], strides = [1, 1, 1]} : vector<2x8x32xf32> to vector<2x1x32xf32>
    %787 = vector.shape_cast %786 : vector<2x1x32xf32> to vector<2x32xf32>
    %cst_208 = arith.constant dense<0.000000e+00> : vector<2x32xf32>
    %788 = tpu.matmul %782, %543, %cst_208 {dimension_numbers = #tpu.dot_dimension_numbers<[1], [0], [0], [1], [0, 0, 1, 1], [], []>} : vector<2x8xf32>, vector<8x32xf32>, vector<2x32xf32> -> vector<2x32xf32>
    %789 = arith.addf %787, %788 : vector<2x32xf32>
    %790 = vector.extract_strided_slice %789 {offsets = [0, 0], sizes = [2, 8], strides = [1, 1]} : vector<2x32xf32> to vector<2x8xf32>
    %791 = arith.negf %790 : vector<2x8xf32>
    %792 = math.exp %791 : vector<2x8xf32>
    %cst_209 = arith.constant 1.000000e+00 : f32
    %793 = vector.broadcast %cst_209 : f32 to vector<2x8xf32>
    %794 = arith.addf %793, %792 : vector<2x8xf32>
    %795 = arith.divf %793, %794 : vector<2x8xf32>
    %796 = vector.extract_strided_slice %789 {offsets = [0, 8], sizes = [2, 8], strides = [1, 1]} : vector<2x32xf32> to vector<2x8xf32>
    %797 = arith.negf %796 : vector<2x8xf32>
    %798 = math.exp %797 : vector<2x8xf32>
    %cst_210 = arith.constant 1.000000e+00 : f32
    %799 = vector.broadcast %cst_210 : f32 to vector<2x8xf32>
    %800 = arith.addf %799, %798 : vector<2x8xf32>
    %801 = arith.divf %799, %800 : vector<2x8xf32>
    %802 = vector.extract_strided_slice %789 {offsets = [0, 16], sizes = [2, 8], strides = [1, 1]} : vector<2x32xf32> to vector<2x8xf32>
    %803 = math.tanh %802 : vector<2x8xf32>
    %804 = vector.extract_strided_slice %789 {offsets = [0, 24], sizes = [2, 8], strides = [1, 1]} : vector<2x32xf32> to vector<2x8xf32>
    %805 = arith.negf %804 : vector<2x8xf32>
    %806 = math.exp %805 : vector<2x8xf32>
    %cst_211 = arith.constant 1.000000e+00 : f32
    %807 = vector.broadcast %cst_211 : f32 to vector<2x8xf32>
    %808 = arith.addf %807, %806 : vector<2x8xf32>
    %809 = arith.divf %807, %808 : vector<2x8xf32>
    %810 = arith.mulf %801, %775 : vector<2x8xf32>
    %811 = arith.mulf %795, %803 : vector<2x8xf32>
    %812 = arith.addf %810, %811 : vector<2x8xf32>
    %813 = math.tanh %812 : vector<2x8xf32>
    %814 = arith.mulf %809, %813 : vector<2x8xf32>
    %815 = vector.extract_strided_slice %135 {offsets = [0, 5], sizes = [2, 1], strides = [1, 1]} : vector<2x8xf32> to vector<2x1xf32>
    %816 = vector.broadcast %815 : vector<2x1xf32> to vector<2x8xf32>
    %817 = arith.mulf %816, %812 : vector<2x8xf32>
    %cst_212 = arith.constant 1.000000e+00 : f32
    %818 = vector.broadcast %cst_212 : f32 to vector<2x1xf32>
    %819 = arith.subf %818, %815 : vector<2x1xf32>
    %820 = vector.broadcast %819 : vector<2x1xf32> to vector<2x8xf32>
    %821 = arith.mulf %820, %775 : vector<2x8xf32>
    %822 = arith.addf %817, %821 : vector<2x8xf32>
    %823 = vector.broadcast %815 : vector<2x1xf32> to vector<2x8xf32>
    %824 = arith.mulf %823, %814 : vector<2x8xf32>
    %cst_213 = arith.constant 1.000000e+00 : f32
    %825 = vector.broadcast %cst_213 : f32 to vector<2x1xf32>
    %826 = arith.subf %825, %815 : vector<2x1xf32>
    %827 = vector.broadcast %826 : vector<2x1xf32> to vector<2x8xf32>
    %828 = arith.mulf %827, %782 : vector<2x8xf32>
    %829 = arith.addf %824, %828 : vector<2x8xf32>
    %c0_214 = arith.constant 0 : index
    %c5_215 = arith.constant 5 : index
    %c0_216 = arith.constant 0 : index
    %830 = vector.load %arg34[%c0_214, %c5_215, %c0_216] : memref<2x8x8xf32, #tpu.memory_space<vmem>>, vector<2x1x8xf32>
    %831 = vector.shape_cast %830 : vector<2x1x8xf32> to vector<2x8xf32>
    %832 = vector.shape_cast %829 : vector<2x8xf32> to vector<2x1x8xf32>
    tpu.vector_store %arg34[%c0_214, %c5_215, %c0_216], %832 {strides = array<i32>} : memref<2x8x8xf32, #tpu.memory_space<vmem>>, vector<2x1x8xf32>,
    %833 = vector.extract_strided_slice %548 {offsets = [0, 6, 0], sizes = [2, 1, 32], strides = [1, 1, 1]} : vector<2x8x32xf32> to vector<2x1x32xf32>
    %834 = vector.shape_cast %833 : vector<2x1x32xf32> to vector<2x32xf32>
    %cst_217 = arith.constant dense<0.000000e+00> : vector<2x32xf32>
    %835 = tpu.matmul %829, %543, %cst_217 {dimension_numbers = #tpu.dot_dimension_numbers<[1], [0], [0], [1], [0, 0, 1, 1], [], []>} : vector<2x8xf32>, vector<8x32xf32>, vector<2x32xf32> -> vector<2x32xf32>
    %836 = arith.addf %834, %835 : vector<2x32xf32>
    %837 = vector.extract_strided_slice %836 {offsets = [0, 0], sizes = [2, 8], strides = [1, 1]} : vector<2x32xf32> to vector<2x8xf32>
    %838 = arith.negf %837 : vector<2x8xf32>
    %839 = math.exp %838 : vector<2x8xf32>
    %cst_218 = arith.constant 1.000000e+00 : f32
    %840 = vector.broadcast %cst_218 : f32 to vector<2x8xf32>
    %841 = arith.addf %840, %839 : vector<2x8xf32>
    %842 = arith.divf %840, %841 : vector<2x8xf32>
    %843 = vector.extract_strided_slice %836 {offsets = [0, 8], sizes = [2, 8], strides = [1, 1]} : vector<2x32xf32> to vector<2x8xf32>
    %844 = arith.negf %843 : vector<2x8xf32>
    %845 = math.exp %844 : vector<2x8xf32>
    %cst_219 = arith.constant 1.000000e+00 : f32
    %846 = vector.broadcast %cst_219 : f32 to vector<2x8xf32>
    %847 = arith.addf %846, %845 : vector<2x8xf32>
    %848 = arith.divf %846, %847 : vector<2x8xf32>
    %849 = vector.extract_strided_slice %836 {offsets = [0, 16], sizes = [2, 8], strides = [1, 1]} : vector<2x32xf32> to vector<2x8xf32>
    %850 = math.tanh %849 : vector<2x8xf32>
    %851 = vector.extract_strided_slice %836 {offsets = [0, 24], sizes = [2, 8], strides = [1, 1]} : vector<2x32xf32> to vector<2x8xf32>
    %852 = arith.negf %851 : vector<2x8xf32>
    %853 = math.exp %852 : vector<2x8xf32>
    %cst_220 = arith.constant 1.000000e+00 : f32
    %854 = vector.broadcast %cst_220 : f32 to vector<2x8xf32>
    %855 = arith.addf %854, %853 : vector<2x8xf32>
    %856 = arith.divf %854, %855 : vector<2x8xf32>
    %857 = arith.mulf %848, %822 : vector<2x8xf32>
    %858 = arith.mulf %842, %850 : vector<2x8xf32>
    %859 = arith.addf %857, %858 : vector<2x8xf32>
    %860 = math.tanh %859 : vector<2x8xf32>
    %861 = arith.mulf %856, %860 : vector<2x8xf32>
    %862 = vector.extract_strided_slice %135 {offsets = [0, 6], sizes = [2, 1], strides = [1, 1]} : vector<2x8xf32> to vector<2x1xf32>
    %863 = vector.broadcast %862 : vector<2x1xf32> to vector<2x8xf32>
    %864 = arith.mulf %863, %859 : vector<2x8xf32>
    %cst_221 = arith.constant 1.000000e+00 : f32
    %865 = vector.broadcast %cst_221 : f32 to vector<2x1xf32>
    %866 = arith.subf %865, %862 : vector<2x1xf32>
    %867 = vector.broadcast %866 : vector<2x1xf32> to vector<2x8xf32>
    %868 = arith.mulf %867, %822 : vector<2x8xf32>
    %869 = arith.addf %864, %868 : vector<2x8xf32>
    %870 = vector.broadcast %862 : vector<2x1xf32> to vector<2x8xf32>
    %871 = arith.mulf %870, %861 : vector<2x8xf32>
    %cst_222 = arith.constant 1.000000e+00 : f32
    %872 = vector.broadcast %cst_222 : f32 to vector<2x1xf32>
    %873 = arith.subf %872, %862 : vector<2x1xf32>
    %874 = vector.broadcast %873 : vector<2x1xf32> to vector<2x8xf32>
    %875 = arith.mulf %874, %829 : vector<2x8xf32>
    %876 = arith.addf %871, %875 : vector<2x8xf32>
    %c0_223 = arith.constant 0 : index
    %c6_224 = arith.constant 6 : index
    %c0_225 = arith.constant 0 : index
    %877 = vector.load %arg34[%c0_223, %c6_224, %c0_225] : memref<2x8x8xf32, #tpu.memory_space<vmem>>, vector<2x1x8xf32>
    %878 = vector.shape_cast %877 : vector<2x1x8xf32> to vector<2x8xf32>
    %879 = vector.shape_cast %876 : vector<2x8xf32> to vector<2x1x8xf32>
    tpu.vector_store %arg34[%c0_223, %c6_224, %c0_225], %879 {strides = array<i32>} : memref<2x8x8xf32, #tpu.memory_space<vmem>>, vector<2x1x8xf32>,
    %880 = vector.extract_strided_slice %548 {offsets = [0, 7, 0], sizes = [2, 1, 32], strides = [1, 1, 1]} : vector<2x8x32xf32> to vector<2x1x32xf32>
    %881 = vector.shape_cast %880 : vector<2x1x32xf32> to vector<2x32xf32>
    %cst_226 = arith.constant dense<0.000000e+00> : vector<2x32xf32>
    %882 = tpu.matmul %876, %543, %cst_226 {dimension_numbers = #tpu.dot_dimension_numbers<[1], [0], [0], [1], [0, 0, 1, 1], [], []>} : vector<2x8xf32>, vector<8x32xf32>, vector<2x32xf32> -> vector<2x32xf32>
    %883 = arith.addf %881, %882 : vector<2x32xf32>
    %884 = vector.extract_strided_slice %883 {offsets = [0, 0], sizes = [2, 8], strides = [1, 1]} : vector<2x32xf32> to vector<2x8xf32>
    %885 = arith.negf %884 : vector<2x8xf32>
    %886 = math.exp %885 : vector<2x8xf32>
    %cst_227 = arith.constant 1.000000e+00 : f32
    %887 = vector.broadcast %cst_227 : f32 to vector<2x8xf32>
    %888 = arith.addf %887, %886 : vector<2x8xf32>
    %889 = arith.divf %887, %888 : vector<2x8xf32>
    %890 = vector.extract_strided_slice %883 {offsets = [0, 8], sizes = [2, 8], strides = [1, 1]} : vector<2x32xf32> to vector<2x8xf32>
    %891 = arith.negf %890 : vector<2x8xf32>
    %892 = math.exp %891 : vector<2x8xf32>
    %cst_228 = arith.constant 1.000000e+00 : f32
    %893 = vector.broadcast %cst_228 : f32 to vector<2x8xf32>
    %894 = arith.addf %893, %892 : vector<2x8xf32>
    %895 = arith.divf %893, %894 : vector<2x8xf32>
    %896 = vector.extract_strided_slice %883 {offsets = [0, 16], sizes = [2, 8], strides = [1, 1]} : vector<2x32xf32> to vector<2x8xf32>
    %897 = math.tanh %896 : vector<2x8xf32>
    %898 = vector.extract_strided_slice %883 {offsets = [0, 24], sizes = [2, 8], strides = [1, 1]} : vector<2x32xf32> to vector<2x8xf32>
    %899 = arith.negf %898 : vector<2x8xf32>
    %900 = math.exp %899 : vector<2x8xf32>
    %cst_229 = arith.constant 1.000000e+00 : f32
    %901 = vector.broadcast %cst_229 : f32 to vector<2x8xf32>
    %902 = arith.addf %901, %900 : vector<2x8xf32>
    %903 = arith.divf %901, %902 : vector<2x8xf32>
    %904 = arith.mulf %895, %869 : vector<2x8xf32>
    %905 = arith.mulf %889, %897 : vector<2x8xf32>
    %906 = arith.addf %904, %905 : vector<2x8xf32>
    %907 = math.tanh %906 : vector<2x8xf32>
    %908 = arith.mulf %903, %907 : vector<2x8xf32>
    %909 = vector.extract_strided_slice %135 {offsets = [0, 7], sizes = [2, 1], strides = [1, 1]} : vector<2x8xf32> to vector<2x1xf32>
    %910 = vector.broadcast %909 : vector<2x1xf32> to vector<2x8xf32>
    %911 = arith.mulf %910, %908 : vector<2x8xf32>
    %cst_230 = arith.constant 1.000000e+00 : f32
    %912 = vector.broadcast %cst_230 : f32 to vector<2x1xf32>
    %913 = arith.subf %912, %909 : vector<2x1xf32>
    %914 = vector.broadcast %913 : vector<2x1xf32> to vector<2x8xf32>
    %915 = arith.mulf %914, %876 : vector<2x8xf32>
    %916 = arith.addf %911, %915 : vector<2x8xf32>
    %c0_231 = arith.constant 0 : index
    %c7_232 = arith.constant 7 : index
    %c0_233 = arith.constant 0 : index
    %917 = vector.load %arg34[%c0_231, %c7_232, %c0_233] : memref<2x8x8xf32, #tpu.memory_space<vmem>>, vector<2x1x8xf32>
    %918 = vector.shape_cast %917 : vector<2x1x8xf32> to vector<2x8xf32>
    %919 = vector.shape_cast %916 : vector<2x8xf32> to vector<2x1x8xf32>
    tpu.vector_store %arg34[%c0_231, %c7_232, %c0_233], %919 {strides = array<i32>} : memref<2x8x8xf32, #tpu.memory_space<vmem>>, vector<2x1x8xf32>,
    %c0_234 = arith.constant 0 : index
    %c0_235 = arith.constant 0 : index
    %c0_236 = arith.constant 0 : index
    %920 = vector.load %arg34[%c0_234, %c0_235, %c0_236] : memref<2x8x8xf32, #tpu.memory_space<vmem>>, vector<2x8x8xf32>
    %921 = vector.shape_cast %920 : vector<2x8x8xf32> to vector<16x8xf32>
    %c0_237 = arith.constant 0 : index
    %c0_238 = arith.constant 0 : index
    %922 = vector.load %arg29[%c0_237, %c0_238] : memref<8x8xf32, #tpu.memory_space<vmem>>, vector<8x8xf32>
    %cst_239 = arith.constant dense<0.000000e+00> : vector<16x8xf32>
    %923 = tpu.matmul %921, %922, %cst_239 {dimension_numbers = #tpu.dot_dimension_numbers<[1], [0], [0], [1], [0, 0, 1, 1], [], []>} : vector<16x8xf32>, vector<8x8xf32>, vector<16x8xf32> -> vector<16x8xf32>
    %c0_240 = arith.constant 0 : index
    %c0_241 = arith.constant 0 : index
    %924 = vector.load %arg30[%c0_240, %c0_241] : memref<1x8xf32, #tpu.memory_space<vmem>>, vector<1x8xf32>
    %925 = vector.broadcast %924 : vector<1x8xf32> to vector<16x8xf32>
    %926 = arith.addf %923, %925 : vector<16x8xf32>
    %927 = vector.shape_cast %926 : vector<16x8xf32> to vector<2x8x8xf32>
    %928 = tpu.iota {dimensions = array<i32: 1>} : vector<2x8x8xi32>
    %929 = vector.shape_cast %129 : vector<2x1xi32> to vector<2x1xi32>
    %930 = vector.broadcast %929 : vector<2x1xi32> to vector<2x8xi32>
    %931 = vector.shape_cast %930 : vector<2x8xi32> to vector<2x1x8xi32>
    %932 = vector.shape_cast %931 : vector<2x1x8xi32> to vector<2x1x8xi32>
    %933 = vector.broadcast %932 : vector<2x1x8xi32> to vector<2x8x8xi32>
    %934 = arith.cmpi slt, %928, %933 : vector<2x8x8xi32>
    %935 = arith.extui %934 : vector<2x8x8xi1> to vector<2x8x8xi32>
    %936 = arith.sitofp %935 : vector<2x8x8xi32> to vector<2x8x8xf32>
    %937 = arith.mulf %927, %936 : vector<2x8x8xf32>
    %c0_242 = arith.constant 0 : index
    %c0_243 = arith.constant 0 : index
    %c0_244 = arith.constant 0 : index
    %938 = vector.load %arg31[%c0_242, %c0_243, %c0_244] : memref<2x8x8xf32, #tpu.memory_space<vmem>>, vector<2x8x8xf32>
    tpu.vector_store %arg31[%c0_242, %c0_243, %c0_244], %937 {strides = array<i32>} : memref<2x8x8xf32, #tpu.memory_space<vmem>>, vector<2x8x8xf32>,
    return
  }
}

</mosaic_0001>

<bundles_post_ra>
// kernel: lowdim_forward.1
= control target key start
LH: loop header
LB: loop body
LE: loop exit
PB: predicated region body
PF: predicated region fallthrough
CT: control target
= control target key end

     0   :  { %s6161_s6 = smov 1   ;;  %s6162_s10 = smov 2   ;;  %s7273_s0 = inlined_call_operand.smem [shape: u32[33], index: -1, kind: input, shape index: {}] }
   0x1   :  { %s6235_s5 = sld [smem:[%s7273_s0]]   ;;  %s6163_s14 = smov 3  }
   0x2   :  { %s6240_s9 = sld [smem:[%s7273_s0 + %s6161_s6]]   ;;  %s6164_s18 = smov 4  }
   0x3   :  { %s6245_s13 = sld [smem:[%s7273_s0 + %s6162_s10]]   ;;  %s6165_s22 = smov 5  }
   0x4   :  { %s6250_s17 = sld [smem:[%s7273_s0 + %s6163_s14]]   ;;  %s6166_s26 = smov 6  }
   0x5   :  { %s6255_s21 = sld [smem:[%s7273_s0 + %s6164_s18]]   ;;  %s6167_s30 = smov 7  }
   0x6   :  { %s6260_s25 = sld [smem:[%s7273_s0 + %s6165_s22]]   ;;  %s6168_s4 = smov 8  }
   0x7   :  { %s6265_s29 = sld [smem:[%s7273_s0 + %s6166_s26]]   ;;  %s6169_s10 = smov 9  }
   0x8   :  { %7281 = sst [smem:[#allocation33_spill]] %s6240_s9  ;;  %s6170_s15 = smov 10  }
   0x9   :  { %7282 = sst [smem:[#allocation34_spill]] %s6245_s13  ;;  %s6171_s20 = smov 11  }
   0xa   :  { %s6270_s3 = sld [smem:[%s7273_s0 + %s6167_s30]]   ;;  %s6172_s26 = smov 12  }
   0xb   :  { %7283 = sst [smem:[#allocation35_spill]] %s6255_s21  ;;  %s6173_s1 = smov 13  }
   0xc   :  { %s6275_s8 = sld [smem:[%s7273_s0 + %s6168_s4]]   ;;  %s6174_s7 = smov 14  }
   0xd   :  { %s6280_s14 = sld [smem:[%s7273_s0 + %s6169_s10]]   ;;  %s6176_s22 = smov 16  }
   0xe   :  { %s6285_s19 = sld [smem:[%s7273_s0 + %s6170_s15]]   ;;  %s6175_s15 = smov 15  }
   0xf   :  { %s6290_s24 = sld [smem:[%s7273_s0 + %s6171_s20]]   ;;  %s6177_s28 = smov 17  }
  0x10   :  { %7284 = sst [smem:[#allocation36_spill]] %s6270_s3 }
  0x11   :  { %s6295_s30 = sld [smem:[%s7273_s0 + %s6172_s26]]  }
  0x12   :  { %s6300_s6 = sld [smem:[%s7273_s0 + %s6173_s1]]  }
  0x13   :  { %s6305_s12 = sld [smem:[%s7273_s0 + %s6174_s7]]   ;;  %s6178_s7 = smov 18  }
  0x14   :  { %s6310_s20 = sld [smem:[%s7273_s0 + %s6175_s15]]   ;;  %s6179_s15 = smov 19  }
  0x15   :  { %7285 = sst [smem:[#allocation37_spill]] %s6290_s24 }
  0x16   :  { %s6315_s27 = sld [smem:[%s7273_s0 + %s6176_s22]]   ;;  %s6180_s22 = smov 20  }
  0x17   :  { %s6320_s4 = sld [smem:[%s7273_s0 + %s6177_s28]]   ;;  %s6181_s28 = smov 21  }
  0x18   :  { %s6325_s13 = sld [smem:[%s7273_s0 + %s6178_s7]]   ;;  %s6182_s7 = smov 22  }
  0x19   :  { %s6335_s24 = sld [smem:[%s7273_s0 + %s6180_s22]]   ;;  %s6184_s22 = smov 24  }
  0x1a   :  { %7286 = sst [smem:[#allocation38_spill]] %s6310_s20 }
  0x1b   :  { %s6330_s20 = sld [smem:[%s7273_s0 + %s6179_s15]]   ;;  %s6183_s15 = smov 23  }
  0x1c   :  { %s6345_s9 = sld [smem:[%s7273_s0 + %s6182_s7]]   ;;  %s6186_s7 = smov 26  }
  0x1d   :  { %7287 = sst [smem:[#allocation39_spill]] %s6320_s4 }
  0x1e   :  { %s6340_s4 = sld [smem:[%s7273_s0 + %s6181_s28]]   ;;  %s6185_s28 = smov 25  }
  0x1f   :  { %s6355_s21 = sld [smem:[%s7273_s0 + %s6184_s22]]   ;;  %s6188_s22 = smov 28  }
  0x21   :  { %7288 = sst [smem:[#allocation40_spill]] %s6330_s20 }
  0x22   :  { %7290 = sst [smem:[#allocation42_spill]] %s6345_s9 }
  0x23   :  { %s6350_s20 = sld [smem:[%s7273_s0 + %s6183_s15]]   ;;  %s6187_s15 = smov 27  }
  0x24   :  { %7289 = sst [smem:[#allocation41_spill]] %s6340_s4 }
  0x25   :  { %7292 = sst [smem:[#allocation44_spill]] %s6355_s21 }
  0x26   :  { %s6360_s4 = sld [smem:[%s7273_s0 + %s6185_s28]]   ;;  %s6189_s28 = smov 29  }
  0x27   :  { %s6365_s9 = sld [smem:[%s7273_s0 + %s6186_s7]]   ;;  %s6190_s7 = smov 30  }
  0x28   :  { %s6375_s21 = sld [smem:[%s7273_s0 + %s6188_s22]]   ;;  %s6192_s22 = smov 32  }
  0x29   :  { %7291 = sst [smem:[#allocation43_spill]] %s6350_s20 }
  0x2a   :  { %s6370_s20 = sld [smem:[%s7273_s0 + %s6187_s15]]   ;;  %s6191_s15 = smov 31  }
  0x2b   :  { %s6395_s3 = sld [smem:[%s7273_s0 + %s6192_s22]]  }
  0x2c   :  { %7293 = sst [smem:[#allocation45_spill]] %s6360_s4 }
  0x2d   :  { %7294 = sst [smem:[#allocation46_spill]] %s6365_s9 }
  0x2e   :  { %s6380_s4 = sld [smem:[%s7273_s0 + %s6189_s28]]  }
  0x2f   :  { %s6385_s9 = sld [smem:[%s7273_s0 + %s6190_s7]]  }
  0x30   :  { %7295 = sst [smem:[#allocation47_spill]] %s6370_s20 }
  0x31   :  { %s6390_s20 = sld [smem:[%s7273_s0 + %s6191_s15]]  }
  0x32   :  { %71 = vsyncpa [#allocation5], 0 }
  0x33   :  { %72 = vsyncpa [#allocation8], 0 }
  0x34   :  { %73 = vsyncpa [#allocation11], 0 }
  0x35   :  { %74 = vsyncpa [#allocation14], 0 }
  0x36   :  { %75 = vsyncpa [#allocation17], 0 }
  0x37   :  { %76 = vsyncpa [#allocation20], 0 }
  0x38   :  { %77 = vsyncpa [#allocation6], 0 }
  0x39   :  { %78 = vsyncpa [#allocation24], 0  ;;  %s6193_s28 = smov [#allocation7]   ;;  %s6194_s2 = smov [#allocation10]  }
  0x3a   :  { %s109_s1 = sshll.u32 %s6193_s28, 4  ;;  %s133_s7 = sshll.u32 %s6194_s2, 4  ;;  %s110_s1 = int_to_ptr.vmem [resolvable:$true] %s109_s1  ;;  %s134_s7 = int_to_ptr.vmem [resolvable:$true] %s133_s7 }
  0x3b   :  { %s5859_s10 = scalar_lea.hbm %s6275_s8, 16 }
  0x3c   :  { %p5860_p0 = scmp.ne.s32.totalorder %s6275_s8, %s5859_s10  ;;  %p5863_p1 = scmp.lt.u32.totalorder %s5859_s10, %s6275_s8 }
  0x3e   :  { %p5865_p2 = pnand %p5863_p1, %p5860_p0 }
  0x40   :  { %5868 = shalt.err (!%p5865_p2)
}
  0x41   :  { %s5869_s0 = scalar_lea.vmem %s110_s1, 16  ;;  %s5873_s11 = scalar_lea.vmem %s110_s1, 32 }
  0x42   :  { %p5870_p3 = scmp.ne.s32.totalorder %s110_s1, %s5869_s0  ;;  %p5874_p4 = scmp.lt.s32.totalorder %s110_s1, %s110_s1 }
  0x43   :  { %p5875_p5 = scmp.lt.s32.totalorder %s5873_s11, %s5869_s0 }
  0x45   :  { %p5876_p6 = por %p5875_p5, %p5874_p4 }
  0x47   :  { %p5877_p7 = pnand %p5876_p6, %p5870_p3 }
  0x49   :  { %5880 = shalt.err (!%p5877_p7)
}
  0x4a   :  { %112 = dma.hbm_to_vmem [thread:$0]  %s6275_s8, 16, %s110_s1, [#allocation8]  }
  0x4b   :  { %s5881_s15 = scalar_lea.hbm %s6295_s30, 16 }
  0x4c   :  { %p5882_p8 = scmp.ne.s32.totalorder %s6295_s30, %s5881_s15  ;;  %p5885_p9 = scmp.lt.u32.totalorder %s5881_s15, %s6295_s30 }
  0x4e   :  { %p5887_p10 = pnand %p5885_p9, %p5882_p8 }
  0x50   :  { %5890 = shalt.err (!%p5887_p10)
}
  0x51   :  { %s5891_s16 = scalar_lea.vmem %s134_s7, 16  ;;  %s5895_s18 = scalar_lea.vmem %s134_s7, 32 }
  0x52   :  { %p5892_p11 = scmp.ne.s32.totalorder %s134_s7, %s5891_s16  ;;  %p5896_p12 = scmp.lt.s32.totalorder %s134_s7, %s134_s7 }
  0x53   :  { %p5897_p13 = scmp.lt.s32.totalorder %s5895_s18, %s5891_s16 }
  0x55   :  { %p5898_p0 = por %p5897_p13, %p5896_p12 }
  0x57   :  { %p5899_p1 = pnand %p5898_p0, %p5892_p11 }
  0x59   :  { %5902 = shalt.err (!%p5899_p1)
}
  0x5a   :  { %136 = dma.hbm_to_vmem [thread:$0]  %s6295_s30, 16, %s134_s7, [#allocation11]  }
  0x5b   :  { %s6195_s22 = smov [#allocation13]   ;;  %s6196_s23 = smov [#allocation16]  }
  0x5c   :  { %s153_s8 = sshll.u32 %s6195_s22, 4  ;;  %s177_s26 = sshll.u32 %s6196_s23, 4  ;;  %s154_s8 = int_to_ptr.vmem [resolvable:$true] %s153_s8  ;;  %s178_s26 = int_to_ptr.vmem [resolvable:$true] %s177_s26 }
  0x5d   :  { %s5903_s28 = scalar_lea.hbm %s6305_s12, 16 }
  0x5e   :  { %p5904_p2 = scmp.ne.s32.totalorder %s6305_s12, %s5903_s28  ;;  %p5907_p3 = scmp.lt.u32.totalorder %s5903_s28, %s6305_s12 }
  0x60   :  { %p5909_p4 = pnand %p5907_p3, %p5904_p2 }
  0x62   :  { %5912 = shalt.err (!%p5909_p4)
}
  0x63   :  { %s5913_s1 = scalar_lea.vmem %s154_s8, 16  ;;  %s5917_s2 = scalar_lea.vmem %s154_s8, 32 }
  0x64   :  { %p5914_p5 = scmp.ne.s32.totalorder %s154_s8, %s5913_s1  ;;  %p5918_p6 = scmp.lt.s32.totalorder %s154_s8, %s154_s8 }
  0x65   :  { %p5919_p7 = scmp.lt.s32.totalorder %s5917_s2, %s5913_s1 }
  0x67   :  { %p5920_p8 = por %p5919_p7, %p5918_p6 }
  0x69   :  { %p5921_p9 = pnand %p5920_p8, %p5914_p5 }
  0x6b   :  { %5924 = shalt.err (!%p5921_p9)
}
  0x6c   :  { %156 = dma.hbm_to_vmem [thread:$0]  %s6305_s12, 16, %s154_s8, [#allocation14]  }
  0x6d   :  { %s5925_s30 = scalar_lea.hbm %s6325_s13, 16 }
  0x6e   :  { %p5926_p10 = scmp.ne.s32.totalorder %s6325_s13, %s5925_s30  ;;  %p5929_p11 = scmp.lt.u32.totalorder %s5925_s30, %s6325_s13 }
  0x70   :  { %p5931_p12 = pnand %p5929_p11, %p5926_p10 }
  0x72   :  { %5934 = shalt.err (!%p5931_p12)
}
  0x73   :  { %s5935_s7 = scalar_lea.vmem %s178_s26, 16  ;;  %s5939_s10 = scalar_lea.vmem %s178_s26, 32 }
  0x74   :  { %p5936_p13 = scmp.ne.s32.totalorder %s178_s26, %s5935_s7  ;;  %p5940_p0 = scmp.lt.s32.totalorder %s178_s26, %s178_s26 }
  0x75   :  { %p5941_p1 = scmp.lt.s32.totalorder %s5939_s10, %s5935_s7 }
  0x77   :  { %p5942_p2 = por %p5941_p1, %p5940_p0 }
  0x79   :  { %p5943_p3 = pnand %p5942_p2, %p5936_p13 }
  0x7b   :  { %5946 = shalt.err (!%p5943_p3)
}
  0x7c   :  { %180 = dma.hbm_to_vmem [thread:$0]  %s6325_s13, 16, %s178_s26, [#allocation17]  }
  0x7d   :  { %s6197_s0 = smov [#allocation19]   ;;  %s6198_s11 = smov [#allocation4]  }
  0x7e   :  { %s213_s12 = sshll.u32 %s6197_s0, 4  ;;  %s97_s15 = sshll.u32 %s6198_s11, 4  ;;  %s214_s12 = int_to_ptr.vmem [resolvable:$true] %s213_s12  ;;  %s98_s15 = int_to_ptr.vmem [resolvable:$true] %s97_s15 }
  0x7f   :  { %s5947_s16 = scalar_lea.hbm %s6375_s21, 16 }
  0x80   :  { %p5948_p4 = scmp.ne.s32.totalorder %s6375_s21, %s5947_s16  ;;  %p5951_p5 = scmp.lt.u32.totalorder %s5947_s16, %s6375_s21 }
  0x82   :  { %p5953_p6 = pnand %p5951_p5, %p5948_p4 }
  0x84   :  { %5956 = shalt.err (!%p5953_p6)
}
  0x85   :  { %s5957_s18 = scalar_lea.vmem %s214_s12, 16  ;;  %s5961_s22 = scalar_lea.vmem %s214_s12, 32 }
  0x86   :  { %p5958_p7 = scmp.ne.s32.totalorder %s214_s12, %s5957_s18  ;;  %p5962_p8 = scmp.lt.s32.totalorder %s214_s12, %s214_s12 }
  0x87   :  { %p5963_p9 = scmp.lt.s32.totalorder %s5961_s22, %s5957_s18 }
  0x89   :  { %p5964_p10 = por %p5963_p9, %p5962_p8 }
  0x8b   :  { %p5965_p11 = pnand %p5964_p10, %p5958_p7 }
  0x8d   :  { %5968 = shalt.err (!%p5965_p11)
}
  0x8e   :  { %216 = dma.hbm_to_vmem [thread:$0]  %s6375_s21, 16, %s214_s12, [#allocation20]  }
  0x8f   :  { %s5969_s13 = scalar_lea.hbm %s6265_s29, 16 }
  0x90   :  { %p5970_p12 = scmp.ne.s32.totalorder %s6265_s29, %s5969_s13  ;;  %p5973_p13 = scmp.lt.u32.totalorder %s5969_s13, %s6265_s29 }
  0x92   :  { %p5975_p0 = pnand %p5973_p13, %p5970_p12 }
  0x94   :  { %5978 = shalt.err (!%p5975_p0)
}
  0x95   :  { %s5979_s8 = scalar_lea.vmem %s98_s15, 16  ;;  %s5983_s23 = scalar_lea.vmem %s98_s15, 32 }
  0x96   :  { %p5980_p1 = scmp.ne.s32.totalorder %s98_s15, %s5979_s8  ;;  %p5984_p2 = scmp.lt.s32.totalorder %s98_s15, %s98_s15 }
  0x97   :  { %p5985_p3 = scmp.lt.s32.totalorder %s5983_s23, %s5979_s8 }
  0x99   :  { %p5986_p4 = por %p5985_p3, %p5984_p2 }
  0x9b   :  { %p5987_p5 = pnand %p5986_p4, %p5980_p1 }
  0x9d   :  { %5990 = shalt.err (!%p5987_p5)
}
  0x9e   :  { %100 = dma.hbm_to_vmem [thread:$0]  %s6265_s29, 16, %s98_s15, [#allocation5]  }
  0x9f   :  { %s6199_s26 = smov [#allocation9]   ;;  %s6200_s28 = smov [#allocation12]  }
  0xa0   :  { %s121_s21 = sshll.u32 %s6199_s26, 4  ;;  %s143_s1 = sshll.u32 %s6200_s28, 4  ;;  %s122_s21 = int_to_ptr.vmem [resolvable:$true] %s121_s21  ;;  %s144_s1 = int_to_ptr.vmem [resolvable:$true] %s143_s1 }
  0xa1   :  { %s5991_s2 = scalar_lea.hbm %s6285_s19, 16 }
  0xa2   :  { %p5992_p6 = scmp.ne.s32.totalorder %s6285_s19, %s5991_s2  ;;  %p5995_p7 = scmp.lt.u32.totalorder %s5991_s2, %s6285_s19 }
  0xa4   :  { %p5997_p8 = pnand %p5995_p7, %p5992_p6 }
  0xa6   :  { %6000 = shalt.err (!%p5997_p8)
}
  0xa7   :  { %s6001_s30 = scalar_lea.vmem %s122_s21, 16  ;;  %s6005_s7 = scalar_lea.vmem %s122_s21, 32 }
  0xa8   :  { %p6002_p9 = scmp.ne.s32.totalorder %s122_s21, %s6001_s30  ;;  %p6006_p10 = scmp.lt.s32.totalorder %s122_s21, %s122_s21 }
  0xa9   :  { %p6007_p11 = scmp.lt.s32.totalorder %s6005_s7, %s6001_s30 }
  0xab   :  { %p6008_p12 = por %p6007_p11, %p6006_p10 }
  0xad   :  { %p6009_p13 = pnand %p6008_p12, %p6002_p9 }
  0xaf   :  { %6012 = shalt.err (!%p6009_p13)
}
  0xb0   :  { %124 = dma.hbm_to_vmem [thread:$0]  %s6285_s19, 16, %s122_s21, [#allocation8]  }
  0xb1   :  { %s6013_s29 = scalar_lea.hbm %s6300_s6, 16 }
  0xb2   :  { %p6014_p0 = scmp.ne.s32.totalorder %s6300_s6, %s6013_s29  ;;  %p6017_p1 = scmp.lt.u32.totalorder %s6013_s29, %s6300_s6 }
  0xb4   :  { %p6019_p2 = pnand %p6017_p1, %p6014_p0 }
  0xb6   :  { %6022 = shalt.err (!%p6019_p2)
}
  0xb7   :  { %s6023_s10 = scalar_lea.vmem %s144_s1, 16  ;;  %s6027_s0 = scalar_lea.vmem %s144_s1, 32 }
  0xb8   :  { %p6024_p3 = scmp.ne.s32.totalorder %s144_s1, %s6023_s10  ;;  %p6028_p4 = scmp.lt.s32.totalorder %s144_s1, %s144_s1 }
  0xb9   :  { %p6029_p5 = scmp.lt.s32.totalorder %s6027_s0, %s6023_s10 }
  0xbb   :  { %p6030_p6 = por %p6029_p5, %p6028_p4 }
  0xbd   :  { %p6031_p7 = pnand %p6030_p6, %p6024_p3 }
  0xbf   :  { %6034 = shalt.err (!%p6031_p7)
}
  0xc0   :  { %146 = dma.hbm_to_vmem [thread:$0]  %s6300_s6, 16, %s144_s1, [#allocation11]  }
  0xc1   :  { %s6201_s12 = smov [#allocation15]   ;;  %s6202_s11 = smov [#allocation18]  }
  0xc2   :  { %s165_s19 = sshll.u32 %s6201_s12, 4  ;;  %s189_s15 = sshll.u32 %s6202_s11, 4  ;;  %s166_s19 = int_to_ptr.vmem [resolvable:$true] %s165_s19  ;;  %s190_s15 = int_to_ptr.vmem [resolvable:$true] %s189_s15 }
  0xc3   :  { %s6035_s16 = scalar_lea.hbm %s6315_s27, 16 }
  0xc4   :  { %p6036_p8 = scmp.ne.s32.totalorder %s6315_s27, %s6035_s16  ;;  %p6039_p9 = scmp.lt.u32.totalorder %s6035_s16, %s6315_s27 }
  0xc6   :  { %p6041_p10 = pnand %p6039_p9, %p6036_p8 }
  0xc8   :  { %6044 = shalt.err (!%p6041_p10)
}
  0xc9   :  { %s6045_s18 = scalar_lea.vmem %s166_s19, 16  ;;  %s6049_s22 = scalar_lea.vmem %s166_s19, 32 }
  0xca   :  { %p6046_p11 = scmp.ne.s32.totalorder %s166_s19, %s6045_s18  ;;  %p6050_p12 = scmp.lt.s32.totalorder %s166_s19, %s166_s19 }
  0xcb   :  { %p6051_p13 = scmp.lt.s32.totalorder %s6049_s22, %s6045_s18 }
  0xcd   :  { %p6052_p0 = por %p6051_p13, %p6050_p12 }
  0xcf   :  { %p6053_p1 = pnand %p6052_p0, %p6046_p11 }
  0xd1   :  { %6056 = shalt.err (!%p6053_p1)
}
  0xd2   :  { %168 = dma.hbm_to_vmem [thread:$0]  %s6315_s27, 16, %s166_s19, [#allocation14]  }
  0xd3   :  { %s6057_s6 = scalar_lea.hbm %s6335_s24, 16 }
  0xd4   :  { %p6058_p2 = scmp.ne.s32.totalorder %s6335_s24, %s6057_s6  ;;  %p6061_p3 = scmp.lt.u32.totalorder %s6057_s6, %s6335_s24 }
  0xd6   :  { %p6063_p4 = pnand %p6061_p3, %p6058_p2 }
  0xd8   :  { %6066 = shalt.err (!%p6063_p4)
}
  0xd9   :  { %s6067_s13 = scalar_lea.vmem %s190_s15, 16  ;;  %s6071_s8 = scalar_lea.vmem %s190_s15, 32 }
  0xda   :  { %p6068_p5 = scmp.ne.s32.totalorder %s190_s15, %s6067_s13  ;;  %p6072_p6 = scmp.lt.s32.totalorder %s190_s15, %s190_s15 }
  0xdb   :  { %p6073_p7 = scmp.lt.s32.totalorder %s6071_s8, %s6067_s13 }
  0xdd   :  { %p6074_p8 = por %p6073_p7, %p6072_p6 }
  0xdf   :  { %p6075_p9 = pnand %p6074_p8, %p6068_p5 }
  0xe1   :  { %6078 = shalt.err (!%p6075_p9)
}
  0xe2   :  { %192 = dma.hbm_to_vmem [thread:$0]  %s6335_s24, 16, %s190_s15, [#allocation17]  }
  0xe3   :  { %s6203_s23 = smov [#allocation21]   ;;  %s6079_s26 = scalar_lea.hbm %s6385_s9, 16 }
  0xe4   :  { %s225_s27 = sshll.u32 %s6203_s23, 4  ;;  %p6080_p10 = scmp.ne.s32.totalorder %s6385_s9, %s6079_s26  ;;  %s226_s27 = int_to_ptr.vmem [resolvable:$true] %s225_s27 }
  0xe5   :  { %p6083_p11 = scmp.lt.u32.totalorder %s6079_s26, %s6385_s9 }
  0xe7   :  { %p6085_p12 = pnand %p6083_p11, %p6080_p10 }
  0xe9   :  { %6088 = shalt.err (!%p6085_p12)
}
  0xea   :  { %s6089_s21 = scalar_lea.vmem %s226_s27, 16  ;;  %s6093_s28 = scalar_lea.vmem %s226_s27, 32 }
  0xeb   :  { %p6090_p13 = scmp.ne.s32.totalorder %s226_s27, %s6089_s21  ;;  %p6094_p0 = scmp.lt.s32.totalorder %s226_s27, %s226_s27 }
  0xec   :  { %p6095_p1 = scmp.lt.s32.totalorder %s6093_s28, %s6089_s21 }
  0xee   :  { %p6096_p2 = por %p6095_p1, %p6094_p0 }
  0xf0   :  { %p6097_p3 = pnand %p6096_p2, %p6090_p13 }
  0xf2   :  { %6100 = shalt.err (!%p6097_p3)
}
  0xf3   :  { %228 = dma.hbm_to_vmem [thread:$0]  %s6385_s9, 16, %s226_s27, [#allocation20]  }
  0xf4   :  { %6145 = dma.done.wait [#allocation5], 16  }
  0xf5   :  { %6146 = vsyncadd [#allocation5], 4294967280 }
  0xf6   :  { %6147 = dma.done.wait [#allocation8], 32  }
  0xf7   :  { %6148 = vsyncadd [#allocation8], 4294967264 }
  0xf8   :  { %6149 = dma.done.wait [#allocation11], 32  }
  0xf9   :  { %6150 = vsyncadd [#allocation11], 4294967264 }
  0xfa   :  { %6151 = dma.done.wait [#allocation14], 32  }
  0xfb   :  { %6152 = vsyncadd [#allocation14], 4294967264 }
  0xfc   :  { %6153 = dma.done.wait [#allocation17], 32  }
  0xfd   :  { %6154 = vsyncadd [#allocation17], 4294967264 }
  0xfe   :  { %6155 = dma.done.wait [#allocation20], 32  }
  0xff   :  { %6156 = vsyncadd [#allocation20], 4294967264  ;;  %v6204_v0 = vmov 0   ;;  %v262_v1 = vld [vmem:[%s6235_s5] sm:$0xff]  ;;  %v279_v3 = vld [vmem:[%s6250_s17 + $0x8] sm:$0xff]  ;;  %v264_v21 = vlaneseq  ;;  %vm287_vm0 = vcmask 523264  }
 0x100   :  { %5559 = vset.pattern.permute.xlu0 %v6204_v0  ;;  %5560 = vset.pattern.permute.xlu1 %v6204_v0  ;;  %v278_v2 = vld [vmem:[%s6250_s17] sm:$0xff]  ;;  %v280_v4 = vld [vmem:[%s6250_s17 + $0x10] sm:$0xff]  ;;  %v281_v5 = vld [vmem:[%s6250_s17 + $0x18] sm:$0xff]  ;;  %v6205_v24 = vmov 0.0   ;;  %s7297_s9 = sld [smem:[#allocation35_spill]]  ;;  %vm380_vm3 = vcmask 261120  }
 0x101   :  { %267 = vperm.xlu0 %5559, %v262_v1   ;;  %v263_v6 = vld [vmem:[%s6235_s5 + $0x8] sm:$0xff]  ;;  %v5357_v7 = vpack.c.bf16 %v279_v3, %v278_v2  ;;  %v5361_v8 = vpack.c.bf16 %v281_v5, %v280_v4  ;;  %v282_v9 = vld [vmem:[%s6250_s17 + $0x20] sm:$0xff]  ;;  %v284_v12 = vld [vmem:[%s6250_s17 + $0x30] sm:$0xff]  ;;  %v6456_v22 = vand.u32 127, %v264_v21  ;;  %s7296_s5 = sld [smem:[#allocation36_spill]]  ;;  %vm6206_vm4 = vmmov 0  }
 0x102   :  { %v283_v10 = vld [vmem:[%s6250_s17 + $0x28] sm:$0xff]  ;;  %v285_v13 = vld [vmem:[%s6250_s17 + $0x38] sm:$0xff]  ;;  %v369_v14 = vld [vmem:[%s6260_s25] sm:$0xff]  ;;  %s7298_s17 = sld [smem:[#allocation33_spill]]  ;;  %v6207_v60 = vmov 1966171168  }
 0x103   :  { %5358 = vmatprep.subr.bf16.mxu0 %v5357_v7  ;;  %v5365_v11 = vpack.c.bf16 %v283_v10, %v282_v9  ;;  %v370_v15 = vld [vmem:[%s6260_s25 + $0x8] sm:$0xff]  ;;  %v5369_v17 = vpack.c.bf16 %v285_v13, %v284_v12  ;;  %v548_v18 = vld [vmem:[%s6280_s14] sm:$0xff]  ;;  %v371_v28 = vld [vmem:[%s6260_s25 + $0x10] sm:$0xff]  ;;  %v792_v61 = vunpack.c.l.s4 %v6207_v60  ;;  %v6506_v63 = vshrl.u32 %v264_v21, 7  ;;  %s7301_s24 = sld [smem:[#allocation39_spill]]  ;;  %s7302_s1 = sld [smem:[#allocation41_spill]] }
 0x104   :  { %5360 = vmatpush3.bf16.msra.mxu0 %v5357_v7  ;;  %v5373_v16 = vpack.c.bf16 %v370_v15, %v369_v14  ;;  %v549_v19 = vld [vmem:[%s6280_s14 + $0x8] sm:$0xff]  ;;  %v372_v29 = vld [vmem:[%s6260_s25 + $0x18] sm:$0xff]  ;;  %v550_v31 = vld [vmem:[%s6280_s14 + $0x10] sm:$0xff]  ;;  %vm831_vm5 = vcmask 64512   ;;  %s7299_s25 = sld [smem:[#allocation37_spill]]  ;;  %s7303_s2 = sld [smem:[#allocation42_spill]] }
 0x105   :  { %270 = vperm.xlu0 %5559, %v263_v6   ;;  %5362 = vmatprep.subr.bf16.mxu0 %v5361_v8  ;;  %v5389_v20 = vpack.c.bf16 %v549_v19, %v548_v18  ;;  %v5377_v30 = vpack.c.bf16 %v372_v29, %v371_v28  ;;  %v551_v32 = vld [vmem:[%s6280_s14 + $0x18] sm:$0xff]  ;;  %v4869_v45 = vld [vmem:[#allocation9] ss:$0 sm:$0xff]  ;;  %v4866_v51 = vld [vmem:[#allocation7] ss:$0 sm:$0xff]  ;;  %v793_v62 = vunpack.c.0.s8 %v792_v61  ;;  %v6515_v7 = vsub.s32 0, %v6506_v63 }
 0x106   :  { %5374 = vmatprep.subr.bf16.mxu1 %v5373_v16  ;;  %v5393_v33 = vpack.c.bf16 %v551_v32, %v550_v31  ;;  %v286_v37 = vld [vmem:[%s7297_s9] sm:$0xff]  ;;  %s7300_s14 = sld [smem:[#allocation38_spill]]  ;;  %s7304_s30 = sld [smem:[#allocation40_spill]]  ;;  %vm1629_vm7 = vcmask 1041409   ;;  %vm1677_vm8 = vcmask 253952   ;;  %vm3411_vm11 = vcmask 57344  }
 0x107   :  { %5376 = vmatpush3.bf16.msra.mxu1 %v5373_v16  ;;  %v462_v34 = vld [vmem:[%s7296_s5] sm:$0xff]  ;;  %v463_v35 = vld [vmem:[%s7296_s5 + $0x8] sm:$0xff]  ;;  %v464_v39 = vld [vmem:[%s7296_s5 + $0x10] sm:$0xff]  ;;  %v6510_v1 = vsub.s32 %v793_v62, %v6506_v63  ;;  %s7305_s7 = sld [smem:[#allocation43_spill]]  ;;  %s7306_s29 = sld [smem:[#allocation34_spill]] }
 0x108   :  { %5364 = vmatpush3.bf16.msra.mxu0 %v5361_v8  ;;  %5378 = vmatprep.subr.bf16.mxu1 %v5377_v30  ;;  %v5381_v36 = vpack.c.bf16 %v463_v35, %v462_v34  ;;  %v465_v40 = vld [vmem:[%s7296_s5 + $0x18] sm:$0xff]  ;;  %v4863_v54 = vld [vmem:[#allocation4] ss:$0 sm:$0xff]  ;;  %s6209_s10 = smov 64   ;;  %s6210_s0 = smov 32  }
 0x109   :  { %5366 = vmatprep.subr.bf16.mxu0 %v5365_v11  ;;  %v5385_v44 = vpack.c.bf16 %v465_v40, %v464_v39  ;;  %v788_v0 = vld [vmem:[%s7298_s17] sm:$0x3]  ;;  %s6211_s12 = smov 96   ;;  %s7307_s19 = sld [smem:[#allocation44_spill]] }
 0x10a   :  { %v789_v2 = vsub.f32 1.0, %v788_v0  ;;  %v1000_v34 = vld [vmem:[%s7299_s25] sm:$0xff]  ;;  %v1001_v35 = vld [vmem:[%s7299_s25 + $0x8] sm:$0xff]  ;;  %s7308_s11 = sld [smem:[#allocation45_spill]]  ;;  %s7309_s15 = sld [smem:[#allocation46_spill]] }
 0x10b   :  { %5380 = vmatpush3.bf16.msra.mxu1 %v5377_v30  ;;  %s7310_s16 = sld [smem:[#allocation47_spill]]  ;;  %s6219_s18 = smov 112  }
 0x10c   :  { %5368 = vmatpush3.bf16.msra.mxu0 %v5365_v11  ;;  %5382 = vmatprep.subr.bf16.mxu1 %v5381_v36  ;;  %v797_v3 = vrot.slane %v789_v2, %v6510_v1  ;;  %s6220_s22 = smov 8   ;;  %s6221_s6 = smov 16  }
 0x10d   :  { %5370 = vmatprep.subr.bf16.mxu0 %v5369_v17  ;;  %s6222_s13 = smov 120   ;;  %s6223_s8 = smov 104  }
 0x10e   :  { %v805_v4 = vrot.slane %v797_v3, %v6510_v1  ;;  %v798_v5 = vcombine.high %v797_v3, %v797_v3 }
 0x110   :  { %5372 = vmatpush3.bf16.msra.mxu0 %v5369_v17  ;;  %v815_v6 = vmul.f32 -1e+09, %v805_v4  ;;  %v812_v8 = vrot.slane %v798_v5, %v6510_v1 }
 0x111   :  { %5390 = vmatprep.subr.bf16.mxu0 %v5389_v20 }
 0x112   :  { %v822_v9 = vrot.slane %v815_v6, %v6515_v7  ;;  %v816_v10 = vmul.f32 -1e+09, %v812_v8  ;;  %v1139_v8 = vld [vmem:[%s7300_s14] sm:$0xff] }
 0x114   :  { %v826_v15 = vrot.slane %v816_v10, %v6515_v7  ;;  %v1141_v10 = vld [vmem:[%s7300_s14 + $0x10] sm:$0xff] }
 0x180   :  { %v268_v23 = vpop.permute.xlu0 %267 }
 0x181   :  { %vm272_vm1 = vcmp.eq.s32.totalorder %v268_v23, %v6456_v22 }
 0x182   :  { %v4859_v25 = vsel %vm272_vm1, 1.0, %v6205_v24 }
 0x183   :  { %5100 = vmatprep.mubr.msk.f32.mxu0 %vm287_vm0, %v4859_v25 }
 0x184   :  { %v271_v26 = vpop.permute.xlu0 %270 }
 0x185   :  { %vm273_vm2 = vcmp.eq.s32.totalorder %v271_v26, %v6456_v22 }
 0x186   :  { %v4860_v27 = vsel %vm273_vm2, 1.0, %v6205_v24 }
 0x187   :  { %5101 = vmatmul.mubr.msk.f32.vlgmr.msra.gmra.mrb[0].mxu0 %vm287_vm0, %v4860_v27 }
 0x188   :  { %5392 = vmatpush3.bf16.msra.mxu0 %v5389_v20 }
 0x189   :  { %5394 = vmatprep.subr.bf16.mxu0 %v5393_v33 }
 0x18c   :  { %5396 = vmatpush3.bf16.msra.mxu0 %v5393_v33 }
 0x18d   :  { %5146 = vmatprep.subr.mxu0 %v6205_v24 }
 0x25a   :  { %v5102_v38 = vpop.f32.mrb[0].mxu0 }
 0x25b   :  { %v360_v41 = vpop.f32.mrb[1].mxu0  ;;  %v6476_v43 = vadd.f32 %v5102_v38, %v286_v37 }
 0x25c   :  { %v6474_v42 = vadd.f32 %v360_v41, %v286_v37 }
 0x25e   :  { %5111 = vmatprep.mubr.msk.f32.mxu1 %vm380_vm3, %v6474_v42  ;;  %5133 = vmatprep.mubr.msk.f32.mxu0 %vm380_vm3, %v6474_v42 }
 0x25f   :  { %5112 = vmatmul.mubr.msk.f32.vlgmr.msra.gmra.mrb[0].mxu1 %vm380_vm3, %v6476_v43  ;;  %5134 = vmatmul.mubr.msk.f32.vlgmr.msra.gmra.mrb[2].mxu0 %vm380_vm3, %v6476_v43 }
 0x260   :  { %5384 = vmatpush3.bf16.msra.mxu1 %v5381_v36  ;;  %5122 = vmatprep.mubr.msk.f32.mxu1 %vm380_vm3, %v6474_v42  ;;  %v5397_v36 = vpack.c.bf16 %v1001_v35, %v1000_v34  ;;  %v1251_v35 = vld [vmem:[%s7301_s24 + $0x10] sm:$0xff] }
 0x261   :  { %5386 = vmatprep.subr.bf16.mxu1 %v5385_v44  ;;  %5148 = vmatprep.mubr.msk.f32.mxu0 %vm6206_vm4, %v6205_v24 }
 0x264   :  { %5388 = vmatpush3.bf16.msra.mxu1 %v5385_v44 }
 0x265   :  { %5136 = vmatprep.subr.mxu1 %v6205_v24 }
 0x267   :  { %5123 = vmatmul.mubr.msk.f32.vlgmr.msra.gmra.mrb[2].mxu1 %vm380_vm3, %v6476_v43 }
 0x268   :  { %5138 = vmatprep.mubr.msk.f32.mxu1 %vm6206_vm4, %v6205_v24 }
 0x332   :  { %v5113_v46 = vpop.f32.mrb[0].mxu1  ;;  %v5135_v47 = vpop.f32.mrb[2].mxu0 }
 0x333   :  { %v453_v48 = vpop.f32.mrb[1].mxu1  ;;  %v625_v49 = vpop.f32.mrb[3].mxu0  ;;  %v459_v58 = vadd.f32 %v5113_v46, %v4863_v54  ;;  %v631_v59 = vadd.f32 %v5135_v47, %v4869_v45  ;;  %v1003_v46 = vld [vmem:[%s7299_s25 + $0x18] sm:$0xff] }
 0x334   :  { %v626_v50 = vadd.f32 %v4869_v45, %v625_v49  ;;  %v454_v56 = vadd.f32 %v4863_v54, %v453_v48  ;;  %v1002_v45 = vld [vmem:[%s7299_s25 + $0x10] sm:$0xff] }
 0x335   :  { %v5401_v47 = vpack.c.bf16 %v1003_v46, %v1002_v45  ;;  %v4883_v46 = vld [vmem:[#allocation15] ss:$0 sm:$0xff] }
 0x336   :  { %5147 = vmatpush3.msra.mxu0 %v626_v50 }
 0x337   :  { %5398 = vmatprep.subr.bf16.mxu0 %v5397_v36 }
 0x33a   :  { %v5124_v52 = vpop.f32.mrb[2].mxu1 }
 0x33b   :  { %v539_v53 = vpop.f32.mrb[3].mxu1  ;;  %v545_v57 = vadd.f32 %v5124_v52, %v4866_v51  ;;  %v4878_v52 = vld [vmem:[#allocation10] ss:$0 sm:$0xff] }
 0x33c   :  { %v540_v55 = vadd.f32 %v4866_v51, %v539_v53 }
 0x33e   :  { %5137 = vmatpush3.xpose.msk.msra.mxu1 %vm380_vm3, %v540_v55 }
 0x33f   :  { %5141 = vmatprep.subr.mxu1 %v6205_v24 }
 0x341   :  { %5139 = vmatmul.mubr.msk.f32.vlgmr.msra.gmra.mrb[4].mxu1 %vm380_vm3, %v454_v56 }
 0x342   :  { %5142 = vmatpush3.xpose.msk.msra.mxu1 %vm380_vm3, %v545_v57  ;;  %5143 = vmatprep.mubr.msk.f32.mxu1 %vm6206_vm4, %v6205_v24 }
 0x343   :  { %5151 = vmatprep.subr.mxu1 %v6205_v24 }
 0x345   :  { %5144 = vmatmul.mubr.msk.f32.vlgmr.msra.gmra.mrb[6].mxu1 %vm380_vm3, %v459_v58 }
 0x346   :  { %5152 = vmatpush3.msra.mxu1 %v631_v59  ;;  %5153 = vmatprep.mubr.msk.f32.mxu1 %vm6206_vm4, %v6205_v24 }
 0x414   :  { %v706_v11 = vpop.f32.mrb[4].mxu1 }
 0x415   :  { %v786_v12 = vmul.f32 0.17677669, %v706_v11  ;;  %v5140_v13 = vpop.f32.mrb[5].mxu1 }
 0x417   :  { %v829_v14 = vadd.f32 %v822_v9, %v786_v12  ;;  %v1140_v9 = vld [vmem:[%s7300_s14 + $0x8] sm:$0xff]  ;;  %v1142_v12 = vld [vmem:[%s7300_s14 + $0x18] sm:$0xff] }
 0x418   :  { %v782_v16 = vpop.f32.mrb[6].mxu1  ;;  %v5405_v11 = vpack.c.bf16 %v1140_v9, %v1139_v8  ;;  %v5409_v13 = vpack.c.bf16 %v1142_v12, %v1141_v10 }
 0x419   :  { %v787_v17 = vmul.f32 0.17677669, %v782_v16  ;;  %v5145_v18 = vpop.f32.mrb[7].mxu1  ;;  %v832_v19 = vsel %vm831_vm5, %v829_v14, -inf }
 0x41a   :  { %833 = vmax.xlane.f32.xlu1 %v832_v19  ;;  %5406 = vmatprep.subr.bf16.mxu1 %v5405_v11 }
 0x41b   :  { %v830_v20 = vadd.f32 %v826_v15, %v787_v17 }
 0x41d   :  { %v835_v21 = vsel %vm831_vm5, %v830_v20, -inf }
 0x41e   :  { %836 = vmax.xlane.f32.xlu1 %v835_v21  ;;  %v4881_v21 = vld [vmem:[#allocation12] ss:$0 sm:$0xff] }
 0x4a7   :  { %v834_v23 = vpop.xlane.xlu1 %833 }
 0x4a8   :  { %v838_v25 = vsub.f32 %v829_v14, %v834_v23 }
 0x4aa   :  { %v840_v26 = vmul.f32 1.442695, %v838_v25  ;;  %v4882_v25 = vld [vmem:[#allocation13] ss:$0 sm:$0xff] }
 0x4ab   :  { %v837_v27 = vpop.xlane.xlu1 %836 }
 0x4ac   :  { %5575 = vpow2.f32 %v840_v26  ;;  %v839_v28 = vsub.f32 %v830_v20, %v837_v27 }
 0x4ae   :  { %v842_v29 = vmul.f32 1.442695, %v839_v28 }
 0x4b0   :  { %5577 = vpow2.f32 %v842_v29 }
 0x4b6   :  { %v5576_v30 = vpop.eup %5575 }
 0x4b7   :  { %v844_v31 = vsel %vm831_vm5, %v5576_v30, 0.0 }
 0x4b8   :  { %845 = vadd.xlane.f32.xlu0 %v844_v31 }
 0x4ba   :  { %v5578_v32 = vpop.eup %5577 }
 0x4bb   :  { %v847_v33 = vsel %vm831_vm5, %v5578_v32, 0.0 }
 0x4bc   :  { %848 = vadd.xlane.f32.xlu1 %v847_v33  ;;  %v1250_v33 = vld [vmem:[%s7301_s24 + $0x8] sm:$0xff] }
 0x545   :  { %v846_v37 = vpop.xlane.xlu0 %845 }
 0x546   :  { %5579 = vrcp.f32 %v846_v37 }
 0x549   :  { %v849_v38 = vpop.xlane.xlu1 %848 }
 0x54a   :  { %5581 = vrcp.f32 %v849_v38  ;;  %v1253_v38 = vld [vmem:[%s7301_s24 + $0x20] sm:$0xff] }
 0x550   :  { %v5580_v39 = vpop.eup %5579 }
 0x551   :  { %v851_v40 = vmul.f32 %v5580_v39, %v5576_v30  ;;  %v1254_v39 = vld [vmem:[%s7301_s24 + $0x28] sm:$0xff] }
 0x553   :  { %5149 = vmatmul.mubr.msk.f32.vlgmr.msra.gmra.mrb[4].mxu0 %vm831_vm5, %v851_v40  ;;  %v5421_v40 = vpack.c.bf16 %v1254_v39, %v1253_v38  ;;  %v1405_v38 = vld [vmem:[%s7303_s2 + $0x18] sm:$0xff] }
 0x554   :  { %v5582_v41 = vpop.eup %5581  ;;  %5400 = vmatpush3.bf16.msra.mxu0 %v5397_v36  ;;  %v1252_v36 = vld [vmem:[%s7301_s24 + $0x18] sm:$0xff] }
 0x555   :  { %v853_v44 = vmul.f32 %v5582_v41, %v5578_v32  ;;  %5402 = vmatprep.subr.bf16.mxu0 %v5401_v47  ;;  %v1249_v32 = vld [vmem:[%s7301_s24] sm:$0xff]  ;;  %v5417_v37 = vpack.c.bf16 %v1252_v36, %v1251_v35  ;;  %v1255_v41 = vld [vmem:[%s7301_s24 + $0x30] sm:$0xff]  ;;  %v6208_v36 = vmov 0.0|0.0  }
 0x556   :  { %v5413_v34 = vpack.c.bf16 %v1250_v33, %v1249_v32  ;;  %v1402_v33 = vld [vmem:[%s7303_s2] sm:$0xff] }
 0x557   :  { %5154 = vmatmul.mubr.msk.f32.vlgmr.msra.gmra.mrb[8].mxu1 %vm831_vm5, %v853_v44  ;;  %v1256_v44 = vld [vmem:[%s7301_s24 + $0x38] sm:$0xff] }
 0x558   :  { %5404 = vmatpush3.bf16.msra.mxu0 %v5401_v47  ;;  %5408 = vmatpush3.bf16.msra.mxu1 %v5405_v11  ;;  %v5425_v45 = vpack.c.bf16 %v1256_v44, %v1255_v41 }
 0x559   :  { %5410 = vmatprep.subr.bf16.mxu1 %v5409_v13  ;;  %5414 = vmatprep.subr.bf16.mxu0 %v5413_v34 }
 0x55c   :  { %5412 = vmatpush3.bf16.msra.mxu1 %v5409_v13 }
 0x626   :  { %v923_v48 = vpop.f32.mrb[4].mxu0 }
 0x627   :  { %v5150_v49 = vpop.f32.mrb[5].mxu0  ;;  %5164 = vmatprep.mubr.msk.f32.mxu0 %vm380_vm3, %v923_v48 }
 0x62a   :  { %v996_v50 = vpop.f32.mrb[8].mxu1 }
 0x62b   :  { %v5155_v51 = vpop.f32.mrb[9].mxu1  ;;  %5165 = vmatmul.mubr.msk.f32.vlgmr.msra.gmra.mrb[6].mxu0 %vm380_vm3, %v996_v50 }
 0x62c   :  { %5416 = vmatpush3.bf16.msra.mxu0 %v5413_v34  ;;  %v1403_v34 = vld [vmem:[%s7303_s2 + $0x8] sm:$0xff] }
 0x62d   :  { %5418 = vmatprep.subr.bf16.mxu0 %v5417_v37  ;;  %v6566_v35 = vpack.c.bf16 %v1403_v34, %v1402_v33 }
 0x630   :  { %5420 = vmatpush3.bf16.msra.mxu0 %v5417_v37  ;;  %v1404_v37 = vld [vmem:[%s7303_s2 + $0x10] sm:$0xff] }
 0x631   :  { %5422 = vmatprep.subr.bf16.mxu0 %v5421_v40  ;;  %v6574_v39 = vpack.c.bf16 %v1405_v38, %v1404_v37 }
 0x634   :  { %5424 = vmatpush3.bf16.msra.mxu0 %v5421_v40 }
 0x635   :  { %5426 = vmatprep.subr.bf16.mxu0 %v5425_v45 }
 0x638   :  { %5428 = vmatpush3.bf16.msra.mxu0 %v5425_v45 }
 0x639   :  { %5443 = vmatprep.subr.bf16.mxu0 %v6208_v36 }
 0x6fe   :  { %v5166_v53 = vpop.f32.mrb[6].mxu0 }
 0x6ff   :  { %v1083_v54 = vpop.f32.mrb[7].mxu0  ;;  %v1089_v55 = vadd.f32 %v5166_v53, %v4878_v52 }
 0x700   :  { %v1084_v56 = vadd.f32 %v4878_v52, %v1083_v54 }
 0x701   :  { %v1093_v59 = vadd.f32 %v1089_v55, %v6476_v43 }
 0x702   :  { %v1092_v57 = vadd.f32 %v1084_v56, %v6474_v42 }
 0x703   :  { %v1099_v60 = vsel %vm380_vm3, %v1093_v59, 0.0 }
 0x704   :  { %v1096_v58 = vsel %vm380_vm3, %v1092_v57, 0.0 }
 0x705   :  { %1097 = vadd.xlane.f32.xlu1 %v1096_v58 }
 0x709   :  { %1100 = vadd.xlane.f32.xlu1 %v1099_v60 }
 0x792   :  { %v1098_v61 = vpop.xlane.xlu1 %1097 }
 0x793   :  { %v1103_v62 = vmul.f32 0.03125, %v1098_v61 }
 0x795   :  { %v1105_v0 = vsub.f32 %v1092_v57, %v1103_v62 }
 0x796   :  { %v1101_v2 = vpop.xlane.xlu1 %1100 }
 0x797   :  { %v1104_v3 = vmul.f32 0.03125, %v1101_v2  ;;  %v1107_v4 = vmul.f32 %v1105_v0, %v1105_v0 }
 0x799   :  { %v1106_v5 = vsub.f32 %v1093_v59, %v1104_v3  ;;  %v1109_v42 = vsel %vm380_vm3, %v1107_v4, 0.0 }
 0x79a   :  { %1110 = vadd.xlane.f32.xlu1 %v1109_v42 }
 0x79b   :  { %v1108_v6 = vmul.f32 %v1106_v5, %v1106_v5 }
 0x79d   :  { %v1112_v43 = vsel %vm380_vm3, %v1108_v6, 0.0  ;;  %v4886_v6 = vld [vmem:[#allocation16] ss:$0 sm:$0xff] }
 0x79e   :  { %1113 = vadd.xlane.f32.xlu1 %v1112_v43 }
 0x827   :  { %v1111_v14 = vpop.xlane.xlu1 %1110 }
 0x828   :  { %v1115_v15 = vmul.f32 0.03125, %v1111_v14 }
 0x82a   :  { %v1117_v16 = vadd.f32 1e-05, %v1115_v15 }
 0x82b   :  { %v1114_v17 = vpop.xlane.xlu1 %1113 }
 0x82c   :  { %5583 = vrsqrt.f32 %v1117_v16  ;;  %v1116_v18 = vmul.f32 0.03125, %v1114_v17 }
 0x82e   :  { %v1118_v19 = vadd.f32 1e-05, %v1116_v18 }
 0x830   :  { %5585 = vrsqrt.f32 %v1118_v19 }
 0x836   :  { %v5584_v20 = vpop.eup %5583 }
 0x837   :  { %v1121_v23 = vmul.f32 %v5584_v20, %v1105_v0 }
 0x839   :  { %v1129_v26 = vmul.f32 %v4881_v21, %v1121_v23 }
 0x83a   :  { %v5586_v27 = vpop.eup %5585 }
 0x83b   :  { %v1122_v28 = vmul.f32 %v5586_v27, %v1106_v5  ;;  %v1137_v29 = vadd.f32 %v4882_v25, %v1129_v26  ;;  %v1398_v27 = vld [vmem:[%s7302_s1] sm:$0xff] }
 0x83d   :  { %v1130_v30 = vmul.f32 %v4881_v21, %v1122_v28  ;;  %5175 = vmatprep.mubr.msk.f32.mxu1 %vm380_vm3, %v1137_v29  ;;  %v1399_v28 = vld [vmem:[%s7302_s1 + $0x8] sm:$0xff] }
 0x83f   :  { %v1138_v31 = vadd.f32 %v4882_v25, %v1130_v30  ;;  %v5429_v30 = vpack.c.bf16 %v1399_v28, %v1398_v27 }
 0x841   :  { %5176 = vmatmul.mubr.msk.f32.vlgmr.msra.gmra.mrb[10].mxu1 %vm380_vm3, %v1138_v31  ;;  %5430 = vmatprep.subr.bf16.mxu1 %v5429_v30 }
 0x842   :  { %5432 = vmatpush3.bf16.msra.mxu1 %v5429_v30 }
 0x914   :  { %v5177_v47 = vpop.f32.mrb[10].mxu1 }
 0x915   :  { %v1228_v48 = vadd.f32 %v5177_v47, %v4883_v46  ;;  %v1222_v49 = vpop.f32.mrb[11].mxu1 }
 0x916   :  { %v1223_v50 = vadd.f32 %v4883_v46, %v1222_v49  ;;  %v4889_v49 = vld [vmem:[%s7304_s30] ss:$0 sm:$0xff] }
 0x917   :  { %v1232_v51 = vmul.f32 %v1228_v48, %v1228_v48 }
 0x918   :  { %v1231_v52 = vmul.f32 %v1223_v50, %v1223_v50 }
 0x919   :  { %v1234_v53 = vmul.f32 %v1232_v51, %v1228_v48  ;;  %v4890_v51 = vld [vmem:[#allocation18] ss:$0 sm:$0xff] }
 0x91a   :  { %v1233_v54 = vmul.f32 %v1231_v52, %v1223_v50 }
 0x91b   :  { %v1236_v55 = vmul.f32 0.044715, %v1234_v53 }
 0x91c   :  { %v1235_v56 = vmul.f32 0.044715, %v1233_v54 }
 0x91d   :  { %v1238_v57 = vadd.f32 %v1236_v55, %v1228_v48 }
 0x91e   :  { %v1237_v58 = vadd.f32 %v1235_v56, %v1223_v50 }
 0x91f   :  { %v1240_v59 = vmul.f32 0.7978846, %v1238_v57 }
 0x920   :  { %v1239_v60 = vmul.f32 0.7978846, %v1237_v58 }
 0x921   :  { %5587 = vtanh.f32 %v1240_v59 }
 0x922   :  { %5589 = vtanh.f32 %v1239_v60  ;;  %v4892_v60 = vld [vmem:[%s7305_s7] ss:$0 sm:$0xff] }
 0x92b   :  { %v5588_v61 = vpop.eup %5587 }
 0x92c   :  { %v5590_v62 = vpop.eup %5589  ;;  %v1244_v0 = vadd.f32 1.0, %v5588_v61 }
 0x92d   :  { %v1243_v2 = vadd.f32 1.0, %v5590_v62 }
 0x92e   :  { %v1246_v3 = vmul.f32 0.5, %v1244_v0 }
 0x92f   :  { %v1245_v4 = vmul.f32 0.5, %v1243_v2 }
 0x930   :  { %v1248_v42 = vmul.f32 %v1246_v3, %v1228_v48 }
 0x931   :  { %v1247_v5 = vmul.f32 %v1245_v4, %v1223_v50 }
 0x933   :  { %5194 = vmatprep.mubr.msk.f32.mxu0 %vm287_vm0, %v1247_v5 }
 0x934   :  { %5195 = vmatmul.mubr.msk.f32.vlgmr.msra.gmra.mrb[8].mxu0 %vm287_vm0, %v1248_v42 }
 0x935   :  { %5227 = vmatprep.mubr.msk.f32.mxu0 %vm6206_vm4, %v6205_v24  ;;  %5445 = vmatpush3.bf16.msra.mxu0 %v6566_v35 }
 0x936   :  { %5446 = vmatprep.subr.bf16.mxu0 %v6208_v36 }
 0x939   :  { %5448 = vmatpush3.bf16.msra.mxu0 %v6574_v39 }
 0x93a   :  { %5455 = vmatprep.subr.bf16.mxu0 %v6208_v36 }
 0xa07   :  { %v5196_v43 = vpop.f32.mrb[8].mxu0 }
 0xa08   :  { %v1336_v8 = vpop.f32.mrb[9].mxu0  ;;  %v1342_v9 = vadd.f32 %v5196_v43, %v4886_v6 }
 0xa09   :  { %v1337_v10 = vadd.f32 %v4886_v6, %v1336_v8  ;;  %v1391_v6 = vld [vmem:[%s7306_s29] sm:$0x3] }
 0xa0a   :  { %v1346_v13 = vadd.f32 %v1342_v9, %v1138_v31  ;;  %v1401_v31 = vld [vmem:[%s7302_s1 + $0x18] sm:$0xff] }
 0xa0b   :  { %v1345_v11 = vadd.f32 %v1337_v10, %v1137_v29  ;;  %v1400_v29 = vld [vmem:[%s7302_s1 + $0x10] sm:$0xff] }
 0xa0c   :  { %v1352_v14 = vsel %vm380_vm3, %v1346_v13, 0.0  ;;  %v5433_v32 = vpack.c.bf16 %v1401_v31, %v1400_v29 }
 0xa0d   :  { %v1349_v12 = vsel %vm380_vm3, %v1345_v11, 0.0 }
 0xa0e   :  { %1350 = vadd.xlane.f32.xlu1 %v1349_v12  ;;  %5434 = vmatprep.subr.bf16.mxu1 %v5433_v32 }
 0xa0f   :  { %5436 = vmatpush3.bf16.msra.mxu1 %v5433_v32 }
 0xa10   :  { %5437 = vmatprep.subr.bf16.mxu1 %v6208_v36 }
 0xa12   :  { %1353 = vadd.xlane.f32.xlu1 %v1352_v14 }
 0xa9b   :  { %v1351_v15 = vpop.xlane.xlu1 %1350 }
 0xa9c   :  { %v1355_v16 = vmul.f32 0.03125, %v1351_v15 }
 0xa9e   :  { %v1357_v17 = vsub.f32 %v1345_v11, %v1355_v16 }
 0xa9f   :  { %v1354_v18 = vpop.xlane.xlu1 %1353 }
 0xaa0   :  { %v1356_v19 = vmul.f32 0.03125, %v1354_v18  ;;  %v1359_v20 = vmul.f32 %v1357_v17, %v1357_v17 }
 0xaa2   :  { %v1358_v21 = vsub.f32 %v1346_v13, %v1356_v19  ;;  %v1361_v23 = vsel %vm380_vm3, %v1359_v20, 0.0 }
 0xaa3   :  { %1362 = vadd.xlane.f32.xlu1 %v1361_v23 }
 0xaa4   :  { %v1360_v25 = vmul.f32 %v1358_v21, %v1358_v21 }
 0xaa6   :  { %v1364_v26 = vsel %vm380_vm3, %v1360_v25, 0.0 }
 0xaa7   :  { %1365 = vadd.xlane.f32.xlu0 %v1364_v26 }
 0xb30   :  { %v1363_v40 = vpop.xlane.xlu1 %1362 }
 0xb31   :  { %v1367_v41 = vmul.f32 0.03125, %v1363_v40 }
 0xb33   :  { %v1369_v44 = vadd.f32 1e-05, %v1367_v41 }
 0xb34   :  { %v1366_v45 = vpop.xlane.xlu0 %1365 }
 0xb35   :  { %5591 = vrsqrt.f32 %v1369_v44  ;;  %v1368_v46 = vmul.f32 0.03125, %v1366_v45 }
 0xb37   :  { %v1370_v47 = vadd.f32 1e-05, %v1368_v46 }
 0xb39   :  { %5593 = vrsqrt.f32 %v1370_v47 }
 0xb3f   :  { %v5592_v48 = vpop.eup %5591 }
 0xb40   :  { %v1373_v50 = vmul.f32 %v5592_v48, %v1357_v17 }
 0xb42   :  { %v1381_v52 = vmul.f32 %v4889_v49, %v1373_v50 }
 0xb43   :  { %v5594_v53 = vpop.eup %5593 }
 0xb44   :  { %v1374_v54 = vmul.f32 %v5594_v53, %v1358_v21  ;;  %v1389_v55 = vadd.f32 %v4890_v51, %v1381_v52 }
 0xb46   :  { %v1382_v56 = vmul.f32 %v4889_v49, %v1374_v54  ;;  %5205 = vmatprep.mubr.msk.f32.mxu1 %vm380_vm3, %v1389_v55 }
 0xb48   :  { %v1390_v57 = vadd.f32 %v4890_v51, %v1382_v56 }
 0xb4a   :  { %5206 = vmatmul.mubr.msk.f32.vlgmr.msra.gmra.mrb[12].mxu1 %vm380_vm3, %v1390_v57 }
 0xb4b   :  { %5439 = vmatpush3.bf16.msra.mxu1 %v6566_v35  ;;  %5216 = vmatprep.mubr.msk.f32.mxu1 %vm6206_vm4, %v6205_v24 }
 0xb4c   :  { %5440 = vmatprep.subr.bf16.mxu1 %v6208_v36 }
 0xb4f   :  { %5442 = vmatpush3.bf16.msra.mxu1 %v6574_v39 }
 0xb50   :  { %5449 = vmatprep.subr.bf16.mxu1 %v6208_v36 }
 0xb52   :  { %5217 = vmatmul.mubr.f32.vlgmr.msra.gmra.mrb[14].mxu1 %v6205_v24 }
 0xb53   :  { %5451 = vmatpush3.bf16.msra.mxu1 %v6566_v35  ;;  %5238 = vmatprep.mubr.msk.f32.mxu1 %vm6206_vm4, %v6205_v24 }
 0xb54   :  { %5452 = vmatprep.subr.bf16.mxu1 %v6208_v36 }
 0xb57   :  { %5454 = vmatpush3.bf16.msra.mxu1 %v6574_v39 }
 0xb58   :  { %5461 = vmatprep.subr.bf16.mxu1 %v6208_v36 }
 0xc1d   :  { %v5207_v58 = vpop.f32.mrb[12].mxu1 }
 0xc1e   :  { %v1485_v59 = vpop.f32.mrb[13].mxu1  ;;  %v6597_v0 = vadd.f32 %v5207_v58, %v4892_v60 }
 0xc1f   :  { %v6595_v61 = vadd.f32 %v4892_v60, %v1485_v59 }
 0xc25   :  { %v1563_v62 = vpop.f32.mrb[14].mxu1 }
 0xc26   :  { %v1568_v2 = vrot.slane %v1563_v62, 1  ;;  %v1571_v3 = vadd.f32 %v1563_v62, %v6595_v61  ;;  %v5218_v4 = vpop.f32.mrb[15].mxu1 }
 0xc28   :  { %v1572_v5 = vadd.f32 %v1568_v2, %v6597_v0  ;;  %5595 = vtanh.f32 %v1571_v3  ;;  %v4895_v9 = vmul.f32 -1.442695, %v1571_v3 }
 0xc2a   :  { %5597 = vtanh.f32 %v1572_v5  ;;  %v4896_v8 = vmul.f32 -1.442695, %v1572_v5 }
 0xc2c   :  { %5599 = vpow2.f32 %v4896_v8 }
 0xc2d   :  { %5601 = vpow2.f32 %v4895_v9 }
 0xc32   :  { %v5596_v42 = vpop.eup %5595 }
 0xc33   :  { %1591 = vrot.lane.b32.xlu0 %v5596_v42, %s6209_s10 }
 0xc34   :  { %v5598_v43 = vpop.eup %5597 }
 0xc35   :  { %1593 = vrot.lane.b32.xlu1 %v5598_v43, %s6209_s10 }
 0xc36   :  { %v5600_v10 = vpop.eup %5599 }
 0xc37   :  { %1393 = vperm.xlu0 %5559, %v1391_v6   ;;  %v1580_v11 = vadd.f32 1.0, %v5600_v10  ;;  %v5602_v12 = vpop.eup %5601 }
 0xc38   :  { %v1579_v13 = vadd.f32 1.0, %v5602_v12 }
 0xc39   :  { %5603 = vrcp.f32 %v1580_v11 }
 0xc3a   :  { %5605 = vrcp.f32 %v1579_v13 }
 0xc43   :  { %v5604_v14 = vpop.eup %5603 }
 0xc44   :  { %v5606_v18 = vpop.eup %5605  ;;  %v1588_v20 = vmul.f32 0.0, %v5604_v14 }
 0xc45   :  { %v1587_v25 = vmul.f32 0.0, %v5606_v18 }
 0xca5   :  { %v1592_v17 = vpop.permute.xlu0 %1591 }
 0xca6   :  { %v1597_v19 = vmul.f32 %v5606_v18, %v1592_v17  ;;  %v6212_v17 = vmov 1  }
 0xca7   :  { %v1594_v15 = vpop.permute.xlu1 %1593 }
 0xca8   :  { %v1598_v16 = vmul.f32 %v5604_v14, %v1594_v15 }
 0xcaa   :  { %1603 = vrot.lane.b32.xlu1 %v1598_v16, %s6210_s0 }
 0xcae   :  { %1601 = vrot.lane.b32.xlu1 %v1597_v19, %s6210_s0 }
 0xcb6   :  { %v6606_v28 = vpop.permute.xlu0 %1393 }
 0xcb7   :  { %vm1395_vm6 = vcmp.lt.s32.totalorder %v6456_v22, %v6606_v28 }
 0xcb8   :  { %v6612_v31 = vsel %vm1395_vm6, 1.0, %v6205_v24 }
 0xcb9   :  { %v6617_v32 = vsub.f32 1.0, %v6612_v31 }
 0xd1c   :  { %v1604_v21 = vpop.permute.xlu1 %1603 }
 0xd1d   :  { %v1608_v23 = vadd.f32 %v1604_v21, %v1588_v20 }
 0xd1f   :  { %5607 = vtanh.f32 %v1608_v23  ;;  %v1628_v33 = vrot.slane %v1608_v23, 7 }
 0xd20   :  { %v1602_v26 = vpop.permute.xlu1 %1601 }
 0xd21   :  { %v1607_v27 = vadd.f32 %v1602_v26, %v1587_v25 }
 0xd23   :  { %5609 = vtanh.f32 %v1607_v27  ;;  %v1630_v34 = vsel %vm1629_vm7, %v1628_v33, %v1607_v27 }
 0xd29   :  { %v5608_v29 = vpop.eup %5607 }
 0xd2a   :  { %1615 = vrot.lane.b32.xlu1 %v5608_v29, %s6209_s10 }
 0xd2d   :  { %v5610_v30 = vpop.eup %5609 }
 0xd2e   :  { %1623 = vperm.xlu1 %5560, %v6612_v31   ;;  %1613 = vrot.lane.b32.xlu0 %v5610_v30, %s6209_s10 }
 0xd32   :  { %1638 = vperm.xlu0 %5559, %v6617_v32   ;;  %5561 = vset.pattern.permute.xlu1 %v6212_v17 }
 0xd36   :  { %1631 = vrot.lane.b32.xlu0 %v1630_v34, %s6211_s12 }
 0xd37   :  { %5562 = vset.pattern.permute.xlu0 %v6212_v17 }
 0xd9c   :  { %v1616_v22 = vpop.permute.xlu1 %1615 }
 0xd9d   :  { %v1620_v37 = vmul.f32 %v5604_v14, %v1616_v22 }
 0xd9f   :  { %v1645_v40 = vrot.slane %v1620_v37, 7 }
 0xda0   :  { %v1614_v38 = vpop.permute.xlu0 %1613 }
 0xda1   :  { %v1619_v41 = vmul.f32 %v5606_v18, %v1614_v38 }
 0xda3   :  { %v1646_v44 = vsel %vm1629_vm7, %v1645_v40, %v1619_v41 }
 0xda4   :  { %1647 = vrot.lane.b32.xlu1 %v1646_v44, %s6210_s0 }
 0xdad   :  { %v6624_v45 = vpop.permute.xlu1 %1623 }
 0xdb1   :  { %v1639_v46 = vpop.permute.xlu0 %1638 }
 0xdb2   :  { %v6626_v48 = vmul.f32 0.0, %v1639_v46 }
 0xdb5   :  { %v1632_v60 = vpop.permute.xlu0 %1631 }
 0xdb6   :  { %v1634_v62 = vmul.f32 %v1632_v60, %v6624_v45 }
 0xdb8   :  { %v6651_v3 = vadd.f32 %v6626_v48, %v1634_v62 }
 0xdba   :  { %v1773_v5 = vrot.slane %v6651_v3, 7 }
 0xe16   :  { %v1648_v47 = vpop.permute.xlu1 %1647 }
 0xe17   :  { %v1650_v49 = vmul.f32 %v1648_v47, %v6624_v45 }
 0xe19   :  { %v6630_v50 = vadd.f32 %v1650_v49, %v6626_v48 }
 0xe1b   :  { %v1659_v51 = vrot.slane %v6630_v50, %v6510_v1  ;;  %5228 = vmatmul.mubr.msk.f32.vlgmr.msra.gmra.mrb[10].mxu0 %vm380_vm3, %v6630_v50 }
 0xe1c   :  { %5457 = vmatpush3.bf16.msra.mxu0 %v6566_v35  ;;  %5249 = vmatprep.mubr.msk.f32.mxu0 %vm6206_vm4, %v6205_v24 }
 0xe1d   :  { %v1660_v52 = vcombine.high %v1659_v51, %v1659_v51  ;;  %v1667_v53 = vrot.slane %v1659_v51, %v6510_v1  ;;  %5458 = vmatprep.subr.bf16.mxu0 %v6208_v36 }
 0xe1f   :  { %v1674_v54 = vrot.slane %v1660_v52, %v6510_v1  ;;  %1678 = vst.msk [vmem:[#allocation2] sm:$0x1] %vm1677_vm8, %v1667_v53 }
 0xe20   :  { %5460 = vmatpush3.bf16.msra.mxu0 %v6574_v39 }
 0xe21   :  { %1679 = vst.msk [vmem:[#allocation2 + $0x8] sm:$0x1] %vm1677_vm8, %v1674_v54  ;;  %5467 = vmatprep.subr.bf16.mxu0 %v6208_v36 }
 0xeee   :  { %v1748_v55 = vpop.f32.mrb[10].mxu0 }
 0xeef   :  { %v1753_v56 = vrot.slane %v1748_v55, 7  ;;  %v1757_v57 = vadd.f32 %v1748_v55, %v6597_v0  ;;  %v5229_v58 = vpop.f32.mrb[11].mxu0 }
 0xef1   :  { %v1756_v59 = vadd.f32 %v1753_v56, %v6595_v61  ;;  %5611 = vtanh.f32 %v1757_v57  ;;  %v4899_v42 = vmul.f32 -1.442695, %v1757_v57 }
 0xef3   :  { %5613 = vtanh.f32 %v1756_v59  ;;  %v4898_v6 = vmul.f32 -1.442695, %v1756_v59 }
 0xef4   :  { %5615 = vpow2.f32 %v4899_v42 }
 0xef5   :  { %5617 = vpow2.f32 %v4898_v6 }
 0xefb   :  { %v5612_v2 = vpop.eup %5611 }
 0xefc   :  { %1786 = vrot.lane.b32.xlu0 %v5612_v2, %s6209_s10 }
 0xefd   :  { %v5614_v4 = vpop.eup %5613 }
 0xefe   :  { %1784 = vrot.lane.b32.xlu1 %v5614_v4, %s6209_s10  ;;  %v5616_v43 = vpop.eup %5615 }
 0xeff   :  { %v5618_v8 = vpop.eup %5617  ;;  %v1765_v9 = vadd.f32 1.0, %v5616_v43 }
 0xf00   :  { %1776 = vrot.lane.b32.xlu0 %v6651_v3, %s6210_s0  ;;  %v1764_v10 = vadd.f32 1.0, %v5618_v8 }
 0xf01   :  { %5619 = vrcp.f32 %v1765_v9 }
 0xf02   :  { %1774 = vrot.lane.b32.xlu1 %v1773_v5, %s6210_s0  ;;  %5621 = vrcp.f32 %v1764_v10 }
 0xf0b   :  { %v5620_v11 = vpop.eup %5619 }
 0xf0c   :  { %v5622_v14 = vpop.eup %5621 }
 0xf6e   :  { %v1787_v12 = vpop.permute.xlu0 %1786 }
 0xf6f   :  { %v1791_v13 = vmul.f32 %v5620_v11, %v1787_v12 }
 0xf70   :  { %v1785_v15 = vpop.permute.xlu1 %1784 }
 0xf71   :  { %1796 = vrot.lane.b32.xlu0 %v1791_v13, %s6210_s0  ;;  %v1790_v16 = vmul.f32 %v5622_v14, %v1785_v15 }
 0xf72   :  { %v1777_v18 = vpop.permute.xlu0 %1776 }
 0xf73   :  { %1794 = vrot.lane.b32.xlu1 %v1790_v16, %s6210_s0  ;;  %v1781_v19 = vmul.f32 %v5620_v11, %v1777_v18 }
 0xf74   :  { %v1775_v20 = vpop.permute.xlu1 %1774 }
 0xf75   :  { %v1780_v25 = vmul.f32 %v5622_v14, %v1775_v20 }
 0xfe3   :  { %v1797_v21 = vpop.permute.xlu0 %1796 }
 0xfe4   :  { %v1801_v23 = vadd.f32 %v1797_v21, %v1781_v19 }
 0xfe5   :  { %v1795_v26 = vpop.permute.xlu1 %1794 }
 0xfe6   :  { %5623 = vtanh.f32 %v1801_v23  ;;  %v1800_v27 = vadd.f32 %v1795_v26, %v1780_v25 }
 0xfe8   :  { %5625 = vtanh.f32 %v1800_v27  ;;  %v1820_v29 = vrot.slane %v1800_v27, 1 }
 0xfea   :  { %v1821_v30 = vsel %vm1629_vm7, %v1801_v23, %v1820_v29  ;;  %v6213_v23 = vmov 2  }
 0xff0   :  { %v5624_v33 = vpop.eup %5623 }
 0xff1   :  { %1808 = vrot.lane.b32.xlu0 %v5624_v33, %s6209_s10 }
 0xff2   :  { %v5626_v34 = vpop.eup %5625 }
 0xff3   :  { %1806 = vrot.lane.b32.xlu1 %v5626_v34, %s6209_s10 }
 0xff5   :  { %1827 = vperm.xlu0 %5562, %v6617_v32  }
 0xff7   :  { %1815 = vperm.xlu1 %5561, %v6612_v31  }
 0xff9   :  { %5563 = vset.pattern.permute.xlu0 %v6213_v23 }
 0xffb   :  { %5564 = vset.pattern.permute.xlu1 %v6213_v23 }
0x1063   :  { %v1809_v22 = vpop.permute.xlu0 %1808 }
0x1064   :  { %v1813_v40 = vmul.f32 %v5620_v11, %v1809_v22 }
0x1065   :  { %v1807_v37 = vpop.permute.xlu1 %1806 }
0x1066   :  { %v1812_v38 = vmul.f32 %v5622_v14, %v1807_v37 }
0x1068   :  { %v1834_v41 = vrot.slane %v1812_v38, 1 }
0x106a   :  { %v1835_v44 = vsel %vm1629_vm7, %v1813_v40, %v1834_v41 }
0x106b   :  { %1836 = vrot.lane.b32.xlu1 %v1835_v44, %s6210_s0 }
0x106f   :  { %1822 = vrot.lane.b32.xlu1 %v1821_v30, %s6211_s12 }
0x1074   :  { %v6670_v47 = vpop.permute.xlu0 %1827 }
0x1075   :  { %v1840_v52 = vmul.f32 %v6670_v47, %v6630_v50  ;;  %v1830_v42 = vmul.f32 %v6670_v47, %v6651_v3 }
0x1076   :  { %v6668_v46 = vpop.permute.xlu1 %1815 }
0x10dd   :  { %v1837_v49 = vpop.permute.xlu1 %1836 }
0x10de   :  { %v1839_v51 = vmul.f32 %v1837_v49, %v6668_v46 }
0x10e0   :  { %v6675_v53 = vadd.f32 %v1840_v52, %v1839_v51 }
0x10e1   :  { %v1823_v4 = vpop.permute.xlu1 %1822 }
0x10e2   :  { %v1849_v54 = vrot.slane %v6675_v53, %v6510_v1  ;;  %5239 = vmatmul.mubr.msk.f32.vlgmr.msra.gmra.mrb[16].mxu1 %vm380_vm3, %v6675_v53  ;;  %v1825_v5 = vmul.f32 %v1823_v4, %v6668_v46 }
0x10e3   :  { %5463 = vmatpush3.bf16.msra.mxu1 %v6566_v35  ;;  %5260 = vmatprep.mubr.msk.f32.mxu1 %vm6206_vm4, %v6205_v24 }
0x10e4   :  { %v1850_v55 = vcombine.high %v1849_v54, %v1849_v54  ;;  %v1857_v56 = vrot.slane %v1849_v54, %v6510_v1  ;;  %5464 = vmatprep.subr.bf16.mxu1 %v6208_v36  ;;  %v6696_v6 = vadd.f32 %v1830_v42, %v1825_v5 }
0x10e6   :  { %v1864_v50 = vrot.slane %v1850_v55, %v6510_v1  ;;  %1867 = vst.msk [vmem:[#allocation2 + $0x1] sm:$0x1] %vm1677_vm8, %v1857_v56  ;;  %v1963_v9 = vrot.slane %v6696_v6, 6  ;;  %v1964_v10 = vrot.slane %v6696_v6, 7 }
0x10e7   :  { %5466 = vmatpush3.bf16.msra.mxu1 %v6574_v39 }
0x10e8   :  { %1868 = vst.msk [vmem:[#allocation2 + $0x9] sm:$0x1] %vm1677_vm8, %v1864_v50  ;;  %5473 = vmatprep.subr.bf16.mxu1 %v6208_v36 }
0x11b5   :  { %v1937_v57 = vpop.f32.mrb[16].mxu1 }
0x11b6   :  { %v1942_v58 = vrot.slane %v1937_v57, 6  ;;  %v1943_v59 = vrot.slane %v1937_v57, 7  ;;  %v5240_v60 = vpop.f32.mrb[17].mxu1 }
0x11b8   :  { %v1946_v62 = vadd.f32 %v1942_v58, %v6595_v61  ;;  %v1947_v2 = vadd.f32 %v1943_v59, %v6597_v0 }
0x11ba   :  { %5627 = vtanh.f32 %v1946_v62  ;;  %v4901_v11 = vmul.f32 -1.442695, %v1946_v62  ;;  %v4902_v12 = vmul.f32 -1.442695, %v1947_v2 }
0x11bb   :  { %5629 = vtanh.f32 %v1947_v2 }
0x11bc   :  { %5631 = vpow2.f32 %v4901_v11 }
0x11bd   :  { %5633 = vpow2.f32 %v4902_v12 }
0x11c4   :  { %v5628_v43 = vpop.eup %5627 }
0x11c5   :  { %v5630_v8 = vpop.eup %5629  ;;  %1975 = vrot.lane.b32.xlu0 %v5628_v43, %s6209_s10 }
0x11c6   :  { %1977 = vrot.lane.b32.xlu1 %v5630_v8, %s6209_s10  ;;  %v5632_v3 = vpop.eup %5631 }
0x11c7   :  { %v5634_v13 = vpop.eup %5633  ;;  %v1954_v14 = vadd.f32 1.0, %v5632_v3 }
0x11c8   :  { %v1955_v15 = vadd.f32 1.0, %v5634_v13 }
0x11c9   :  { %1965 = vrot.lane.b32.xlu0 %v1963_v9, %s6210_s0  ;;  %5635 = vrcp.f32 %v1954_v14 }
0x11ca   :  { %1967 = vrot.lane.b32.xlu1 %v1964_v10, %s6210_s0  ;;  %5637 = vrcp.f32 %v1955_v15 }
0x11d3   :  { %v5636_v16 = vpop.eup %5635 }
0x11d4   :  { %v5638_v18 = vpop.eup %5637 }
0x1237   :  { %v1976_v17 = vpop.permute.xlu0 %1975 }
0x1238   :  { %v1978_v19 = vpop.permute.xlu1 %1977  ;;  %v1981_v20 = vmul.f32 %v5636_v16, %v1976_v17 }
0x1239   :  { %v1982_v21 = vmul.f32 %v5638_v18, %v1978_v19 }
0x123a   :  { %1985 = vrot.lane.b32.xlu0 %v1981_v20, %s6210_s0 }
0x123b   :  { %1987 = vrot.lane.b32.xlu1 %v1982_v21, %s6210_s0  ;;  %v1966_v25 = vpop.permute.xlu0 %1965 }
0x123c   :  { %v1968_v26 = vpop.permute.xlu1 %1967  ;;  %v1971_v27 = vmul.f32 %v5636_v16, %v1966_v25 }
0x123d   :  { %v1972_v29 = vmul.f32 %v5638_v18, %v1968_v26 }
0x12ac   :  { %v1986_v30 = vpop.permute.xlu0 %1985 }
0x12ad   :  { %v1988_v33 = vpop.permute.xlu1 %1987  ;;  %v1991_v34 = vadd.f32 %v1986_v30, %v1971_v27 }
0x12ae   :  { %v1992_v22 = vadd.f32 %v1988_v33, %v1972_v29 }
0x12af   :  { %5639 = vtanh.f32 %v1991_v34  ;;  %v2011_v41 = vrot.slane %v1991_v34, 2 }
0x12b0   :  { %5641 = vtanh.f32 %v1992_v22  ;;  %v2012_v40 = vrot.slane %v1992_v22, 1 }
0x12b2   :  { %v2013_v44 = vsel %vm1629_vm7, %v2012_v40, %v2011_v41 }
0x12b9   :  { %v5640_v37 = vpop.eup %5639 }
0x12ba   :  { %v5642_v38 = vpop.eup %5641  ;;  %1997 = vrot.lane.b32.xlu0 %v5640_v37, %s6209_s10  ;;  %v6214_v37 = vmov 3  }
0x12bb   :  { %1999 = vrot.lane.b32.xlu1 %v5642_v38, %s6209_s10 }
0x12be   :  { %2006 = vperm.xlu0 %5563, %v6612_v31  }
0x12bf   :  { %2019 = vperm.xlu1 %5564, %v6617_v32  }
0x12c2   :  { %2014 = vrot.lane.b32.xlu0 %v2013_v44, %s6211_s12 }
0x12c3   :  { %5565 = vset.pattern.permute.xlu1 %v6214_v37  ;;  %5566 = vset.pattern.permute.xlu0 %v6214_v37 }
0x132c   :  { %v1998_v49 = vpop.permute.xlu0 %1997 }
0x132d   :  { %v2000_v51 = vpop.permute.xlu1 %1999  ;;  %v2003_v52 = vmul.f32 %v5636_v16, %v1998_v49 }
0x132e   :  { %v2004_v54 = vmul.f32 %v5638_v18, %v2000_v51 }
0x132f   :  { %v2026_v55 = vrot.slane %v2003_v52, 2 }
0x1330   :  { %v2027_v56 = vrot.slane %v2004_v54, 1 }
0x1332   :  { %v2028_v50 = vsel %vm1629_vm7, %v2027_v56, %v2026_v55 }
0x1333   :  { %2029 = vrot.lane.b32.xlu1 %v2028_v50, %s6210_s0 }
0x133d   :  { %v6716_v58 = vpop.permute.xlu0 %2006 }
0x133e   :  { %v6714_v57 = vpop.permute.xlu1 %2019 }
0x133f   :  { %v2033_v60 = vmul.f32 %v6714_v57, %v6675_v53  ;;  %v2022_v14 = vmul.f32 %v6714_v57, %v6696_v6 }
0x1341   :  { %v2015_v3 = vpop.permute.xlu0 %2014 }
0x1342   :  { %v2017_v13 = vmul.f32 %v2015_v3, %v6716_v58 }
0x1344   :  { %v6742_v15 = vadd.f32 %v2022_v14, %v2017_v13 }
0x1346   :  { %v2156_v18 = vrot.slane %v6742_v15, 5  ;;  %v2157_v19 = vrot.slane %v6742_v15, 6 }
0x13a5   :  { %v2030_v59 = vpop.permute.xlu1 %2029 }
0x13a6   :  { %v2032_v62 = vmul.f32 %v2030_v59, %v6716_v58 }
0x13a8   :  { %v6721_v2 = vadd.f32 %v2033_v60, %v2032_v62 }
0x13aa   :  { %v2042_v4 = vrot.slane %v6721_v2, %v6510_v1  ;;  %5250 = vmatmul.mubr.msk.f32.vlgmr.msra.gmra.mrb[12].mxu0 %vm380_vm3, %v6721_v2 }
0x13ab   :  { %5469 = vmatpush3.bf16.msra.mxu0 %v6566_v35  ;;  %5271 = vmatprep.mubr.msk.f32.mxu0 %vm6206_vm4, %v6205_v24 }
0x13ac   :  { %v2043_v5 = vcombine.high %v2042_v4, %v2042_v4  ;;  %v2050_v42 = vrot.slane %v2042_v4, %v6510_v1  ;;  %5470 = vmatprep.subr.bf16.mxu0 %v6208_v36 }
0x13ae   :  { %v2057_v53 = vrot.slane %v2043_v5, %v6510_v1  ;;  %2060 = vst.msk [vmem:[#allocation2 + $0x2] sm:$0x1] %vm1677_vm8, %v2050_v42 }
0x13af   :  { %5472 = vmatpush3.bf16.msra.mxu0 %v6574_v39 }
0x13b0   :  { %2061 = vst.msk [vmem:[#allocation2 + $0xa] sm:$0x1] %vm1677_vm8, %v2057_v53  ;;  %5479 = vmatprep.subr.bf16.mxu0 %v6208_v36 }
0x147d   :  { %v2130_v43 = vpop.f32.mrb[12].mxu0 }
0x147e   :  { %v2135_v8 = vrot.slane %v2130_v43, 5  ;;  %v2136_v9 = vrot.slane %v2130_v43, 6  ;;  %v5251_v10 = vpop.f32.mrb[13].mxu0 }
0x1480   :  { %v2139_v11 = vadd.f32 %v2135_v8, %v6595_v61  ;;  %v2140_v12 = vadd.f32 %v2136_v9, %v6597_v0 }
0x1482   :  { %5643 = vtanh.f32 %v2139_v11  ;;  %v4904_v20 = vmul.f32 -1.442695, %v2139_v11  ;;  %v4905_v21 = vmul.f32 -1.442695, %v2140_v12 }
0x1483   :  { %5645 = vtanh.f32 %v2140_v12 }
0x1484   :  { %5647 = vpow2.f32 %v4904_v20 }
0x1485   :  { %5649 = vpow2.f32 %v4905_v21 }
0x148c   :  { %v5644_v16 = vpop.eup %5643 }
0x148d   :  { %v5646_v17 = vpop.eup %5645  ;;  %2168 = vrot.lane.b32.xlu1 %v5644_v16, %s6209_s10 }
0x148e   :  { %2170 = vrot.lane.b32.xlu0 %v5646_v17, %s6209_s10  ;;  %v5648_v6 = vpop.eup %5647 }
0x148f   :  { %v5650_v23 = vpop.eup %5649  ;;  %v2147_v25 = vadd.f32 1.0, %v5648_v6 }
0x1490   :  { %v2148_v26 = vadd.f32 1.0, %v5650_v23 }
0x1491   :  { %2158 = vrot.lane.b32.xlu1 %v2156_v18, %s6210_s0  ;;  %5651 = vrcp.f32 %v2147_v25 }
0x1492   :  { %2160 = vrot.lane.b32.xlu0 %v2157_v19, %s6210_s0  ;;  %5653 = vrcp.f32 %v2148_v26 }
0x149b   :  { %v5652_v27 = vpop.eup %5651 }
0x149c   :  { %v5654_v30 = vpop.eup %5653 }
0x14ff   :  { %v2169_v29 = vpop.permute.xlu1 %2168 }
0x1500   :  { %v2174_v33 = vmul.f32 %v5652_v27, %v2169_v29  ;;  %v2171_v34 = vpop.permute.xlu0 %2170 }
0x1501   :  { %v2175_v22 = vmul.f32 %v5654_v30, %v2171_v34 }
0x1502   :  { %2178 = vrot.lane.b32.xlu1 %v2174_v33, %s6210_s0 }
0x1503   :  { %2180 = vrot.lane.b32.xlu0 %v2175_v22, %s6210_s0  ;;  %v2159_v38 = vpop.permute.xlu1 %2158 }
0x1504   :  { %v2161_v40 = vpop.permute.xlu0 %2160  ;;  %v2164_v41 = vmul.f32 %v5652_v27, %v2159_v38 }
0x1505   :  { %v2165_v44 = vmul.f32 %v5654_v30, %v2161_v40 }
0x1574   :  { %v2179_v49 = vpop.permute.xlu1 %2178 }
0x1575   :  { %v2184_v51 = vadd.f32 %v2179_v49, %v2164_v41  ;;  %v2181_v52 = vpop.permute.xlu0 %2180 }
0x1576   :  { %v2185_v54 = vadd.f32 %v2181_v52, %v2165_v44 }
0x1577   :  { %5655 = vtanh.f32 %v2184_v51  ;;  %v2204_v55 = vrot.slane %v2184_v51, 3 }
0x1578   :  { %5657 = vtanh.f32 %v2185_v54  ;;  %v2205_v56 = vrot.slane %v2185_v54, 2 }
0x157a   :  { %v2206_v50 = vsel %vm1629_vm7, %v2205_v56, %v2204_v55 }
0x1581   :  { %v5656_v59 = vpop.eup %5655 }
0x1582   :  { %v5658_v60 = vpop.eup %5657  ;;  %2190 = vrot.lane.b32.xlu1 %v5656_v59, %s6209_s10 }
0x1583   :  { %2192 = vrot.lane.b32.xlu0 %v5658_v60, %s6209_s10 }
0x1586   :  { %2199 = vperm.xlu1 %5565, %v6612_v31  }
0x1587   :  { %2212 = vperm.xlu0 %5566, %v6617_v32  }
0x15f4   :  { %v2191_v62 = vpop.permute.xlu1 %2190 }
0x15f5   :  { %v2196_v4 = vmul.f32 %v5652_v27, %v2191_v62  ;;  %v2193_v5 = vpop.permute.xlu0 %2192 }
0x15f6   :  { %v2197_v42 = vmul.f32 %v5654_v30, %v2193_v5 }
0x15f7   :  { %v2219_v53 = vrot.slane %v2196_v4, 3 }
0x15f8   :  { %v2220_v43 = vrot.slane %v2197_v42, 2 }
0x15fa   :  { %v2221_v8 = vsel %vm1629_vm7, %v2220_v43, %v2219_v53 }
0x15fb   :  { %2222 = vrot.lane.b32.xlu1 %v2221_v8, %s6210_s0 }
0x15ff   :  { %2207 = vrot.lane.b32.xlu1 %v2206_v50, %s6211_s12  ;;  %v6215_v50 = vmov 4  }
0x1600   :  { %5568 = vset.pattern.permute.xlu1 %v6215_v50  ;;  %5567 = vset.pattern.permute.xlu0 %v6215_v50 }
0x1605   :  { %v6760_v9 = vpop.permute.xlu1 %2199 }
0x1606   :  { %v6762_v10 = vpop.permute.xlu0 %2212 }
0x1607   :  { %v2226_v3 = vmul.f32 %v6762_v10, %v6721_v2  ;;  %v2215_v27 = vmul.f32 %v6762_v10, %v6742_v15 }
0x166d   :  { %v2223_v11 = vpop.permute.xlu1 %2222 }
0x166e   :  { %v2225_v12 = vmul.f32 %v2223_v11, %v6760_v9 }
0x1670   :  { %v6767_v13 = vadd.f32 %v2226_v3, %v2225_v12 }
0x1671   :  { %v2208_v25 = vpop.permute.xlu1 %2207 }
0x1672   :  { %v2235_v14 = vrot.slane %v6767_v13, %v6510_v1  ;;  %5261 = vmatmul.mubr.msk.f32.vlgmr.msra.gmra.mrb[18].mxu1 %vm380_vm3, %v6767_v13  ;;  %v2210_v26 = vmul.f32 %v2208_v25, %v6760_v9 }
0x1673   :  { %5475 = vmatpush3.bf16.msra.mxu1 %v6566_v35  ;;  %5282 = vmatprep.mubr.msk.f32.mxu1 %vm6206_vm4, %v6205_v24 }
0x1674   :  { %v2236_v16 = vcombine.high %v2235_v14, %v2235_v14  ;;  %v2243_v17 = vrot.slane %v2235_v14, %v6510_v1  ;;  %5476 = vmatprep.subr.bf16.mxu1 %v6208_v36  ;;  %v6787_v29 = vadd.f32 %v2215_v27, %v2210_v26 }
0x1676   :  { %v2250_v2 = vrot.slane %v2236_v16, %v6510_v1  ;;  %2253 = vst.msk [vmem:[#allocation2 + $0x3] sm:$0x1] %vm1677_vm8, %v2243_v17  ;;  %v2349_v34 = vrot.slane %v6787_v29, 4  ;;  %v2350_v22 = vrot.slane %v6787_v29, 5 }
0x1677   :  { %5478 = vmatpush3.bf16.msra.mxu1 %v6574_v39 }
0x1678   :  { %2254 = vst.msk [vmem:[#allocation2 + $0xb] sm:$0x1] %vm1677_vm8, %v2250_v2 }
0x1745   :  { %v2323_v18 = vpop.f32.mrb[18].mxu1 }
0x1746   :  { %v2328_v19 = vrot.slane %v2323_v18, 4  ;;  %v2329_v20 = vrot.slane %v2323_v18, 5  ;;  %v5262_v21 = vpop.f32.mrb[19].mxu1 }
0x1748   :  { %v2332_v6 = vadd.f32 %v2328_v19, %v6595_v61  ;;  %v2333_v23 = vadd.f32 %v2329_v20, %v6597_v0 }
0x174a   :  { %5659 = vtanh.f32 %v2332_v6  ;;  %v4907_v37 = vmul.f32 -1.442695, %v2332_v6  ;;  %v4908_v38 = vmul.f32 -1.442695, %v2333_v23 }
0x174b   :  { %5661 = vtanh.f32 %v2333_v23 }
0x174c   :  { %5663 = vpow2.f32 %v4907_v37 }
0x174d   :  { %5665 = vpow2.f32 %v4908_v38 }
0x1754   :  { %v5660_v30 = vpop.eup %5659 }
0x1755   :  { %v5662_v33 = vpop.eup %5661  ;;  %2361 = vrot.lane.b32.xlu0 %v5660_v30, %s6209_s10 }
0x1756   :  { %2363 = vrot.lane.b32.xlu1 %v5662_v33, %s6209_s10  ;;  %v5664_v15 = vpop.eup %5663 }
0x1757   :  { %v5666_v40 = vpop.eup %5665  ;;  %v2340_v41 = vadd.f32 1.0, %v5664_v15 }
0x1758   :  { %v2341_v44 = vadd.f32 1.0, %v5666_v40 }
0x1759   :  { %2351 = vrot.lane.b32.xlu0 %v2349_v34, %s6210_s0  ;;  %5667 = vrcp.f32 %v2340_v41 }
0x175a   :  { %2353 = vrot.lane.b32.xlu1 %v2350_v22, %s6210_s0  ;;  %5669 = vrcp.f32 %v2341_v44 }
0x1763   :  { %v5668_v49 = vpop.eup %5667 }
0x1764   :  { %v5670_v52 = vpop.eup %5669 }
0x17c7   :  { %v2362_v51 = vpop.permute.xlu0 %2361 }
0x17c8   :  { %v2364_v54 = vpop.permute.xlu1 %2363  ;;  %v2367_v55 = vmul.f32 %v5668_v49, %v2362_v51 }
0x17c9   :  { %v2368_v56 = vmul.f32 %v5670_v52, %v2364_v54 }
0x17ca   :  { %2371 = vrot.lane.b32.xlu0 %v2367_v55, %s6210_s0 }
0x17cb   :  { %2373 = vrot.lane.b32.xlu1 %v2368_v56, %s6210_s0  ;;  %v2352_v59 = vpop.permute.xlu0 %2351 }
0x17cc   :  { %v2354_v60 = vpop.permute.xlu1 %2353  ;;  %v2357_v62 = vmul.f32 %v5668_v49, %v2352_v59 }
0x17cd   :  { %v2358_v4 = vmul.f32 %v5670_v52, %v2354_v60 }
0x183c   :  { %v2372_v5 = vpop.permute.xlu0 %2371 }
0x183d   :  { %v2374_v42 = vpop.permute.xlu1 %2373  ;;  %v2377_v53 = vadd.f32 %v2372_v5, %v2357_v62 }
0x183e   :  { %v2378_v43 = vadd.f32 %v2374_v42, %v2358_v4 }
0x183f   :  { %5671 = vtanh.f32 %v2377_v53  ;;  %v2397_v3 = vrot.slane %v2377_v53, 4 }
0x1840   :  { %5673 = vtanh.f32 %v2378_v43  ;;  %v2398_v12 = vrot.slane %v2378_v43, 3 }
0x1842   :  { %v2399_v14 = vsel %vm1629_vm7, %v2398_v12, %v2397_v3 }
0x1849   :  { %v5672_v8 = vpop.eup %5671 }
0x184a   :  { %v5674_v11 = vpop.eup %5673  ;;  %2383 = vrot.lane.b32.xlu0 %v5672_v8, %s6209_s10 }
0x184b   :  { %2385 = vrot.lane.b32.xlu1 %v5674_v11, %s6209_s10  ;;  %v6216_v11 = vmov 5  }
0x184e   :  { %2392 = vperm.xlu0 %5567, %v6612_v31  }
0x184f   :  { %2405 = vperm.xlu1 %5568, %v6617_v32  }
0x1852   :  { %2400 = vrot.lane.b32.xlu0 %v2399_v14, %s6211_s12 }
0x1853   :  { %5569 = vset.pattern.permute.xlu1 %v6216_v11  ;;  %5570 = vset.pattern.permute.xlu0 %v6216_v11 }
0x18bc   :  { %v2384_v16 = vpop.permute.xlu0 %2383 }
0x18bd   :  { %v2386_v17 = vpop.permute.xlu1 %2385  ;;  %v2389_v2 = vmul.f32 %v5668_v49, %v2384_v16 }
0x18be   :  { %v2390_v18 = vmul.f32 %v5670_v52, %v2386_v17 }
0x18bf   :  { %v2412_v19 = vrot.slane %v2389_v2, 4 }
0x18c0   :  { %v2413_v20 = vrot.slane %v2390_v18, 3 }
0x18c2   :  { %v2414_v21 = vsel %vm1629_vm7, %v2413_v20, %v2412_v19 }
0x18c3   :  { %2415 = vrot.lane.b32.xlu1 %v2414_v21, %s6210_s0 }
0x18cd   :  { %v6807_v23 = vpop.permute.xlu0 %2392 }
0x18ce   :  { %v6805_v6 = vpop.permute.xlu1 %2405 }
0x18cf   :  { %v2419_v26 = vmul.f32 %v6805_v6, %v6767_v13  ;;  %v2408_v49 = vmul.f32 %v6805_v6, %v6787_v29 }
0x18d1   :  { %v2401_v44 = vpop.permute.xlu0 %2400 }
0x1935   :  { %v2416_v25 = vpop.permute.xlu1 %2415 }
0x1936   :  { %v2418_v27 = vmul.f32 %v2416_v25, %v6807_v23 }
0x1938   :  { %v6812_v30 = vadd.f32 %v2419_v26, %v2418_v27 }
0x193a   :  { %v2428_v33 = vrot.slane %v6812_v30, %v6510_v1  ;;  %5272 = vmatmul.mubr.msk.f32.vlgmr.msra.gmra.mrb[14].mxu0 %vm380_vm3, %v6812_v30 }
0x193b   :  { %5481 = vmatpush3.bf16.msra.mxu0 %v6566_v35  ;;  %5293 = vmatprep.mubr.msk.f32.mxu0 %vm6206_vm4, %v6205_v24 }
0x193c   :  { %v2429_v34 = vcombine.high %v2428_v33, %v2428_v33  ;;  %v2436_v22 = vrot.slane %v2428_v33, %v6510_v1  ;;  %5482 = vmatprep.subr.bf16.mxu0 %v6208_v36  ;;  %v2403_v36 = vmul.f32 %v2401_v44, %v6807_v23 }
0x193e   :  { %v2443_v13 = vrot.slane %v2429_v34, %v6510_v1  ;;  %2446 = vst.msk [vmem:[#allocation2 + $0x4] sm:$0x1] %vm1677_vm8, %v2436_v22  ;;  %v6832_v51 = vadd.f32 %v2408_v49, %v2403_v36 }
0x193f   :  { %5484 = vmatpush3.bf16.msra.mxu0 %v6574_v39 }
0x1940   :  { %2447 = vst.msk [vmem:[#allocation2 + $0xc] sm:$0x1] %vm1677_vm8, %v2443_v13  ;;  %v2542_v54 = vrot.slane %v6832_v51, 3  ;;  %v2543_v55 = vrot.slane %v6832_v51, 4 }
0x1a0d   :  { %v2516_v37 = vpop.f32.mrb[14].mxu0 }
0x1a0e   :  { %v2521_v38 = vrot.slane %v2516_v37, 3  ;;  %v2522_v15 = vrot.slane %v2516_v37, 4  ;;  %v5273_v35 = vpop.f32.mrb[15].mxu0 }
0x1a10   :  { %v2525_v40 = vadd.f32 %v2521_v38, %v6595_v61  ;;  %v2526_v41 = vadd.f32 %v2522_v15, %v6597_v0 }
0x1a12   :  { %5675 = vtanh.f32 %v2525_v40  ;;  %v4910_v56 = vmul.f32 -1.442695, %v2525_v40  ;;  %v4911_v50 = vmul.f32 -1.442695, %v2526_v41 }
0x1a13   :  { %5677 = vtanh.f32 %v2526_v41 }
0x1a14   :  { %5679 = vpow2.f32 %v4910_v56 }
0x1a15   :  { %5681 = vpow2.f32 %v4911_v50 }
0x1a1c   :  { %v5676_v39 = vpop.eup %5675 }
0x1a1d   :  { %v5678_v52 = vpop.eup %5677  ;;  %2554 = vrot.lane.b32.xlu1 %v5676_v39, %s6209_s10 }
0x1a1e   :  { %2556 = vrot.lane.b32.xlu0 %v5678_v52, %s6209_s10  ;;  %v5680_v29 = vpop.eup %5679 }
0x1a1f   :  { %v5682_v59 = vpop.eup %5681  ;;  %v2533_v60 = vadd.f32 1.0, %v5680_v29 }
0x1a20   :  { %v2534_v62 = vadd.f32 1.0, %v5682_v59 }
0x1a21   :  { %2544 = vrot.lane.b32.xlu1 %v2542_v54, %s6210_s0  ;;  %5683 = vrcp.f32 %v2533_v60 }
0x1a22   :  { %2546 = vrot.lane.b32.xlu0 %v2543_v55, %s6210_s0  ;;  %5685 = vrcp.f32 %v2534_v62 }
0x1a2b   :  { %v5684_v4 = vpop.eup %5683 }
0x1a2c   :  { %v5686_v42 = vpop.eup %5685 }
0x1a8f   :  { %v2555_v5 = vpop.permute.xlu1 %2554 }
0x1a90   :  { %v2560_v53 = vmul.f32 %v5684_v4, %v2555_v5  ;;  %v2557_v43 = vpop.permute.xlu0 %2556 }
0x1a91   :  { %v2561_v8 = vmul.f32 %v5686_v42, %v2557_v43 }
0x1a92   :  { %2564 = vrot.lane.b32.xlu1 %v2560_v53, %s6210_s0 }
0x1a93   :  { %2566 = vrot.lane.b32.xlu0 %v2561_v8, %s6210_s0  ;;  %v2545_v12 = vpop.permute.xlu1 %2544 }
0x1a94   :  { %v2547_v3 = vpop.permute.xlu0 %2546  ;;  %v2550_v14 = vmul.f32 %v5684_v4, %v2545_v12 }
0x1a95   :  { %v2551_v16 = vmul.f32 %v5686_v42, %v2547_v3 }
0x1b04   :  { %v2565_v17 = vpop.permute.xlu1 %2564 }
0x1b05   :  { %v2570_v2 = vadd.f32 %v2565_v17, %v2550_v14  ;;  %v2567_v18 = vpop.permute.xlu0 %2566 }
0x1b06   :  { %v2571_v19 = vadd.f32 %v2567_v18, %v2551_v16 }
0x1b07   :  { %5687 = vtanh.f32 %v2570_v2  ;;  %v2590_v20 = vrot.slane %v2570_v2, 5 }
0x1b08   :  { %5689 = vtanh.f32 %v2571_v19  ;;  %v2591_v21 = vrot.slane %v2571_v19, 4 }
0x1b0a   :  { %v2592_v25 = vsel %vm1629_vm7, %v2591_v21, %v2590_v20 }
0x1b11   :  { %v5688_v26 = vpop.eup %5687 }
0x1b12   :  { %v5690_v27 = vpop.eup %5689  ;;  %2576 = vrot.lane.b32.xlu1 %v5688_v26, %s6209_s10  ;;  %v6217_v26 = vmov 6  }
0x1b13   :  { %2578 = vrot.lane.b32.xlu0 %v5690_v27, %s6209_s10 }
0x1b16   :  { %2585 = vperm.xlu1 %5569, %v6612_v31  }
0x1b17   :  { %2598 = vperm.xlu0 %5570, %v6617_v32  }
0x1b1a   :  { %5572 = vset.pattern.permute.xlu1 %v6217_v26 }
0x1b1b   :  { %5571 = vset.pattern.permute.xlu0 %v6217_v26 }
0x1b84   :  { %v2577_v33 = vpop.permute.xlu1 %2576 }
0x1b85   :  { %v2582_v34 = vmul.f32 %v5684_v4, %v2577_v33  ;;  %v2579_v22 = vpop.permute.xlu0 %2578 }
0x1b86   :  { %v2583_v13 = vmul.f32 %v5686_v42, %v2579_v22 }
0x1b87   :  { %v2605_v37 = vrot.slane %v2582_v34, 5 }
0x1b88   :  { %v2606_v38 = vrot.slane %v2583_v13, 4 }
0x1b8a   :  { %v2607_v15 = vsel %vm1629_vm7, %v2606_v38, %v2605_v37 }
0x1b8b   :  { %2608 = vrot.lane.b32.xlu1 %v2607_v15, %s6210_s0 }
0x1b8f   :  { %2593 = vrot.lane.b32.xlu1 %v2592_v25, %s6211_s12 }
0x1b95   :  { %v6850_v35 = vpop.permute.xlu1 %2585 }
0x1b96   :  { %v6852_v40 = vpop.permute.xlu0 %2598 }
0x1b97   :  { %v2612_v36 = vmul.f32 %v6852_v40, %v6812_v30  ;;  %v2601_v5 = vmul.f32 %v6852_v40, %v6832_v51 }
0x1bfd   :  { %v2609_v41 = vpop.permute.xlu1 %2608 }
0x1bfe   :  { %v2611_v44 = vmul.f32 %v2609_v41, %v6850_v35 }
0x1c00   :  { %v6857_v49 = vadd.f32 %v2612_v36, %v2611_v44 }
0x1c01   :  { %v2594_v62 = vpop.permute.xlu1 %2593 }
0x1c02   :  { %v2621_v39 = vrot.slane %v6857_v49, %v6510_v1  ;;  %5283 = vmatmul.mubr.msk.f32.vlgmr.msra.gmra.mrb[20].mxu1 %vm380_vm3, %v6857_v49  ;;  %v2596_v4 = vmul.f32 %v2594_v62, %v6850_v35 }
0x1c04   :  { %v2622_v52 = vcombine.high %v2621_v39, %v2621_v39  ;;  %v2629_v54 = vrot.slane %v2621_v39, %v6510_v1  ;;  %v6872_v42 = vadd.f32 %v2601_v5, %v2596_v4 }
0x1c06   :  { %v2636_v55 = vrot.slane %v2622_v52, %v6510_v1  ;;  %2639 = vst.msk [vmem:[#allocation2 + $0x5] sm:$0x1] %vm1677_vm8, %v2629_v54  ;;  %v2735_v8 = vrot.slane %v6872_v42, 2  ;;  %v2736_v11 = vrot.slane %v6872_v42, 3 }
0x1c08   :  { %2640 = vst.msk [vmem:[#allocation2 + $0xd] sm:$0x1] %vm1677_vm8, %v2636_v55 }
0x1cd5   :  { %v2709_v56 = vpop.f32.mrb[20].mxu1 }
0x1cd6   :  { %v2714_v50 = vrot.slane %v2709_v56, 2  ;;  %v2715_v30 = vrot.slane %v2709_v56, 3  ;;  %v5284_v29 = vpop.f32.mrb[21].mxu1 }
0x1cd8   :  { %v2718_v59 = vadd.f32 %v2714_v50, %v6595_v61  ;;  %v2719_v60 = vadd.f32 %v2715_v30, %v6597_v0 }
0x1cda   :  { %5691 = vtanh.f32 %v2718_v59  ;;  %v4913_v12 = vmul.f32 -1.442695, %v2718_v59  ;;  %v4914_v3 = vmul.f32 -1.442695, %v2719_v60 }
0x1cdb   :  { %5693 = vtanh.f32 %v2719_v60 }
0x1cdc   :  { %5695 = vpow2.f32 %v4913_v12 }
0x1cdd   :  { %5697 = vpow2.f32 %v4914_v3 }
0x1ce4   :  { %v5692_v53 = vpop.eup %5691 }
0x1ce5   :  { %v5694_v43 = vpop.eup %5693  ;;  %2747 = vrot.lane.b32.xlu0 %v5692_v53, %s6209_s10 }
0x1ce6   :  { %2749 = vrot.lane.b32.xlu1 %v5694_v43, %s6209_s10  ;;  %v5696_v51 = vpop.eup %5695 }
0x1ce7   :  { %v5698_v14 = vpop.eup %5697  ;;  %v2726_v16 = vadd.f32 1.0, %v5696_v51 }
0x1ce8   :  { %v2727_v17 = vadd.f32 1.0, %v5698_v14 }
0x1ce9   :  { %2737 = vrot.lane.b32.xlu0 %v2735_v8, %s6210_s0  ;;  %5699 = vrcp.f32 %v2726_v16 }
0x1cea   :  { %2739 = vrot.lane.b32.xlu1 %v2736_v11, %s6210_s0  ;;  %5701 = vrcp.f32 %v2727_v17 }
0x1cf3   :  { %v5700_v2 = vpop.eup %5699 }
0x1cf4   :  { %v5702_v19 = vpop.eup %5701 }
0x1d57   :  { %v2748_v18 = vpop.permute.xlu0 %2747 }
0x1d58   :  { %v2750_v20 = vpop.permute.xlu1 %2749  ;;  %v2753_v21 = vmul.f32 %v5700_v2, %v2748_v18 }
0x1d59   :  { %v2754_v25 = vmul.f32 %v5702_v19, %v2750_v20 }
0x1d5a   :  { %2757 = vrot.lane.b32.xlu0 %v2753_v21, %s6210_s0 }
0x1d5b   :  { %2759 = vrot.lane.b32.xlu1 %v2754_v25, %s6210_s0  ;;  %v2738_v27 = vpop.permute.xlu0 %2737 }
0x1d5c   :  { %v2740_v33 = vpop.permute.xlu1 %2739  ;;  %v2743_v34 = vmul.f32 %v5700_v2, %v2738_v27 }
0x1d5d   :  { %v2744_v22 = vmul.f32 %v5702_v19, %v2740_v33 }
0x1dcc   :  { %v2758_v13 = vpop.permute.xlu0 %2757 }
0x1dcd   :  { %v2760_v37 = vpop.permute.xlu1 %2759  ;;  %v2763_v38 = vadd.f32 %v2758_v13, %v2743_v34 }
0x1dce   :  { %v2764_v15 = vadd.f32 %v2760_v37, %v2744_v22 }
0x1dcf   :  { %5703 = vtanh.f32 %v2763_v38  ;;  %v2783_v39 = vrot.slane %v2763_v38, 6 }
0x1dd0   :  { %5705 = vtanh.f32 %v2764_v15  ;;  %v2784_v36 = vrot.slane %v2764_v15, 5 }
0x1dd2   :  { %v2785_v52 = vsel %vm1629_vm7, %v2784_v36, %v2783_v39  ;;  %v6218_v39 = vmov 7  }
0x1dd9   :  { %v5704_v41 = vpop.eup %5703 }
0x1dda   :  { %v5706_v44 = vpop.eup %5705  ;;  %2769 = vrot.lane.b32.xlu0 %v5704_v41, %s6209_s10 }
0x1ddb   :  { %2771 = vrot.lane.b32.xlu1 %v5706_v44, %s6209_s10 }
0x1dde   :  { %2778 = vperm.xlu0 %5571, %v6612_v31  }
0x1ddf   :  { %2791 = vperm.xlu1 %5572, %v6617_v32  }
0x1de2   :  { %2786 = vrot.lane.b32.xlu0 %v2785_v52, %s6211_s12 }
0x1de3   :  { %5573 = vset.pattern.permute.xlu1 %v6218_v39  ;;  %5574 = vset.pattern.permute.xlu0 %v6218_v39 }
0x1e4c   :  { %v2770_v54 = vpop.permute.xlu0 %2769 }
0x1e4d   :  { %v2772_v55 = vpop.permute.xlu1 %2771  ;;  %v2775_v56 = vmul.f32 %v5700_v2, %v2770_v54 }
0x1e4e   :  { %v2776_v50 = vmul.f32 %v5702_v19, %v2772_v55 }
0x1e4f   :  { %v2798_v30 = vrot.slane %v2775_v56, 6 }
0x1e50   :  { %v2799_v29 = vrot.slane %v2776_v50, 5 }
0x1e52   :  { %v2800_v59 = vsel %vm1629_vm7, %v2799_v29, %v2798_v30 }
0x1e53   :  { %2801 = vrot.lane.b32.xlu1 %v2800_v59, %s6210_s0 }
0x1e5d   :  { %v6892_v62 = vpop.permute.xlu0 %2778 }
0x1e5e   :  { %v6890_v60 = vpop.permute.xlu1 %2791 }
0x1e5f   :  { %v2805_v5 = vmul.f32 %v6890_v60, %v6857_v49  ;;  %v2794_v20 = vmul.f32 %v6890_v60, %v6872_v42 }
0x1e61   :  { %v2787_v18 = vpop.permute.xlu0 %2786 }
0x1e62   :  { %v2789_v19 = vmul.f32 %v2787_v18, %v6892_v62 }
0x1e64   :  { %v2795_v21 = vadd.f32 %v2794_v20, %v2789_v19 }
0x1e66   :  { %v2928_v27 = vrot.slane %v2795_v21, 1  ;;  %v2929_v33 = vrot.slane %v2795_v21, 2 }
0x1ec5   :  { %v2802_v4 = vpop.permute.xlu1 %2801 }
0x1ec6   :  { %v2804_v53 = vmul.f32 %v2802_v4, %v6892_v62 }
0x1ec8   :  { %v6897_v43 = vadd.f32 %v2805_v5, %v2804_v53 }
0x1eca   :  { %v2814_v8 = vrot.slane %v6897_v43, %v6510_v1  ;;  %5294 = vmatmul.mubr.msk.f32.vlgmr.msra.gmra.mrb[16].mxu0 %vm380_vm3, %v6897_v43 }
0x1ecc   :  { %v2815_v11 = vcombine.high %v2814_v8, %v2814_v8  ;;  %v2822_v12 = vrot.slane %v2814_v8, %v6510_v1 }
0x1ece   :  { %v2829_v3 = vrot.slane %v2815_v11, %v6510_v1  ;;  %2832 = vst.msk [vmem:[#allocation2 + $0x6] sm:$0x1] %vm1677_vm8, %v2822_v12  ;;  %v3018_v12 = vld [vmem:[%s7307_s19] sm:$0xff] }
0x1ed0   :  { %2833 = vst.msk [vmem:[#allocation2 + $0xe] sm:$0x1] %vm1677_vm8, %v2829_v3  ;;  %v3019_v3 = vld [vmem:[%s7307_s19 + $0x8] sm:$0xff] }
0x1f9d   :  { %v2902_v49 = vpop.f32.mrb[16].mxu0 }
0x1f9e   :  { %v2907_v51 = vrot.slane %v2902_v49, 1  ;;  %v2908_v14 = vrot.slane %v2902_v49, 2  ;;  %v5295_v16 = vpop.f32.mrb[17].mxu0 }
0x1fa0   :  { %v2911_v17 = vadd.f32 %v2907_v51, %v6595_v61  ;;  %v2912_v2 = vadd.f32 %v2908_v14, %v6597_v0  ;;  %v5485_v51 = vpack.c.bf16 %v3019_v3, %v3018_v12 }
0x1fa2   :  { %5707 = vtanh.f32 %v2911_v17  ;;  %v4916_v61 = vmul.f32 -1.442695, %v2911_v17  ;;  %v4917_v0 = vmul.f32 -1.442695, %v2912_v2  ;;  %5486 = vmatprep.subr.bf16.mxu1 %v5485_v51  ;;  %v3020_v17 = vld [vmem:[%s7307_s19 + $0x10] sm:$0xff] }
0x1fa3   :  { %5709 = vtanh.f32 %v2912_v2  ;;  %v3021_v2 = vld [vmem:[%s7307_s19 + $0x18] sm:$0xff]  ;;  %5488 = vmatpush3.bf16.msra.mxu1 %v5485_v51 }
0x1fa4   :  { %5711 = vpow2.f32 %v4916_v61  ;;  %v5489_v18 = vpack.c.bf16 %v3021_v2, %v3020_v17 }
0x1fa5   :  { %5713 = vpow2.f32 %v4917_v0 }
0x1fa6   :  { %5490 = vmatprep.subr.bf16.mxu1 %v5489_v18 }
0x1fa7   :  { %5492 = vmatpush3.bf16.msra.mxu1 %v5489_v18  ;;  %v4923_v18 = vld [vmem:[#allocation19] ss:$0 sm:$0xff] }
0x1fa8   :  { %5312 = vmatprep.subr.mxu1 %v6205_v24 }
0x1fac   :  { %v5708_v25 = vpop.eup %5707 }
0x1fad   :  { %v5710_v26 = vpop.eup %5709  ;;  %2940 = vrot.lane.b32.xlu1 %v5708_v25, %s6209_s10 }
0x1fae   :  { %2942 = vrot.lane.b32.xlu0 %v5710_v26, %s6209_s10  ;;  %v5712_v34 = vpop.eup %5711 }
0x1faf   :  { %v5714_v22 = vpop.eup %5713  ;;  %v2919_v42 = vadd.f32 1.0, %v5712_v34 }
0x1fb0   :  { %v2920_v13 = vadd.f32 1.0, %v5714_v22 }
0x1fb1   :  { %2930 = vrot.lane.b32.xlu1 %v2928_v27, %s6210_s0  ;;  %5715 = vrcp.f32 %v2919_v42 }
0x1fb2   :  { %2932 = vrot.lane.b32.xlu0 %v2929_v33, %s6210_s0  ;;  %5717 = vrcp.f32 %v2920_v13  ;;  %v3115_v13 = vrot.slane %v6606_v28, %v6515_v7 }
0x1fb4   :  { %vm3120_vm10 = vcmp.lt.s32.totalorder %v6506_v63, %v3115_v13 }
0x1fbb   :  { %v5716_v37 = vpop.eup %5715 }
0x1fbc   :  { %v5718_v15 = vpop.eup %5717 }
0x201f   :  { %v2941_v38 = vpop.permute.xlu1 %2940 }
0x2020   :  { %v2946_v41 = vmul.f32 %v5716_v37, %v2941_v38  ;;  %v2943_v44 = vpop.permute.xlu0 %2942 }
0x2021   :  { %v2947_v36 = vmul.f32 %v5718_v15, %v2943_v44 }
0x2022   :  { %2950 = vrot.lane.b32.xlu1 %v2946_v41, %s6210_s0 }
0x2023   :  { %2952 = vrot.lane.b32.xlu0 %v2947_v36, %s6210_s0  ;;  %v2931_v52 = vpop.permute.xlu1 %2930 }
0x2024   :  { %v2933_v54 = vpop.permute.xlu0 %2932  ;;  %v2936_v55 = vmul.f32 %v5716_v37, %v2931_v52 }
0x2025   :  { %v2937_v56 = vmul.f32 %v5718_v15, %v2933_v54  ;;  %v6958_v54 = vsel %vm3120_vm10, 1.0, %v6205_v24 }
0x2094   :  { %v2951_v50 = vpop.permute.xlu1 %2950 }
0x2095   :  { %v2956_v30 = vadd.f32 %v2951_v50, %v2936_v55  ;;  %v2953_v29 = vpop.permute.xlu0 %2952 }
0x2096   :  { %v2957_v59 = vadd.f32 %v2953_v29, %v2937_v56 }
0x2097   :  { %5719 = vtanh.f32 %v2956_v30 }
0x2098   :  { %5721 = vtanh.f32 %v2957_v59 }
0x20a1   :  { %v5720_v4 = vpop.eup %5719 }
0x20a2   :  { %v5722_v5 = vpop.eup %5721  ;;  %2962 = vrot.lane.b32.xlu1 %v5720_v4, %s6209_s10 }
0x20a3   :  { %2964 = vrot.lane.b32.xlu0 %v5722_v5, %s6209_s10 }
0x20a6   :  { %2971 = vperm.xlu1 %5573, %v6612_v31  }
0x20a7   :  { %2984 = vperm.xlu0 %5574, %v6617_v32  }
0x2114   :  { %v2963_v53 = vpop.permute.xlu1 %2962 }
0x2115   :  { %v2968_v8 = vmul.f32 %v5716_v37, %v2963_v53  ;;  %v2965_v11 = vpop.permute.xlu0 %2964  ;;  %v4918_v37 = vld [vmem:[%s7308_s11] ss:$0 sm:$0xff] }
0x2116   :  { %v2969_v49 = vmul.f32 %v5718_v15, %v2965_v11  ;;  %v6968_v11 = vld [vmem:[%s7310_s16] sm:$0xff] }
0x2117   :  { %v2976_v14 = vrot.slane %v2968_v8, 7  ;;  %v3152_v8 = vld [vmem:[%s7309_s15] sm:$0xff] }
0x2118   :  { %v2977_v16 = vrot.slane %v2969_v49, 6  ;;  %5307 = vmatprep.subr.mxu0 %v3152_v8 }
0x2119   :  { %5308 = vmatpush3.msra.mxu0 %v3152_v8 }
0x211a   :  { %v2978_v19 = vsel %vm1629_vm7, %v2977_v16, %v2976_v14  ;;  %5317 = vmatprep.subr.mxu0 %v6205_v24 }
0x211b   :  { %2979 = vrot.lane.b32.xlu1 %v2978_v19, %s6210_s0 }
0x2125   :  { %v6929_v31 = vpop.permute.xlu1 %2971 }
0x2126   :  { %v6931_v32 = vpop.permute.xlu0 %2984 }
0x2127   :  { %v2987_v21 = vmul.f32 %v6931_v32, %v6897_v43  ;;  %v3118_v43 = vsub.s32 1, %v6506_v63 }
0x2129   :  { %v3119_v42 = vrot.slane %v6606_v28, %v3118_v43 }
0x212b   :  { %vm3121_vm9 = vcmp.lt.s32.totalorder %v6506_v63, %v3119_v42 }
0x212c   :  { %v6953_v36 = vsel %vm3121_vm9, 1.0, %v6205_v24 }
0x218d   :  { %v2980_v20 = vpop.permute.xlu1 %2979 }
0x218e   :  { %v2982_v25 = vmul.f32 %v2980_v20, %v6929_v31 }
0x2190   :  { %v2988_v26 = vadd.f32 %v2987_v21, %v2982_v25 }
0x2192   :  { %v2996_v27 = vrot.slane %v2988_v26, %v6510_v1 }
0x2194   :  { %v2997_v33 = vcombine.high %v2996_v27, %v2996_v27  ;;  %v3004_v61 = vrot.slane %v2996_v27, %v6510_v1 }
0x2196   :  { %v3011_v0 = vrot.slane %v2997_v33, %v6510_v1  ;;  %3014 = vst.msk [vmem:[#allocation2 + $0x7] sm:$0x1] %vm1677_vm8, %v3004_v61 }
0x2198   :  { %3015 = vst.msk [vmem:[#allocation2 + $0xf] sm:$0x1] %vm1677_vm8, %v3011_v0 }
0x219d   :  { %v3016_v34 = vld [vmem:[#allocation2] sm:$0xff] }
0x219e   :  { %5304 = vmatprep.mubr.msk.f32.mxu1 %vm380_vm3, %v3016_v34 }
0x219f   :  { %v3017_v22 = vld [vmem:[#allocation2 + $0x8] sm:$0xff] }
0x21a0   :  { %5305 = vmatmul.mubr.msk.f32.vlgmr.msra.gmra.mrb[22].mxu1 %vm380_vm3, %v3017_v22 }
0x21a1   :  { %5314 = vmatprep.mubr.msk.f32.mxu1 %vm6206_vm4, %v6205_v24  ;;  %5313 = vmatpush3.msra.mxu1 %v6968_v11 }
0x21a2   :  { %5322 = vmatprep.subr.mxu1 %v6205_v24 }
0x21a4   :  { %5315 = vmatmul.mubr.f32.vlgmr.msra.gmra.mrb[24].mxu1 %v6205_v24 }
0x21a5   :  { %5323 = vmatpush3.msra.mxu1 %v6968_v11  ;;  %5324 = vmatprep.mubr.msk.f32.mxu1 %vm6206_vm4, %v6205_v24 }
0x21a6   :  { %5332 = vmatprep.subr.mxu1 %v6205_v24 }
0x2273   :  { %v5306_v38 = vpop.f32.mrb[22].mxu1 }
0x2274   :  { %v3107_v15 = vadd.f32 %v5306_v38, %v4918_v37  ;;  %v3101_v41 = vpop.f32.mrb[23].mxu1 }
0x2275   :  { %v3102_v44 = vadd.f32 %v4918_v37, %v3101_v41 }
0x2276   :  { %v3133_v39 = vsel %vm831_vm5, %v3107_v15, -inf  ;;  %v3127_v52 = vmul.f32 %v6953_v36, %v3107_v15 }
0x2277   :  { %3134 = vmax.xlane.f32.xlu0 %v3133_v39  ;;  %v3130_v7 = vsel %vm831_vm5, %v3102_v44, -inf  ;;  %v3126_v28 = vmul.f32 %v6958_v54, %v3102_v44  ;;  %v3310_v17 = vpop.f32.mrb[24].mxu1 }
0x2278   :  { %3131 = vmax.xlane.f32.xlu1 %v3130_v7  ;;  %3129 = vst.msk [vmem:[#allocation23 + $0x8] sm:$0xff] %vm831_vm5, %v3127_v52  ;;  %v5316_v2 = vpop.f32.mrb[25].mxu1  ;;  %v3315_v19 = vrot.slane %v3310_v17, 1 }
0x2279   :  { %3128 = vst.msk [vmem:[#allocation23] sm:$0xff] %vm831_vm5, %v3126_v28 }
0x2304   :  { %v3135_v63 = vpop.xlane.xlu0 %3134 }
0x2305   :  { %v3137_v55 = vsub.f32 %v3107_v15, %v3135_v63  ;;  %v3132_v56 = vpop.xlane.xlu1 %3131 }
0x2306   :  { %v3136_v50 = vsub.f32 %v3102_v44, %v3132_v56 }
0x2307   :  { %v3140_v30 = vmul.f32 1.442695, %v3137_v55 }
0x2308   :  { %v3138_v29 = vmul.f32 1.442695, %v3136_v50 }
0x2309   :  { %5723 = vpow2.f32 %v3140_v30 }
0x230a   :  { %5725 = vpow2.f32 %v3138_v29 }
0x2313   :  { %v5724_v59 = vpop.eup %5723 }
0x2314   :  { %v5726_v4 = vpop.eup %5725  ;;  %v3145_v5 = vsel %vm831_vm5, %v5724_v59, 0.0 }
0x2315   :  { %3146 = vadd.xlane.f32.xlu1 %v3145_v5  ;;  %v3142_v53 = vsel %vm831_vm5, %v5726_v4, 0.0 }
0x2316   :  { %3143 = vadd.xlane.f32.xlu0 %v3142_v53 }
0x23a2   :  { %v3147_v12 = vpop.xlane.xlu1 %3146 }
0x23a3   :  { %5727 = vrcp.f32 %v3147_v12  ;;  %v3144_v3 = vpop.xlane.xlu0 %3143 }
0x23a4   :  { %5729 = vrcp.f32 %v3144_v3 }
0x23ad   :  { %v5728_v49 = vpop.eup %5727 }
0x23ae   :  { %v5730_v51 = vpop.eup %5729  ;;  %v3151_v16 = vmul.f32 %v5728_v49, %v5724_v59 }
0x23af   :  { %v3149_v14 = vmul.f32 %v5730_v51, %v5726_v4 }
0x23b1   :  { %5309 = vmatprep.mubr.msk.f32.mxu0 %vm831_vm5, %v3149_v14 }
0x23b2   :  { %5310 = vmatmul.mubr.msk.f32.vlgmr.msra.gmra.mrb[18].mxu0 %vm831_vm5, %v3151_v16 }
0x23b3   :  { %5318 = vmatpush3.msra.mxu0 %v6968_v11  ;;  %5319 = vmatprep.mubr.msk.f32.mxu0 %vm6206_vm4, %v6205_v24 }
0x23b4   :  { %5327 = vmatprep.subr.mxu0 %v6205_v24 }
0x2485   :  { %v5311_v20 = vpop.f32.mrb[18].mxu0 }
0x2486   :  { %v6984_v21 = vadd.f32 %v5311_v20, %v4923_v18  ;;  %v3233_v25 = vpop.f32.mrb[19].mxu0 }
0x2487   :  { %v6986_v26 = vadd.f32 %v4923_v18, %v3233_v25 }
0x2488   :  { %v3319_v27 = vadd.f32 %v3315_v19, %v6984_v21 }
0x2489   :  { %v3318_v33 = vadd.f32 %v3310_v17, %v6986_v26 }
0x248a   :  { %5731 = vtanh.f32 %v3319_v27  ;;  %v4927_v34 = vmul.f32 -1.442695, %v3319_v27 }
0x248b   :  { %5733 = vtanh.f32 %v3318_v33  ;;  %v4926_v22 = vmul.f32 -1.442695, %v3318_v33 }
0x248c   :  { %5735 = vpow2.f32 %v4927_v34 }
0x248d   :  { %5737 = vpow2.f32 %v4926_v22 }
0x2494   :  { %v5732_v61 = vpop.eup %5731 }
0x2495   :  { %v5734_v0 = vpop.eup %5733  ;;  %3340 = vrot.lane.b32.xlu0 %v5732_v61, %s6219_s18 }
0x2496   :  { %3338 = vrot.lane.b32.xlu1 %v5734_v0, %s6219_s18  ;;  %v5736_v43 = vpop.eup %5735 }
0x2497   :  { %v5738_v42 = vpop.eup %5737  ;;  %v3327_v13 = vadd.f32 1.0, %v5736_v43 }
0x2498   :  { %v3326_v37 = vadd.f32 1.0, %v5738_v42 }
0x2499   :  { %5739 = vrcp.f32 %v3327_v13 }
0x249a   :  { %5741 = vrcp.f32 %v3326_v37 }
0x24a3   :  { %v5740_v38 = vpop.eup %5739 }
0x24a4   :  { %v5742_v41 = vpop.eup %5741  ;;  %v3335_v7 = vmul.f32 0.0, %v5740_v38 }
0x24a5   :  { %v3334_v63 = vmul.f32 0.0, %v5742_v41 }
0x2507   :  { %v3341_v15 = vpop.permute.xlu0 %3340 }
0x2508   :  { %v3345_v44 = vmul.f32 %v5740_v38, %v3341_v15  ;;  %v3339_v39 = vpop.permute.xlu1 %3338 }
0x2509   :  { %v3344_v52 = vmul.f32 %v5742_v41, %v3339_v39 }
0x250a   :  { %3350 = vrot.lane.b32.xlu1 %v3345_v44, %s6220_s22 }
0x250b   :  { %3348 = vrot.lane.b32.xlu0 %v3344_v52, %s6220_s22 }
0x257c   :  { %v3351_v28 = vpop.permute.xlu1 %3350 }
0x257d   :  { %v3355_v55 = vadd.f32 %v3351_v28, %v3335_v7  ;;  %v3349_v56 = vpop.permute.xlu0 %3348 }
0x257e   :  { %v3354_v50 = vadd.f32 %v3349_v56, %v3334_v63 }
0x257f   :  { %5743 = vtanh.f32 %v3355_v55  ;;  %v3370_v59 = vrot.slane %v3355_v55, 7 }
0x2580   :  { %5745 = vtanh.f32 %v3354_v50 }
0x2581   :  { %v3371_v4 = vsel %vm1629_vm7, %v3370_v59, %v3354_v50 }
0x2589   :  { %v5744_v30 = vpop.eup %5743 }
0x258a   :  { %v5746_v29 = vpop.eup %5745  ;;  %3362 = vrot.lane.b32.xlu1 %v5744_v30, %s6221_s6 }
0x258b   :  { %3360 = vrot.lane.b32.xlu0 %v5746_v29, %s6221_s6 }
0x258f   :  { %3372 = vrot.lane.b32.xlu0 %v3371_v4, %s6222_s13 }
0x25fc   :  { %v3363_v5 = vpop.permute.xlu1 %3362 }
0x25fd   :  { %v3367_v53 = vmul.f32 %v5740_v38, %v3363_v5  ;;  %v3361_v8 = vpop.permute.xlu0 %3360 }
0x25fe   :  { %v3366_v12 = vmul.f32 %v5742_v41, %v3361_v8 }
0x25ff   :  { %v3379_v3 = vrot.slane %v3367_v53, 7 }
0x2601   :  { %v3380_v49 = vsel %vm1629_vm7, %v3379_v3, %v3366_v12  ;;  %v3373_v0 = vpop.permute.xlu0 %3372 }
0x2602   :  { %3381 = vrot.lane.b32.xlu1 %v3380_v49, %s6223_s8  ;;  %v3375_v34 = vmul.f32 %v3373_v0, %v6624_v45 }
0x2604   :  { %v7021_v43 = vadd.f32 %v3375_v34, %v6626_v48 }
0x2606   :  { %v3507_v13 = vrot.slane %v7021_v43, 7 }
0x2674   :  { %v3382_v51 = vpop.permute.xlu1 %3381 }
0x2675   :  { %v3384_v14 = vmul.f32 %v3382_v51, %v6624_v45 }
0x2677   :  { %v7002_v16 = vadd.f32 %v3384_v14, %v6626_v48 }
0x2679   :  { %v3393_v17 = vrot.slane %v7002_v16, %v6510_v1  ;;  %5320 = vmatmul.mubr.msk.f32.vlgmr.msra.gmra.mrb[20].mxu0 %vm831_vm5, %v7002_v16 }
0x267a   :  { %5328 = vmatpush3.msra.mxu0 %v6968_v11  ;;  %5329 = vmatprep.mubr.msk.f32.mxu0 %vm6206_vm4, %v6205_v24 }
0x267b   :  { %v3394_v2 = vcombine.high %v3393_v17, %v3393_v17  ;;  %v3401_v18 = vrot.slane %v3393_v17, %v6510_v1  ;;  %5337 = vmatprep.subr.mxu0 %v6205_v24 }
0x267d   :  { %v3408_v19 = vrot.slane %v3394_v2, %v6510_v1  ;;  %3412 = vst.msk [vmem:[#allocation3] sm:$0x1] %vm3411_vm11, %v3401_v18 }
0x267f   :  { %3413 = vst.msk [vmem:[#allocation3 + $0x8] sm:$0x1] %vm3411_vm11, %v3408_v19 }
0x274c   :  { %v3482_v20 = vpop.f32.mrb[20].mxu0 }
0x274d   :  { %v3487_v25 = vrot.slane %v3482_v20, 7  ;;  %v3491_v27 = vadd.f32 %v3482_v20, %v6984_v21  ;;  %v5321_v33 = vpop.f32.mrb[21].mxu0  ;;  %v3566_v20 = vmul.f32 %v7002_v16, %v6670_v47 }
0x274f   :  { %v3490_v61 = vadd.f32 %v3487_v25, %v6986_v26  ;;  %5747 = vtanh.f32 %v3491_v27  ;;  %v4930_v37 = vmul.f32 -1.442695, %v3491_v27 }
0x2751   :  { %5749 = vtanh.f32 %v3490_v61  ;;  %v4929_v38 = vmul.f32 -1.442695, %v3490_v61 }
0x2752   :  { %5751 = vpow2.f32 %v4930_v37 }
0x2753   :  { %5753 = vpow2.f32 %v4929_v38 }
0x2759   :  { %v5748_v22 = vpop.eup %5747 }
0x275a   :  { %3520 = vrot.lane.b32.xlu0 %v5748_v22, %s6219_s18 }
0x275b   :  { %v5750_v42 = vpop.eup %5749 }
0x275c   :  { %3518 = vrot.lane.b32.xlu1 %v5750_v42, %s6219_s18  ;;  %v5752_v45 = vpop.eup %5751 }
0x275d   :  { %v5754_v15 = vpop.eup %5753  ;;  %v3499_v41 = vadd.f32 1.0, %v5752_v45 }
0x275e   :  { %3510 = vrot.lane.b32.xlu0 %v7021_v43, %s6220_s22  ;;  %v3498_v44 = vadd.f32 1.0, %v5754_v15 }
0x275f   :  { %5755 = vrcp.f32 %v3499_v41  ;;  %v3556_v41 = vmul.f32 %v7021_v43, %v6670_v47 }
0x2760   :  { %3508 = vrot.lane.b32.xlu1 %v3507_v13, %s6220_s22  ;;  %5757 = vrcp.f32 %v3498_v44 }
0x2769   :  { %v5756_v48 = vpop.eup %5755 }
0x276a   :  { %v5758_v7 = vpop.eup %5757 }
0x27cc   :  { %v3521_v39 = vpop.permute.xlu0 %3520 }
0x27cd   :  { %v3525_v52 = vmul.f32 %v5756_v48, %v3521_v39 }
0x27ce   :  { %v3519_v28 = vpop.permute.xlu1 %3518 }
0x27cf   :  { %3530 = vrot.lane.b32.xlu0 %v3525_v52, %s6220_s22  ;;  %v3524_v63 = vmul.f32 %v5758_v7, %v3519_v28 }
0x27d0   :  { %v3511_v55 = vpop.permute.xlu0 %3510 }
0x27d1   :  { %3528 = vrot.lane.b32.xlu1 %v3524_v63, %s6220_s22  ;;  %v3515_v56 = vmul.f32 %v5756_v48, %v3511_v55 }
0x27d2   :  { %v3509_v50 = vpop.permute.xlu1 %3508 }
0x27d3   :  { %v3514_v59 = vmul.f32 %v5758_v7, %v3509_v50 }
0x2841   :  { %v3531_v30 = vpop.permute.xlu0 %3530 }
0x2842   :  { %v3535_v29 = vadd.f32 %v3531_v30, %v3515_v56 }
0x2843   :  { %v3529_v4 = vpop.permute.xlu1 %3528 }
0x2844   :  { %5759 = vtanh.f32 %v3535_v29  ;;  %v3534_v5 = vadd.f32 %v3529_v4, %v3514_v59 }
0x2846   :  { %5761 = vtanh.f32 %v3534_v5  ;;  %v3550_v8 = vrot.slane %v3534_v5, 1 }
0x2848   :  { %v3551_v3 = vsel %vm1629_vm7, %v3535_v29, %v3550_v8 }
0x284e   :  { %v5760_v53 = vpop.eup %5759 }
0x284f   :  { %3542 = vrot.lane.b32.xlu0 %v5760_v53, %s6221_s6 }
0x2850   :  { %v5762_v12 = vpop.eup %5761 }
0x2851   :  { %3540 = vrot.lane.b32.xlu1 %v5762_v12, %s6221_s6 }
0x2853   :  { %3552 = vrot.lane.b32.xlu0 %v3551_v3, %s6222_s13 }
0x28c1   :  { %v3543_v49 = vpop.permute.xlu0 %3542 }
0x28c2   :  { %v3547_v17 = vmul.f32 %v5756_v48, %v3543_v49 }
0x28c3   :  { %v3541_v51 = vpop.permute.xlu1 %3540 }
0x28c4   :  { %v3546_v14 = vmul.f32 %v5758_v7, %v3541_v51 }
0x28c5   :  { %v3553_v45 = vpop.permute.xlu0 %3552 }
0x28c6   :  { %v3560_v2 = vrot.slane %v3546_v14, 1  ;;  %v3555_v15 = vmul.f32 %v3553_v45, %v6668_v46 }
0x28c8   :  { %v3561_v18 = vsel %vm1629_vm7, %v3547_v17, %v3560_v2  ;;  %v7058_v44 = vadd.f32 %v3556_v41, %v3555_v15 }
0x28c9   :  { %3562 = vrot.lane.b32.xlu1 %v3561_v18, %s6223_s8 }
0x28ca   :  { %v3689_v52 = vrot.slane %v7058_v44, 6  ;;  %v3690_v7 = vrot.slane %v7058_v44, 7 }
0x293b   :  { %v3563_v19 = vpop.permute.xlu1 %3562 }
0x293c   :  { %v3565_v25 = vmul.f32 %v3563_v19, %v6668_v46 }
0x293e   :  { %v7039_v27 = vadd.f32 %v3566_v20, %v3565_v25 }
0x2940   :  { %v3575_v33 = vrot.slane %v7039_v27, %v6510_v1  ;;  %5325 = vmatmul.mubr.msk.f32.vlgmr.msra.gmra.mrb[26].mxu1 %vm831_vm5, %v7039_v27 }
0x2941   :  { %5333 = vmatpush3.msra.mxu1 %v6968_v11  ;;  %5334 = vmatprep.mubr.msk.f32.mxu1 %vm6206_vm4, %v6205_v24 }
0x2942   :  { %v3576_v61 = vcombine.high %v3575_v33, %v3575_v33  ;;  %v3583_v0 = vrot.slane %v3575_v33, %v6510_v1  ;;  %5342 = vmatprep.subr.mxu1 %v6205_v24 }
0x2944   :  { %v3590_v16 = vrot.slane %v3576_v61, %v6510_v1  ;;  %3593 = vst.msk [vmem:[#allocation3 + $0x1] sm:$0x1] %vm3411_vm11, %v3583_v0 }
0x2946   :  { %3594 = vst.msk [vmem:[#allocation3 + $0x9] sm:$0x1] %vm3411_vm11, %v3590_v16 }
0x2a13   :  { %v3663_v34 = vpop.f32.mrb[26].mxu1 }
0x2a14   :  { %v3668_v22 = vrot.slane %v3663_v34, 6  ;;  %v3669_v42 = vrot.slane %v3663_v34, 7  ;;  %v5326_v13 = vpop.f32.mrb[27].mxu1 }
0x2a15   :  { %v3751_v13 = vmul.f32 %v7039_v27, %v6714_v57 }
0x2a16   :  { %v3672_v37 = vadd.f32 %v3668_v22, %v6986_v26  ;;  %v3673_v38 = vadd.f32 %v3669_v42, %v6984_v21 }
0x2a18   :  { %5763 = vtanh.f32 %v3672_v37  ;;  %v4932_v46 = vmul.f32 -1.442695, %v3672_v37  ;;  %v4933_v28 = vmul.f32 -1.442695, %v3673_v38 }
0x2a19   :  { %5765 = vtanh.f32 %v3673_v38 }
0x2a1a   :  { %5767 = vpow2.f32 %v4932_v46 }
0x2a1b   :  { %5769 = vpow2.f32 %v4933_v28 }
0x2a22   :  { %v5764_v48 = vpop.eup %5763 }
0x2a23   :  { %v5766_v39 = vpop.eup %5765  ;;  %3701 = vrot.lane.b32.xlu1 %v5764_v48, %s6219_s18 }
0x2a24   :  { %3703 = vrot.lane.b32.xlu0 %v5766_v39, %s6219_s18  ;;  %v5768_v47 = vpop.eup %5767 }
0x2a25   :  { %v5770_v43 = vpop.eup %5769  ;;  %v3680_v63 = vadd.f32 1.0, %v5768_v47 }
0x2a26   :  { %v3681_v55 = vadd.f32 1.0, %v5770_v43 }
0x2a27   :  { %3691 = vrot.lane.b32.xlu1 %v3689_v52, %s6220_s22  ;;  %5771 = vrcp.f32 %v3680_v63  ;;  %v3740_v63 = vmul.f32 %v7058_v44, %v6714_v57 }
0x2a28   :  { %3693 = vrot.lane.b32.xlu0 %v3690_v7, %s6220_s22  ;;  %5773 = vrcp.f32 %v3681_v55 }
0x2a31   :  { %v5772_v56 = vpop.eup %5771 }
0x2a32   :  { %v5774_v30 = vpop.eup %5773 }
0x2a95   :  { %v3702_v50 = vpop.permute.xlu1 %3701 }
0x2a96   :  { %v3707_v29 = vmul.f32 %v5772_v56, %v3702_v50  ;;  %v3704_v59 = vpop.permute.xlu0 %3703 }
0x2a97   :  { %v3708_v4 = vmul.f32 %v5774_v30, %v3704_v59 }
0x2a98   :  { %3711 = vrot.lane.b32.xlu1 %v3707_v29, %s6220_s22 }
0x2a99   :  { %3713 = vrot.lane.b32.xlu0 %v3708_v4, %s6220_s22  ;;  %v3692_v5 = vpop.permute.xlu1 %3691 }
0x2a9a   :  { %v3694_v53 = vpop.permute.xlu0 %3693  ;;  %v3697_v8 = vmul.f32 %v5772_v56, %v3692_v5 }
0x2a9b   :  { %v3698_v12 = vmul.f32 %v5774_v30, %v3694_v53 }
0x2b0a   :  { %v3712_v3 = vpop.permute.xlu1 %3711 }
0x2b0b   :  { %v3717_v49 = vadd.f32 %v3712_v3, %v3697_v8  ;;  %v3714_v51 = vpop.permute.xlu0 %3713 }
0x2b0c   :  { %v3718_v14 = vadd.f32 %v3714_v51, %v3698_v12 }
0x2b0d   :  { %5775 = vtanh.f32 %v3717_v49  ;;  %v3733_v18 = vrot.slane %v3717_v49, 2 }
0x2b0e   :  { %5777 = vtanh.f32 %v3718_v14  ;;  %v3734_v19 = vrot.slane %v3718_v14, 1 }
0x2b10   :  { %v3735_v20 = vsel %vm1629_vm7, %v3734_v19, %v3733_v18 }
0x2b17   :  { %v5776_v17 = vpop.eup %5775 }
0x2b18   :  { %v5778_v2 = vpop.eup %5777  ;;  %3723 = vrot.lane.b32.xlu1 %v5776_v17, %s6221_s6 }
0x2b19   :  { %3725 = vrot.lane.b32.xlu0 %v5778_v2, %s6221_s6 }
0x2b1d   :  { %3736 = vrot.lane.b32.xlu0 %v3735_v20, %s6222_s13 }
0x2b8a   :  { %v3724_v25 = vpop.permute.xlu1 %3723 }
0x2b8b   :  { %v3729_v33 = vmul.f32 %v5772_v56, %v3724_v25  ;;  %v3726_v61 = vpop.permute.xlu0 %3725 }
0x2b8c   :  { %v3730_v0 = vmul.f32 %v5774_v30, %v3726_v61 }
0x2b8d   :  { %v3744_v16 = vrot.slane %v3729_v33, 2 }
0x2b8e   :  { %v3745_v34 = vrot.slane %v3730_v0, 1 }
0x2b8f   :  { %v3737_v47 = vpop.permute.xlu0 %3736 }
0x2b90   :  { %v3746_v22 = vsel %vm1629_vm7, %v3745_v34, %v3744_v16  ;;  %v3739_v43 = vmul.f32 %v3737_v47, %v6716_v58 }
0x2b91   :  { %3747 = vrot.lane.b32.xlu1 %v3746_v22, %s6223_s8 }
0x2b92   :  { %v7096_v55 = vadd.f32 %v3740_v63, %v3739_v43 }
0x2b94   :  { %v3874_v30 = vrot.slane %v7096_v55, 5  ;;  %v3875_v29 = vrot.slane %v7096_v55, 6 }
0x2c03   :  { %v3748_v42 = vpop.permute.xlu1 %3747 }
0x2c04   :  { %v3750_v37 = vmul.f32 %v3748_v42, %v6716_v58 }
0x2c06   :  { %v7077_v38 = vadd.f32 %v3751_v13, %v3750_v37 }
0x2c08   :  { %v3760_v45 = vrot.slane %v7077_v38, %v6510_v1  ;;  %5330 = vmatmul.mubr.msk.f32.vlgmr.msra.gmra.mrb[22].mxu0 %vm831_vm5, %v7077_v38 }
0x2c09   :  { %5338 = vmatpush3.msra.mxu0 %v6968_v11  ;;  %5339 = vmatprep.mubr.msk.f32.mxu0 %vm6206_vm4, %v6205_v24 }
0x2c0a   :  { %v3761_v15 = vcombine.high %v3760_v45, %v3760_v45  ;;  %v3768_v41 = vrot.slane %v3760_v45, %v6510_v1  ;;  %5347 = vmatprep.subr.mxu0 %v6205_v24 }
0x2c0c   :  { %v3775_v27 = vrot.slane %v3761_v15, %v6510_v1  ;;  %3778 = vst.msk [vmem:[#allocation3 + $0x2] sm:$0x1] %vm3411_vm11, %v3768_v41 }
0x2c0e   :  { %3779 = vst.msk [vmem:[#allocation3 + $0xa] sm:$0x1] %vm3411_vm11, %v3775_v27 }
0x2cdb   :  { %v3848_v48 = vpop.f32.mrb[22].mxu0 }
0x2cdc   :  { %v3853_v39 = vrot.slane %v3848_v48, 5  ;;  %v3854_v52 = vrot.slane %v3848_v48, 6  ;;  %v5331_v7 = vpop.f32.mrb[23].mxu0 }
0x2cde   :  { %v3857_v46 = vadd.f32 %v3853_v39, %v6986_v26  ;;  %v3858_v28 = vadd.f32 %v3854_v52, %v6984_v21  ;;  %v3936_v39 = vmul.f32 %v7077_v38, %v6762_v10 }
0x2ce0   :  { %5779 = vtanh.f32 %v3857_v46  ;;  %v4935_v58 = vmul.f32 -1.442695, %v3857_v46  ;;  %v4936_v59 = vmul.f32 -1.442695, %v3858_v28 }
0x2ce1   :  { %5781 = vtanh.f32 %v3858_v28 }
0x2ce2   :  { %5783 = vpow2.f32 %v4935_v58 }
0x2ce3   :  { %5785 = vpow2.f32 %v4936_v59 }
0x2cea   :  { %v5780_v56 = vpop.eup %5779 }
0x2ceb   :  { %v5782_v50 = vpop.eup %5781  ;;  %3886 = vrot.lane.b32.xlu1 %v5780_v56, %s6219_s18 }
0x2cec   :  { %3888 = vrot.lane.b32.xlu0 %v5782_v50, %s6219_s18  ;;  %v5784_v57 = vpop.eup %5783 }
0x2ced   :  { %v5786_v44 = vpop.eup %5785  ;;  %v3865_v4 = vadd.f32 1.0, %v5784_v57  ;;  %v3925_v57 = vmul.f32 %v7096_v55, %v6762_v10 }
0x2cee   :  { %v3866_v5 = vadd.f32 1.0, %v5786_v44 }
0x2cef   :  { %3876 = vrot.lane.b32.xlu1 %v3874_v30, %s6220_s22  ;;  %5787 = vrcp.f32 %v3865_v4 }
0x2cf0   :  { %3878 = vrot.lane.b32.xlu0 %v3875_v29, %s6220_s22  ;;  %5789 = vrcp.f32 %v3866_v5 }
0x2cf9   :  { %v5788_v53 = vpop.eup %5787 }
0x2cfa   :  { %v5790_v12 = vpop.eup %5789 }
0x2d5d   :  { %v3887_v8 = vpop.permute.xlu1 %3886 }
0x2d5e   :  { %v3892_v3 = vmul.f32 %v5788_v53, %v3887_v8  ;;  %v3889_v49 = vpop.permute.xlu0 %3888 }
0x2d5f   :  { %v3893_v51 = vmul.f32 %v5790_v12, %v3889_v49 }
0x2d60   :  { %3896 = vrot.lane.b32.xlu1 %v3892_v3, %s6220_s22 }
0x2d61   :  { %3898 = vrot.lane.b32.xlu0 %v3893_v51, %s6220_s22  ;;  %v3877_v14 = vpop.permute.xlu1 %3876 }
0x2d62   :  { %v3879_v17 = vpop.permute.xlu0 %3878  ;;  %v3882_v2 = vmul.f32 %v5788_v53, %v3877_v14 }
0x2d63   :  { %v3883_v18 = vmul.f32 %v5790_v12, %v3879_v17 }
0x2dd2   :  { %v3897_v19 = vpop.permute.xlu1 %3896 }
0x2dd3   :  { %v3902_v20 = vadd.f32 %v3897_v19, %v3882_v2  ;;  %v3899_v25 = vpop.permute.xlu0 %3898 }
0x2dd4   :  { %v3903_v33 = vadd.f32 %v3899_v25, %v3883_v18 }
0x2dd5   :  { %5791 = vtanh.f32 %v3902_v20  ;;  %v3918_v16 = vrot.slane %v3902_v20, 3 }
0x2dd6   :  { %5793 = vtanh.f32 %v3903_v33  ;;  %v3919_v34 = vrot.slane %v3903_v33, 2 }
0x2dd8   :  { %v3920_v22 = vsel %vm1629_vm7, %v3919_v34, %v3918_v16 }
0x2ddf   :  { %v5792_v61 = vpop.eup %5791 }
0x2de0   :  { %v5794_v0 = vpop.eup %5793  ;;  %3908 = vrot.lane.b32.xlu1 %v5792_v61, %s6221_s6 }
0x2de1   :  { %3910 = vrot.lane.b32.xlu0 %v5794_v0, %s6221_s6 }
0x2de5   :  { %3921 = vrot.lane.b32.xlu0 %v3920_v22, %s6222_s13 }
0x2e52   :  { %v3909_v42 = vpop.permute.xlu1 %3908 }
0x2e53   :  { %v3914_v13 = vmul.f32 %v5788_v53, %v3909_v42  ;;  %v3911_v37 = vpop.permute.xlu0 %3910 }
0x2e54   :  { %v3915_v45 = vmul.f32 %v5790_v12, %v3911_v37 }
0x2e55   :  { %v3929_v15 = vrot.slane %v3914_v13, 3 }
0x2e56   :  { %v3930_v41 = vrot.slane %v3915_v45, 2 }
0x2e57   :  { %v3922_v58 = vpop.permute.xlu0 %3921 }
0x2e58   :  { %v3931_v27 = vsel %vm1629_vm7, %v3930_v41, %v3929_v15  ;;  %v3924_v59 = vmul.f32 %v3922_v58, %v6760_v9 }
0x2e59   :  { %3932 = vrot.lane.b32.xlu1 %v3931_v27, %s6223_s8 }
0x2e5a   :  { %v7133_v44 = vadd.f32 %v3925_v57, %v3924_v59 }
0x2e5c   :  { %v4059_v53 = vrot.slane %v7133_v44, 4  ;;  %v4060_v8 = vrot.slane %v7133_v44, 5 }
0x2ecb   :  { %v3933_v48 = vpop.permute.xlu1 %3932 }
0x2ecc   :  { %v3935_v52 = vmul.f32 %v3933_v48, %v6760_v9 }
0x2ece   :  { %v7115_v7 = vadd.f32 %v3936_v39, %v3935_v52 }
0x2ed0   :  { %v3945_v46 = vrot.slane %v7115_v7, %v6510_v1  ;;  %5335 = vmatmul.mubr.msk.f32.vlgmr.msra.gmra.mrb[28].mxu1 %vm831_vm5, %v7115_v7 }
0x2ed1   :  { %5343 = vmatpush3.msra.mxu1 %v6968_v11  ;;  %5344 = vmatprep.mubr.msk.f32.mxu1 %vm6206_vm4, %v6205_v24 }
0x2ed2   :  { %v3946_v28 = vcombine.high %v3945_v46, %v3945_v46  ;;  %v3953_v47 = vrot.slane %v3945_v46, %v6510_v1 }
0x2ed4   :  { %v3960_v38 = vrot.slane %v3946_v28, %v6510_v1  ;;  %3963 = vst.msk [vmem:[#allocation3 + $0x3] sm:$0x1] %vm3411_vm11, %v3953_v47 }
0x2ed6   :  { %3964 = vst.msk [vmem:[#allocation3 + $0xb] sm:$0x1] %vm3411_vm11, %v3960_v38  ;;  %v4121_v38 = vmul.f32 %v7115_v7, %v6805_v6 }
0x2fa3   :  { %v4033_v43 = vpop.f32.mrb[28].mxu1 }
0x2fa4   :  { %v4038_v63 = vrot.slane %v4033_v43, 4  ;;  %v4039_v56 = vrot.slane %v4033_v43, 5  ;;  %v5336_v50 = vpop.f32.mrb[29].mxu1 }
0x2fa6   :  { %v4042_v30 = vadd.f32 %v4038_v63, %v6986_v26  ;;  %v4043_v29 = vadd.f32 %v4039_v56, %v6984_v21 }
0x2fa8   :  { %5795 = vtanh.f32 %v4042_v30  ;;  %v4938_v9 = vmul.f32 -1.442695, %v4042_v30  ;;  %v4939_v12 = vmul.f32 -1.442695, %v4043_v29 }
0x2fa9   :  { %5797 = vtanh.f32 %v4043_v29 }
0x2faa   :  { %5799 = vpow2.f32 %v4938_v9 }
0x2fab   :  { %5801 = vpow2.f32 %v4939_v12 }
0x2fb2   :  { %v5796_v4 = vpop.eup %5795 }
0x2fb3   :  { %v5798_v5 = vpop.eup %5797  ;;  %4071 = vrot.lane.b32.xlu1 %v5796_v4, %s6219_s18 }
0x2fb4   :  { %4073 = vrot.lane.b32.xlu0 %v5798_v5, %s6219_s18  ;;  %v5800_v10 = vpop.eup %5799 }
0x2fb5   :  { %v5802_v55 = vpop.eup %5801  ;;  %v4050_v3 = vadd.f32 1.0, %v5800_v10 }
0x2fb6   :  { %v4051_v49 = vadd.f32 1.0, %v5802_v55 }
0x2fb7   :  { %4061 = vrot.lane.b32.xlu1 %v4059_v53, %s6220_s22  ;;  %5803 = vrcp.f32 %v4050_v3  ;;  %v4110_v53 = vmul.f32 %v7133_v44, %v6805_v6 }
0x2fb8   :  { %4063 = vrot.lane.b32.xlu0 %v4060_v8, %s6220_s22  ;;  %5805 = vrcp.f32 %v4051_v49 }
0x2fc1   :  { %v5804_v51 = vpop.eup %5803 }
0x2fc2   :  { %v5806_v17 = vpop.eup %5805 }
0x3025   :  { %v4072_v14 = vpop.permute.xlu1 %4071 }
0x3026   :  { %v4077_v2 = vmul.f32 %v5804_v51, %v4072_v14  ;;  %v4074_v18 = vpop.permute.xlu0 %4073 }
0x3027   :  { %v4078_v19 = vmul.f32 %v5806_v17, %v4074_v18 }
0x3028   :  { %4081 = vrot.lane.b32.xlu1 %v4077_v2, %s6220_s22 }
0x3029   :  { %4083 = vrot.lane.b32.xlu0 %v4078_v19, %s6220_s22  ;;  %v4062_v20 = vpop.permute.xlu1 %4061 }
0x302a   :  { %v4064_v25 = vpop.permute.xlu0 %4063  ;;  %v4067_v33 = vmul.f32 %v5804_v51, %v4062_v20 }
0x302b   :  { %v4068_v61 = vmul.f32 %v5806_v17, %v4064_v25 }
0x309a   :  { %v4082_v0 = vpop.permute.xlu1 %4081 }
0x309b   :  { %v4087_v16 = vadd.f32 %v4082_v0, %v4067_v33  ;;  %v4084_v34 = vpop.permute.xlu0 %4083 }
0x309c   :  { %v4088_v22 = vadd.f32 %v4084_v34, %v4068_v61 }
0x309d   :  { %5807 = vtanh.f32 %v4087_v16  ;;  %v4103_v37 = vrot.slane %v4087_v16, 4 }
0x309e   :  { %5809 = vtanh.f32 %v4088_v22  ;;  %v4104_v45 = vrot.slane %v4088_v22, 3 }
0x30a0   :  { %v4105_v15 = vsel %vm1629_vm7, %v4104_v45, %v4103_v37 }
0x30a7   :  { %v5808_v42 = vpop.eup %5807 }
0x30a8   :  { %v5810_v13 = vpop.eup %5809  ;;  %4093 = vrot.lane.b32.xlu1 %v5808_v42, %s6221_s6 }
0x30a9   :  { %4095 = vrot.lane.b32.xlu0 %v5810_v13, %s6221_s6 }
0x30ad   :  { %4106 = vrot.lane.b32.xlu0 %v4105_v15, %s6222_s13 }
0x311a   :  { %v4094_v41 = vpop.permute.xlu1 %4093 }
0x311b   :  { %v4099_v27 = vmul.f32 %v5804_v51, %v4094_v41  ;;  %v4096_v48 = vpop.permute.xlu0 %4095 }
0x311c   :  { %v4100_v39 = vmul.f32 %v5806_v17, %v4096_v48 }
0x311d   :  { %v4114_v52 = vrot.slane %v4099_v27, 4 }
0x311e   :  { %v4115_v46 = vrot.slane %v4100_v39, 3 }
0x3120   :  { %v4116_v28 = vsel %vm1629_vm7, %v4115_v46, %v4114_v52 }
0x3121   :  { %4117 = vrot.lane.b32.xlu1 %v4116_v28, %s6223_s8 }
0x3193   :  { %v4118_v47 = vpop.permute.xlu1 %4117 }
0x3194   :  { %v4120_v43 = vmul.f32 %v4118_v47, %v6807_v23 }
0x3196   :  { %v7152_v63 = vadd.f32 %v4121_v38, %v4120_v43 }
0x3198   :  { %v4130_v56 = vrot.slane %v7152_v63, %v6510_v1  ;;  %5340 = vmatmul.mubr.msk.f32.vlgmr.msra.gmra.mrb[24].mxu0 %vm831_vm5, %v7152_v63  ;;  %v4306_v43 = vmul.f32 %v7152_v63, %v6852_v40 }
0x3199   :  { %5348 = vmatpush3.msra.mxu0 %v6968_v11  ;;  %5349 = vmatprep.mubr.msk.f32.mxu0 %vm6206_vm4, %v6205_v24  ;;  %v4107_v24 = vpop.permute.xlu0 %4106 }
0x319a   :  { %v4131_v50 = vcombine.high %v4130_v56, %v4130_v56  ;;  %v4138_v30 = vrot.slane %v4130_v56, %v6510_v1  ;;  %v4109_v5 = vmul.f32 %v4107_v24, %v6807_v23 }
0x319c   :  { %v4145_v7 = vrot.slane %v4131_v50, %v6510_v1  ;;  %4148 = vst.msk [vmem:[#allocation3 + $0x4] sm:$0x1] %vm3411_vm11, %v4138_v30  ;;  %v7170_v8 = vadd.f32 %v4110_v53, %v4109_v5 }
0x319e   :  { %4149 = vst.msk [vmem:[#allocation3 + $0xc] sm:$0x1] %vm3411_vm11, %v4145_v7  ;;  %v4244_v10 = vrot.slane %v7170_v8, 3  ;;  %v4245_v55 = vrot.slane %v7170_v8, 4 }
0x326b   :  { %v4218_v29 = vpop.f32.mrb[24].mxu0 }
0x326c   :  { %v4223_v58 = vrot.slane %v4218_v29, 3  ;;  %v4224_v59 = vrot.slane %v4218_v29, 4  ;;  %v5341_v57 = vpop.f32.mrb[25].mxu0 }
0x326e   :  { %v4227_v4 = vadd.f32 %v4223_v58, %v6986_v26  ;;  %v4228_v11 = vadd.f32 %v4224_v59, %v6984_v21 }
0x3270   :  { %5811 = vtanh.f32 %v4227_v4  ;;  %v4941_v23 = vmul.f32 -1.442695, %v4227_v4  ;;  %v4942_v3 = vmul.f32 -1.442695, %v4228_v11 }
0x3271   :  { %5813 = vtanh.f32 %v4228_v11 }
0x3272   :  { %5815 = vpow2.f32 %v4941_v23 }
0x3273   :  { %5817 = vpow2.f32 %v4942_v3 }
0x327a   :  { %v5812_v9 = vpop.eup %5811 }
0x327b   :  { %v5814_v12 = vpop.eup %5813  ;;  %4256 = vrot.lane.b32.xlu1 %v5812_v9, %s6219_s18  ;;  %v4295_v9 = vmul.f32 %v7170_v8, %v6852_v40 }
0x327c   :  { %4258 = vrot.lane.b32.xlu0 %v5814_v12, %s6219_s18  ;;  %v5816_v6 = vpop.eup %5815 }
0x327d   :  { %v5818_v44 = vpop.eup %5817  ;;  %v4235_v49 = vadd.f32 1.0, %v5816_v6 }
0x327e   :  { %v4236_v51 = vadd.f32 1.0, %v5818_v44 }
0x327f   :  { %4246 = vrot.lane.b32.xlu1 %v4244_v10, %s6220_s22  ;;  %5819 = vrcp.f32 %v4235_v49 }
0x3280   :  { %4248 = vrot.lane.b32.xlu0 %v4245_v55, %s6220_s22  ;;  %5821 = vrcp.f32 %v4236_v51 }
0x3289   :  { %v5820_v14 = vpop.eup %5819 }
0x328a   :  { %v5822_v2 = vpop.eup %5821 }
0x32ed   :  { %v4257_v17 = vpop.permute.xlu1 %4256 }
0x32ee   :  { %v4262_v18 = vmul.f32 %v5820_v14, %v4257_v17  ;;  %v4259_v19 = vpop.permute.xlu0 %4258 }
0x32ef   :  { %v4263_v20 = vmul.f32 %v5822_v2, %v4259_v19 }
0x32f0   :  { %4266 = vrot.lane.b32.xlu1 %v4262_v18, %s6220_s22 }
0x32f1   :  { %4268 = vrot.lane.b32.xlu0 %v4263_v20, %s6220_s22  ;;  %v4247_v25 = vpop.permute.xlu1 %4246 }
0x32f2   :  { %v4249_v33 = vpop.permute.xlu0 %4248  ;;  %v4252_v61 = vmul.f32 %v5820_v14, %v4247_v25 }
0x32f3   :  { %v4253_v0 = vmul.f32 %v5822_v2, %v4249_v33 }
0x3362   :  { %v4267_v16 = vpop.permute.xlu1 %4266 }
0x3363   :  { %v4272_v34 = vadd.f32 %v4267_v16, %v4252_v61  ;;  %v4269_v22 = vpop.permute.xlu0 %4268 }
0x3364   :  { %v4273_v42 = vadd.f32 %v4269_v22, %v4253_v0 }
0x3365   :  { %5823 = vtanh.f32 %v4272_v34  ;;  %v4288_v45 = vrot.slane %v4272_v34, 5 }
0x3366   :  { %5825 = vtanh.f32 %v4273_v42  ;;  %v4289_v15 = vrot.slane %v4273_v42, 4 }
0x3368   :  { %v4290_v41 = vsel %vm1629_vm7, %v4289_v15, %v4288_v45 }
0x336f   :  { %v5824_v13 = vpop.eup %5823 }
0x3370   :  { %v5826_v37 = vpop.eup %5825  ;;  %4278 = vrot.lane.b32.xlu1 %v5824_v13, %s6221_s6 }
0x3371   :  { %4280 = vrot.lane.b32.xlu0 %v5826_v37, %s6221_s6 }
0x3375   :  { %4291 = vrot.lane.b32.xlu0 %v4290_v41, %s6222_s13 }
0x33e2   :  { %v4279_v27 = vpop.permute.xlu1 %4278 }
0x33e3   :  { %v4284_v48 = vmul.f32 %v5820_v14, %v4279_v27  ;;  %v4281_v39 = vpop.permute.xlu0 %4280 }
0x33e4   :  { %v4285_v52 = vmul.f32 %v5822_v2, %v4281_v39 }
0x33e5   :  { %v4299_v46 = vrot.slane %v4284_v48, 5 }
0x33e6   :  { %v4300_v28 = vrot.slane %v4285_v52, 4 }
0x33e7   :  { %v4292_v5 = vpop.permute.xlu0 %4291 }
0x33e8   :  { %v4301_v47 = vsel %vm1629_vm7, %v4300_v28, %v4299_v46  ;;  %v4294_v53 = vmul.f32 %v4292_v5, %v6850_v35 }
0x33e9   :  { %4302 = vrot.lane.b32.xlu1 %v4301_v47, %s6223_s8 }
0x33ea   :  { %v7204_v12 = vadd.f32 %v4295_v9, %v4294_v53 }
0x33ec   :  { %v4429_v23 = vrot.slane %v7204_v12, 2  ;;  %v4430_v3 = vrot.slane %v7204_v12, 3  ;;  %v4480_v53 = vmul.f32 %v7204_v12, %v6890_v60 }
0x345b   :  { %v4303_v38 = vpop.permute.xlu1 %4302 }
0x345c   :  { %v4305_v56 = vmul.f32 %v4303_v38, %v6850_v35 }
0x345e   :  { %v7189_v50 = vadd.f32 %v4306_v43, %v4305_v56 }
0x3460   :  { %v4315_v30 = vrot.slane %v7189_v50, %v6510_v1  ;;  %5345 = vmatmul.mubr.msk.f32.vlgmr.msra.gmra.mrb[30].mxu1 %vm831_vm5, %v7189_v50  ;;  %v4491_v38 = vmul.f32 %v7189_v50, %v6890_v60 }
0x3462   :  { %v4316_v7 = vcombine.high %v4315_v30, %v4315_v30  ;;  %v4323_v29 = vrot.slane %v4315_v30, %v6510_v1 }
0x3464   :  { %v4330_v58 = vrot.slane %v4316_v7, %v6510_v1  ;;  %4333 = vst.msk [vmem:[#allocation3 + $0x5] sm:$0x1] %vm3411_vm11, %v4323_v29 }
0x3466   :  { %4334 = vst.msk [vmem:[#allocation3 + $0xd] sm:$0x1] %vm3411_vm11, %v4330_v58 }
0x3533   :  { %v4403_v63 = vpop.f32.mrb[30].mxu1 }
0x3534   :  { %v4408_v59 = vrot.slane %v4403_v63, 2  ;;  %v4409_v57 = vrot.slane %v4403_v63, 3  ;;  %v5346_v4 = vpop.f32.mrb[31].mxu1 }
0x3536   :  { %v4412_v11 = vadd.f32 %v4408_v59, %v6986_v26  ;;  %v4413_v24 = vadd.f32 %v4409_v57, %v6984_v21 }
0x3538   :  { %5827 = vtanh.f32 %v4412_v11  ;;  %v4944_v35 = vmul.f32 -1.442695, %v4412_v11  ;;  %v4945_v6 = vmul.f32 -1.442695, %v4413_v24 }
0x3539   :  { %5829 = vtanh.f32 %v4413_v24 }
0x353a   :  { %5831 = vpow2.f32 %v4944_v35 }
0x353b   :  { %5833 = vpow2.f32 %v4945_v6 }
0x3542   :  { %v5828_v10 = vpop.eup %5827 }
0x3543   :  { %v5830_v55 = vpop.eup %5829  ;;  %4441 = vrot.lane.b32.xlu1 %v5828_v10, %s6219_s18 }
0x3544   :  { %4443 = vrot.lane.b32.xlu0 %v5830_v55, %s6219_s18  ;;  %v5832_v40 = vpop.eup %5831 }
0x3545   :  { %v5834_v8 = vpop.eup %5833  ;;  %v4420_v44 = vadd.f32 1.0, %v5832_v40 }
0x3546   :  { %v4421_v49 = vadd.f32 1.0, %v5834_v8 }
0x3547   :  { %4431 = vrot.lane.b32.xlu1 %v4429_v23, %s6220_s22  ;;  %5835 = vrcp.f32 %v4420_v44 }
0x3548   :  { %4433 = vrot.lane.b32.xlu0 %v4430_v3, %s6220_s22  ;;  %5837 = vrcp.f32 %v4421_v49 }
0x3551   :  { %v5836_v51 = vpop.eup %5835 }
0x3552   :  { %v5838_v17 = vpop.eup %5837 }
0x35b5   :  { %v4442_v14 = vpop.permute.xlu1 %4441 }
0x35b6   :  { %v4447_v2 = vmul.f32 %v5836_v51, %v4442_v14  ;;  %v4444_v18 = vpop.permute.xlu0 %4443 }
0x35b7   :  { %v4448_v19 = vmul.f32 %v5838_v17, %v4444_v18 }
0x35b8   :  { %4451 = vrot.lane.b32.xlu1 %v4447_v2, %s6220_s22 }
0x35b9   :  { %4453 = vrot.lane.b32.xlu0 %v4448_v19, %s6220_s22  ;;  %v4432_v20 = vpop.permute.xlu1 %4431 }
0x35ba   :  { %v4434_v25 = vpop.permute.xlu0 %4433  ;;  %v4437_v33 = vmul.f32 %v5836_v51, %v4432_v20 }
0x35bb   :  { %v4438_v61 = vmul.f32 %v5838_v17, %v4434_v25 }
0x362a   :  { %v4452_v0 = vpop.permute.xlu1 %4451 }
0x362b   :  { %v4457_v16 = vadd.f32 %v4452_v0, %v4437_v33  ;;  %v4454_v34 = vpop.permute.xlu0 %4453 }
0x362c   :  { %v4458_v22 = vadd.f32 %v4454_v34, %v4438_v61 }
0x362d   :  { %5839 = vtanh.f32 %v4457_v16  ;;  %v4473_v37 = vrot.slane %v4457_v16, 6 }
0x362e   :  { %5841 = vtanh.f32 %v4458_v22  ;;  %v4474_v45 = vrot.slane %v4458_v22, 5 }
0x3630   :  { %v4475_v15 = vsel %vm1629_vm7, %v4474_v45, %v4473_v37  ;;  %v4696_v45 = vld [vmem:[%s6380_s4] sm:$0xff]  ;;  %s6224_s4 = smov [#allocation23]  }
0x3631   :  { %5352 = vmatprep.subr.mxu1 %v4696_v45  ;;  %s4806_s23 = sshll.u32 %s6224_s4, 4  ;;  %s4807_s23 = int_to_ptr.vmem [resolvable:$true] %s4806_s23 }
0x3632   :  { %5353 = vmatpush3.msra.mxu1 %v4696_v45  ;;  %s6101_s27 = scalar_lea.vmem %s4807_s23, 256  ;;  %p6106_p5 = scmp.lt.s32.totalorder %s4807_s23, %s4807_s23 }
0x3633   :  { %p6102_p4 = scmp.ne.s32.totalorder %s4807_s23, %s6101_s27  ;;  %p6107_p6 = scmp.lt.s32.totalorder %s6101_s27, %s6101_s27 }
0x3635   :  { %p6108_p7 = por %p6107_p6, %p6106_p5 }
0x3637   :  { %v5840_v42 = vpop.eup %5839  ;;  %p6109_p8 = pnand %p6108_p7, %p6102_p4 }
0x3638   :  { %v5842_v13 = vpop.eup %5841  ;;  %4463 = vrot.lane.b32.xlu1 %v5840_v42, %s6221_s6 }
0x3639   :  { %4465 = vrot.lane.b32.xlu0 %v5842_v13, %s6221_s6 }
0x363d   :  { %4476 = vrot.lane.b32.xlu0 %v4475_v15, %s6222_s13 }
0x36aa   :  { %v4464_v41 = vpop.permute.xlu1 %4463 }
0x36ab   :  { %v4469_v27 = vmul.f32 %v5836_v51, %v4464_v41  ;;  %v4466_v48 = vpop.permute.xlu0 %4465 }
0x36ac   :  { %v4470_v39 = vmul.f32 %v5838_v17, %v4466_v48 }
0x36ad   :  { %v4484_v52 = vrot.slane %v4469_v27, 6 }
0x36ae   :  { %v4485_v46 = vrot.slane %v4470_v39, 5 }
0x36af   :  { %v4477_v24 = vpop.permute.xlu0 %4476 }
0x36b0   :  { %v4486_v28 = vsel %vm1629_vm7, %v4485_v46, %v4484_v52  ;;  %v4479_v5 = vmul.f32 %v4477_v24, %v6892_v62 }
0x36b1   :  { %4487 = vrot.lane.b32.xlu1 %v4486_v28, %s6223_s8 }
0x36b2   :  { %v4481_v9 = vadd.f32 %v4480_v53, %v4479_v5 }
0x36b4   :  { %v4614_v23 = vrot.slane %v4481_v9, 1  ;;  %v4615_v3 = vrot.slane %v4481_v9, 2 }
0x3723   :  { %v4488_v47 = vpop.permute.xlu1 %4487 }
0x3724   :  { %v4490_v43 = vmul.f32 %v4488_v47, %v6892_v62 }
0x3726   :  { %v7223_v56 = vadd.f32 %v4491_v38, %v4490_v43 }
0x3728   :  { %v4500_v30 = vrot.slane %v7223_v56, %v6510_v1  ;;  %5350 = vmatmul.mubr.msk.f32.vlgmr.msra.gmra.mrb[26].mxu0 %vm831_vm5, %v7223_v56  ;;  %v4665_v27 = vmul.f32 %v7223_v56, %v6931_v32 }
0x372a   :  { %v4501_v7 = vcombine.high %v4500_v30, %v4500_v30  ;;  %v4508_v29 = vrot.slane %v4500_v30, %v6510_v1 }
0x372c   :  { %v4515_v58 = vrot.slane %v4501_v7, %v6510_v1  ;;  %4518 = vst.msk [vmem:[#allocation3 + $0x6] sm:$0x1] %vm3411_vm11, %v4508_v29 }
0x372e   :  { %4519 = vst.msk [vmem:[#allocation3 + $0xe] sm:$0x1] %vm3411_vm11, %v4515_v58 }
0x37fb   :  { %v4588_v50 = vpop.f32.mrb[26].mxu0 }
0x37fc   :  { %v4593_v63 = vrot.slane %v4588_v50, 1  ;;  %v4594_v59 = vrot.slane %v4588_v50, 2  ;;  %v5351_v57 = vpop.f32.mrb[27].mxu0 }
0x37fe   :  { %v4597_v4 = vadd.f32 %v4593_v63, %v6986_v26  ;;  %v4598_v11 = vadd.f32 %v4594_v59, %v6984_v21 }
0x3800   :  { %5843 = vtanh.f32 %v4597_v4  ;;  %v4947_v21 = vmul.f32 -1.442695, %v4597_v4  ;;  %v4948_v26 = vmul.f32 -1.442695, %v4598_v11 }
0x3801   :  { %5845 = vtanh.f32 %v4598_v11 }
0x3802   :  { %5847 = vpow2.f32 %v4947_v21 }
0x3803   :  { %5849 = vpow2.f32 %v4948_v26 }
0x380a   :  { %v5844_v10 = vpop.eup %5843 }
0x380b   :  { %v5846_v55 = vpop.eup %5845  ;;  %4626 = vrot.lane.b32.xlu1 %v5844_v10, %s6219_s18 }
0x380c   :  { %4628 = vrot.lane.b32.xlu0 %v5846_v55, %s6219_s18  ;;  %v5848_v62 = vpop.eup %5847 }
0x380d   :  { %v5850_v35 = vpop.eup %5849  ;;  %v4605_v60 = vadd.f32 1.0, %v5848_v62 }
0x380e   :  { %v4606_v12 = vadd.f32 1.0, %v5850_v35 }
0x380f   :  { %4616 = vrot.lane.b32.xlu1 %v4614_v23, %s6220_s22  ;;  %5851 = vrcp.f32 %v4605_v60 }
0x3810   :  { %4618 = vrot.lane.b32.xlu0 %v4615_v3, %s6220_s22  ;;  %5853 = vrcp.f32 %v4606_v12 }
0x3819   :  { %v5852_v6 = vpop.eup %5851 }
0x381a   :  { %v5854_v8 = vpop.eup %5853 }
0x387d   :  { %v4627_v40 = vpop.permute.xlu1 %4626 }
0x387e   :  { %v4632_v44 = vmul.f32 %v5852_v6, %v4627_v40  ;;  %v4629_v49 = vpop.permute.xlu0 %4628 }
0x387f   :  { %v4633_v51 = vmul.f32 %v5854_v8, %v4629_v49 }
0x3880   :  { %4636 = vrot.lane.b32.xlu1 %v4632_v44, %s6220_s22 }
0x3881   :  { %4638 = vrot.lane.b32.xlu0 %v4633_v51, %s6220_s22  ;;  %v4617_v14 = vpop.permute.xlu1 %4616 }
0x3882   :  { %v4619_v17 = vpop.permute.xlu0 %4618  ;;  %v4622_v2 = vmul.f32 %v5852_v6, %v4617_v14 }
0x3883   :  { %v4623_v18 = vmul.f32 %v5854_v8, %v4619_v17 }
0x38f2   :  { %v4637_v19 = vpop.permute.xlu1 %4636 }
0x38f3   :  { %v4642_v20 = vadd.f32 %v4637_v19, %v4622_v2  ;;  %v4639_v25 = vpop.permute.xlu0 %4638 }
0x38f4   :  { %v4643_v33 = vadd.f32 %v4639_v25, %v4623_v18 }
0x38f5   :  { %5855 = vtanh.f32 %v4642_v20 }
0x38f6   :  { %5857 = vtanh.f32 %v4643_v33 }
0x38ff   :  { %v5856_v61 = vpop.eup %5855 }
0x3900   :  { %v5858_v0 = vpop.eup %5857  ;;  %4648 = vrot.lane.b32.xlu1 %v5856_v61, %s6221_s6 }
0x3901   :  { %4650 = vrot.lane.b32.xlu0 %v5858_v0, %s6221_s6 }
0x3972   :  { %v4649_v16 = vpop.permute.xlu1 %4648 }
0x3973   :  { %v4654_v34 = vmul.f32 %v5852_v6, %v4649_v16  ;;  %v4651_v22 = vpop.permute.xlu0 %4650 }
0x3974   :  { %v4655_v42 = vmul.f32 %v5854_v8, %v4651_v22 }
0x3975   :  { %v4658_v13 = vrot.slane %v4654_v34, 7 }
0x3976   :  { %v4659_v37 = vrot.slane %v4655_v42, 6 }
0x3978   :  { %v4660_v15 = vsel %vm1629_vm7, %v4659_v37, %v4658_v13 }
0x3979   :  { %4661 = vrot.lane.b32.xlu1 %v4660_v15, %s6223_s8 }
0x39eb   :  { %v4662_v41 = vpop.permute.xlu1 %4661 }
0x39ec   :  { %v4664_v48 = vmul.f32 %v4662_v41, %v6929_v31 }
0x39ee   :  { %v4666_v39 = vadd.f32 %v4665_v27, %v4664_v48 }
0x39f0   :  { %v4674_v52 = vrot.slane %v4666_v39, %v6510_v1 }
0x39f2   :  { %v4675_v46 = vcombine.high %v4674_v52, %v4674_v52  ;;  %v4682_v28 = vrot.slane %v4674_v52, %v6510_v1 }
0x39f4   :  { %v4689_v47 = vrot.slane %v4675_v46, %v6510_v1  ;;  %4692 = vst.msk [vmem:[#allocation3 + $0x7] sm:$0x1] %vm3411_vm11, %v4682_v28 }
0x39f6   :  { %4693 = vst.msk [vmem:[#allocation3 + $0xf] sm:$0x1] %vm3411_vm11, %v4689_v47 }
0x39fb   :  { %v4694_v38 = vld [vmem:[#allocation3] sm:$0xff] }
0x39fc   :  { %5354 = vmatprep.mubr.msk.f32.mxu1 %vm831_vm5, %v4694_v38 }
0x39fd   :  { %v4695_v43 = vld [vmem:[#allocation3 + $0x8] sm:$0xff] }
0x39fe   :  { %5355 = vmatmul.mubr.msk.f32.vlgmr.msra.gmra.mrb[32].mxu1 %vm831_vm5, %v4695_v43 }
0x39ff   :  { %6112 = shalt.err (!%p6109_p8)
}
0x3a00   :  { %s6113_s26 = scalar_lea.hbm %s6395_s3, 256 }
0x3a01   :  { %p6114_p9 = scmp.ne.s32.totalorder %s6395_s3, %s6113_s26  ;;  %p6117_p10 = scmp.lt.u32.totalorder %s6113_s26, %s6395_s3 }
0x3a03   :  { %p6119_p11 = pnand %p6117_p10, %p6114_p9 }
0x3a05   :  { %6122 = shalt.err (!%p6119_p11)
}
0x3a06   :  { %s6225_s21 = smov 128   ;;  %v4949_v1 = vld [vmem:[#allocation21] ss:$0 sm:$0xff]  ;;  %s6226_s28 = smov [#allocation22]  }
0x3a07   :  { %4812 = dma.vmem_to_hbm [thread:$0]  %s4807_s23, 256, %s6395_s3, [#allocation24], %s6225_s21, %s6225_s21, %s6220_s22  }
0x3a08   :  { %s4794_s5 = sshll.u32 %s6226_s28, 4  ;;  %s4795_s5 = int_to_ptr.vmem [resolvable:$true] %s4794_s5 }
0x3a09   :  { %s6123_s9 = scalar_lea.vmem %s4795_s5, 256  ;;  %p6128_p13 = scmp.lt.s32.totalorder %s4795_s5, %s4795_s5 }
0x3a0a   :  { %p6124_p12 = scmp.ne.s32.totalorder %s4795_s5, %s6123_s9  ;;  %p6129_p0 = scmp.lt.s32.totalorder %s6123_s9, %s6123_s9 }
0x3a0c   :  { %p6130_p1 = por %p6129_p0, %p6128_p13 }
0x3a0e   :  { %p6131_p2 = pnand %p6130_p1, %p6124_p12 }
0x3ad1   :  { %v5356_v31 = vpop.f32.mrb[32].mxu1 }
0x3ad2   :  { %v4782_v32 = vadd.f32 %v5356_v31, %v4949_v1  ;;  %v4776_v56 = vpop.f32.mrb[33].mxu1 }
0x3ad3   :  { %v4777_v30 = vadd.f32 %v4949_v1, %v4776_v56 }
0x3ad4   :  { %v4786_v7 = vmul.f32 %v6953_v36, %v4782_v32 }
0x3ad5   :  { %v4785_v29 = vmul.f32 %v6958_v54, %v4777_v30 }
0x3ad6   :  { %4788 = vst.msk [vmem:[#allocation22 + $0x8] sm:$0xff] %vm831_vm5, %v4786_v7 }
0x3ad7   :  { %4787 = vst.msk [vmem:[#allocation22] sm:$0xff] %vm831_vm5, %v4785_v29 }
0x3ad8   :  { %6134 = shalt.err (!%p6131_p2)
}
0x3ad9   :  { %s6135_s3 = scalar_lea.hbm %s6390_s20, 256 }
0x3ada   :  { %p6136_p3 = scmp.ne.s32.totalorder %s6390_s20, %s6135_s3  ;;  %p6139_p4 = scmp.lt.u32.totalorder %s6135_s3, %s6390_s20 }
0x3adc   :  { %p6141_p5 = pnand %p6139_p4, %p6136_p3 }
0x3ade   :  { %6144 = shalt.err (!%p6141_p5)
}
0x3adf   :  { %4800 = dma.vmem_to_hbm [thread:$0]  %s4795_s5, 256, %s6390_s20, [#allocation6], %s6225_s21, %s6225_s21, %s6220_s22  }
0x3ae0   :  { %6157 = dma.done.wait [#allocation6], 256  }
0x3ae1   :  { %6158 = vsyncadd [#allocation6], 4294967040 }
0x3ae2   :  { %6159 = dma.done.wait [#allocation24], 256  }
0x3ae3   :  { %6160 = vsyncadd [#allocation24], 4294967040 }
0x3ae4   :  { %4819 = vsyncpa [#allocation5], 1 }
0x3ae5   :  { %4820 = vsyncpa [#allocation8], 1 }
0x3ae6   :  { %4821 = vsyncpa [#allocation11], 1 }
0x3ae7   :  { %4822 = vsyncpa [#allocation14], 1 }
0x3ae8   :  { %4823 = vsyncpa [#allocation17], 1 }
0x3ae9   :  { %4824 = vsyncpa [#allocation20], 1 }
0x3aea   :  { %4825 = vsyncpa [#allocation6], 1 }
0x3aeb   :  { %4826 = vsyncpa [#allocation24], 1 }

</bundles_post_ra>
